<compile_context>
chip_gen: v6e
topology: v6e:2x2x1
jax: 0.10.0
libtpu: 0.0.40
codegen_flags: <defaults>
</compile_context>

<pallas_src>
import jax
import jax.numpy as jnp
import numpy as np
from jax.experimental import pallas as pl
from jax.experimental.pallas import tpu as pltpu

BN_EPS = 1e-5
BF16 = jnp.bfloat16
F32 = jnp.float32

_VMEM = pl.BlockSpec(memory_space=pltpu.MemorySpace.VMEM)
_SMEM = pl.BlockSpec(memory_space=pltpu.MemorySpace.SMEM)
_HBM = pl.BlockSpec(memory_space=pl.ANY)

# network geometry (batch baked into the structure matrices, as before)
N = 2
H0, H1, H2, P3 = 28, 17, 10, 5
C1, C2 = 20, 10
BS1, BS2, BSP = 40, 24, 8   # sublane-aligned row-block strides of the stacked matrices


def _mm(a, b):
    """bf16 operands, f32 accumulation on the MXU."""
    return jnp.dot(a.astype(BF16), b.astype(BF16), preferred_element_type=F32)


def _regroup(t, nblk, rows, stride):
    """[nblk*stride, C] -> [rows, nblk*C]: move stacked row blocks into columns."""
    return jnp.concatenate(
        [t[k * stride:k * stride + rows, :] for k in range(nblk)], axis=1)


def _bn_relu(y, fold, bcast, gamma, beta, count):
    """Training-mode BatchNorm2d + ReLU on y laid out [rows=(n,h), cols=(w,c)].

    Row sums / sums-of-squares are f32 VPU reductions; the spatial fold and the
    per-channel broadcast are tiny f32 matmuls against 0/1 matrices."""
    rowsum = jnp.sum(y, axis=0, keepdims=True)
    rowsq = jnp.sum(y * y, axis=0, keepdims=True)
    stats = jnp.dot(jnp.concatenate([rowsum, rowsq], axis=0), fold,
                    preferred_element_type=F32)                     # [2, C]
    mean = stats[0:1] / count
    var = jnp.maximum(stats[1:2] / count - mean * mean, 0.0)
    scale = gamma * jax.lax.rsqrt(var + BN_EPS)
    shift = beta - mean * scale
    sw = jnp.dot(jnp.concatenate([scale, shift], axis=0), bcast,
                 preferred_element_type=F32)                        # [2, W*C]
    return jnp.maximum(y * sw[0:1] + sw[1:2], 0.0)


# ----------------------------- fused Pallas kernel ---------------------------

def _bayes_fused_kernel(idx_ref, x_ref,
                        s1_ref, a1_ref, f1_ref, bc1_ref, g1_ref, be1_ref,
                        s2_ref, a2_hbm, f2_ref, bc2_ref, g2_ref, be2_ref,
                        chan_ref, plh_ref, prw_hbm, w4a_hbm, b4a_ref, w4b_hbm, b4b_ref,
                        x2_ref, x3_ref, x4_ref,
                        a2_vm, prw_vm, w4a_vm, w4b_vm, dsem):
    # ---- overlap the late-use constant DMAs with layer-1/2 compute
    cp_a2 = pltpu.make_async_copy(a2_hbm, a2_vm, dsem.at[0]); cp_a2.start()
    cp_pr = pltpu.make_async_copy(prw_hbm, prw_vm, dsem.at[1]); cp_pr.start()
    cp_wa = pltpu.make_async_copy(w4a_hbm, w4a_vm, dsem.at[2]); cp_wa.start()
    cp_wb = pltpu.make_async_copy(w4b_hbm, w4b_vm, dsem.at[3]); cp_wb.start()

    # ---- layer1: Conv2d(1, 20, k=4, s=2, p=4) as 2 matmuls + a regroup
    #      (conv bias dropped: exactly cancelled by training-mode BN mean subtraction)
    t1 = _mm(s1_ref[...], x_ref[...])                      # [4*BS1, 28]
    y1 = _mm(_regroup(t1, 4, N * H1, BS1), a1_ref[...])    # [34, 340]
    x1 = _bn_relu(y1, f1_ref[...], bc1_ref[...], g1_ref[...], be1_ref[...],
                  float(N * H1 * H1))

    # ---- layer2: Conv2d(20, 10, k=3, s=2, p=2)
    t2 = _mm(s2_ref[...], x1)                              # [3*BS2, 340]
    t2p = _regroup(t2, 3, N * H2, BS2)                     # [20, 1020]
    cp_a2.wait()
    y2 = _mm(t2p, a2_vm[...])                              # [20, 100]
    x2 = _bn_relu(y2, f2_ref[...], bc2_ref[...], g2_ref[...], be2_ref[...],
                  float(N * H2 * H2))

    # ---- x2[0, idx_feature, :, :] = 0  (rows 0..9 are batch element 0)
    row_ids = jax.lax.broadcasted_iota(jnp.int32, x2.shape, 0)
    mask = (row_ids < H2) & (chan_ref[...] == idx_ref[0])
    x2 = jnp.where(mask, 0.0, x2)
    pad = jnp.zeros((x2.shape[0], x2_ref.shape[1] - x2.shape[1]), F32)
    x2_ref[...] = jnp.concatenate([x2, pad], axis=1)       # lane-dense (128-wide) store

    # ---- layer3: AvgPool2d(2,2) + flatten to torch (c, ph, pw) order
    hp = _mm(plh_ref[...], x2)                             # [5*BSP, 100], rows=(ph,n), h-pooled
    hpp = _regroup(hp, P3, N, BSP)                         # [2, 500], cols=(ph, w, c)
    cp_pr.wait()
    x3 = _mm(hpp, prw_vm[...])                             # [2, 256] (cols 250..255 zero)
    x3_ref[...] = x3

    # ---- layer4: Linear(250, 50) + ReLU + Linear(50, 10)
    cp_wa.wait()
    h = jnp.maximum(_mm(x3, w4a_vm[...]) + b4a_ref[...], 0.0)
    cp_wb.wait()
    x4_ref[...] = _mm(h, w4b_vm[...]) + b4b_ref[...]       # [2, 128] (cols 10..127 zero)


# ----------------------------- wrapper ---------------------------------------

def bayes_auto_forward(x_nchw, consts, idx_feature):
    n = x_nchw.shape[0]
    x2d = x_nchw.reshape(n * H0, H0)          # C_in = 1, so NCHW == [N*H, W]

    out_shapes = (
        jax.ShapeDtypeStruct((n * H2, 128), F32),   # x2: rows=(n,h), cols=(w,c) padded
        jax.ShapeDtypeStruct((n, 256), F32),        # x3 (torch flatten order) padded
        jax.ShapeDtypeStruct((n, 128), F32),        # x4 padded
    )
    in_specs = [
        _SMEM,                                               # idx_feature
        _VMEM, _VMEM, _VMEM, _VMEM, _VMEM, _VMEM, _VMEM,     # x, s1cat, a1cat, fold1, bcast1, g1, beta1
        _VMEM, _HBM, _VMEM, _VMEM, _VMEM, _VMEM,             # s2cat, a2cat(HBM), fold2, bcast2, g2, beta2
        _VMEM, _VMEM, _HBM,                                  # colchan, pool_lh, pool_rw(HBM)
        _HBM, _VMEM, _HBM, _VMEM,                            # w4a(HBM), b4a, w4b(HBM), b4b
    ]
    scratch_shapes = [
        pltpu.VMEM(consts["a2cat"].shape, BF16),
        pltpu.VMEM(consts["pool_rw"].shape, BF16),
        pltpu.VMEM(consts["w4a"].shape, BF16),
        pltpu.VMEM(consts["w4b"].shape, BF16),
        pltpu.SemaphoreType.DMA((4,)),
    ]

    x2p, x3p, x4p = pl.pallas_call(
        _bayes_fused_kernel,
        out_shape=out_shapes,
        in_specs=in_specs,
        out_specs=(_VMEM, _VMEM, _VMEM),
        scratch_shapes=scratch_shapes,
        cost_estimate=pl.CostEstimate(flops=10_000_000, transcendentals=64,
                                      bytes_accessed=800_000),
    )(idx_feature, x2d,
      consts["s1cat"], consts["a1cat"], consts["fold1"], consts["bcast1"],
      consts["g1"], consts["beta1"],
      consts["s2cat"], consts["a2cat"], consts["fold2"], consts["bcast2"],
      consts["g2"], consts["beta2"],
      consts["colchan"], consts["pool_lh"], consts["pool_rw"],
      consts["w4a"], consts["b4a"], consts["w4b"], consts["b4b"])

    # TODO(synk): the (n,h,w,c)->(n,c,h,w) relayout of the 8 KB x2 tile stays in
    # XLA: it is not expressible as a single L@X@R inside the matmul-only kernel
    # and an in-kernel 4-D jnp.transpose has Mosaic lowering risk.
    x2 = jnp.transpose(x2p[:, :H2 * C2].reshape(n, H2, H2, C2), (0, 3, 1, 2))
    return x2, x3p[:, :C2 * P3 * P3], x4p[:, :10]


# ----------------------- derived structure matrices --------------------------

def build_consts(params, batch):
    """Precompute the stacked selection / banded-weight / pooling matrices that
    let the kernel run the whole network as a handful of dense 2D matmuls."""
    W1 = np.asarray(params["W1"], np.float32)   # [20, 1, 4, 4]  (torch layout)
    W2 = np.asarray(params["W2"], np.float32)   # [10, 20, 3, 3]

    # conv1 (k=4, s=2, p=4): stacked row selection + stacked banded weight matrix
    s1cat = np.zeros((4 * BS1, batch * H0), np.float32)
    for kh in range(4):
        for b in range(batch):
            for oh in range(H1):
                h = 2 * oh + kh - 4
                if 0 <= h < H0:
                    s1cat[kh * BS1 + b * H1 + oh, b * H0 + h] = 1.0
    a1cat = np.zeros((4 * H0, H1 * C1), np.float32)
    for kh in range(4):
        for ow in range(H1):
            for kw in range(4):
                w = 2 * ow + kw - 4
                if 0 <= w < H0:
                    a1cat[kh * H0 + w, ow * C1:(ow + 1) * C1] = W1[:, 0, kh, kw]

    # conv2 (k=3, s=2, p=2)
    s2cat = np.zeros((3 * BS2, batch * H1), np.float32)
    for kh in range(3):
        for b in range(batch):
            for oh in range(H2):
                h = 2 * oh + kh - 2
                if 0 <= h < H1:
                    s2cat[kh * BS2 + b * H2 + oh, b * H1 + h] = 1.0
    a2cat = np.zeros((3 * H1 * C1, H2 * C2), np.float32)
    for kh in range(3):
        for ow in range(H2):
            for kw in range(3):
                w = 2 * ow + kw - 2
                if 0 <= w < H1:
                    a2cat[kh * H1 * C1 + w * C1:kh * H1 * C1 + (w + 1) * C1,
                          ow * C2:(ow + 1) * C2] = W2[:, :, kh, kw].T   # [ci, co]

    # BN spatial fold / channel broadcast (0/1 matrices, kept in f32)
    fold1 = np.tile(np.eye(C1, dtype=np.float32), (H1, 1))    # [340, 20]
    bcast1 = np.tile(np.eye(C1, dtype=np.float32), (1, H1))   # [20, 340]
    fold2 = np.tile(np.eye(C2, dtype=np.float32), (H2, 1))    # [100, 10]
    bcast2 = np.tile(np.eye(C2, dtype=np.float32), (1, H2))   # [10, 100]

    # channel id of each conv2 output column (for the feature-map zeroing)
    colchan = np.tile(np.arange(C2, dtype=np.int32), H2)[None, :]   # [1, 100]

    # pool: h-pair sum on the left, pw-pool + CHW flatten (0.25 folded) on the right
    pool_lh = np.zeros((P3 * BSP, batch * H2), np.float32)
    for ph in range(P3):
        for b in range(batch):
            pool_lh[ph * BSP + b, b * H2 + 2 * ph] = 1.0
            pool_lh[ph * BSP + b, b * H2 + 2 * ph + 1] = 1.0
    pool_rw = np.zeros((P3 * H2 * C2, 256), np.float32)       # lane-padded 250 -> 256
    for ph in range(P3):
        for w in range(H2):
            for c in range(C2):
                pool_rw[ph * H2 * C2 + w * C2 + c,
                        c * P3 * P3 + ph * P3 + w // 2] = 0.25

    # MLP weights, zero-padded to lane-dense shapes
    w4a = np.zeros((256, 50), np.float32)
    w4a[:250, :] = np.asarray(params["W4a"], np.float32)
    w4b = np.zeros((50, 128), np.float32)
    w4b[:, :10] = np.asarray(params["W4b"], np.float32)
    b4b = np.zeros((1, 128), np.float32)
    b4b[0, :10] = np.asarray(params["b4b"], np.float32)

    def bf(a):
        return jnp.asarray(a, dtype=BF16)

    def f32(a):
        return jnp.asarray(a, dtype=F32)

    return dict(
        s1cat=bf(s1cat), a1cat=bf(a1cat), fold1=f32(fold1), bcast1=f32(bcast1),
        g1=params["g1"][None, :].astype(F32), beta1=params["beta1"][None, :].astype(F32),
        s2cat=bf(s2cat), a2cat=bf(a2cat), fold2=f32(fold2), bcast2=f32(bcast2),
        g2=params["g2"][None, :].astype(F32), beta2=params["beta2"][None, :].astype(F32),
        colchan=jnp.asarray(colchan), pool_lh=bf(pool_lh), pool_rw=bf(pool_rw),
        w4a=bf(w4a), b4a=params["b4a"][None, :].astype(F32),
        w4b=bf(w4b), b4b=f32(b4b),
    )


# ----------------------------- parameters ------------------------------------

def init_params(key):
    ks = jax.random.split(key, 8)
    p = {}
    p["W1"] = jax.random.normal(ks[0], (20, 1, 4, 4), F32) * 0.1   # torch layout
    p["b1"] = jax.random.normal(ks[1], (20,), F32) * 0.1
    p["g1"] = jnp.ones((20,), F32)
    p["beta1"] = jnp.zeros((20,), F32)
    p["W2"] = jax.random.normal(ks[2], (10, 20, 3, 3), F32) * 0.05
    p["b2"] = jax.random.normal(ks[3], (10,), F32) * 0.1
    p["g2"] = jnp.ones((10,), F32)
    p["beta2"] = jnp.zeros((10,), F32)
    p["W4a"] = jax.random.normal(ks[4], (250, 50), F32) * 0.05     # [in, out]
    p["b4a"] = jax.random.normal(ks[5], (50,), F32) * 0.1
    p["W4b"] = jax.random.normal(ks[6], (50, 10), F32) * 0.1
    p["b4b"] = jax.random.normal(ks[7], (10,), F32) * 0.1
    return p


# ----------------------------- plain-JAX reference ---------------------------

def _im2col(x_nhwc, kh, kw, stride, pad):
    x = jnp.pad(x_nhwc, ((0, 0), (pad, pad), (pad, pad), (0, 0)))
    n, h, w, c = x.shape
    oh = (h - kh) // stride + 1
    ow = (w - kw) // stride + 1
    cols = []
    for i in range(kh):
        for j in range(kw):
            cols.append(x[:, i:i + stride * oh:stride, j:j + stride * ow:stride, :])
    p = jnp.stack(cols, axis=3)                  # [N, oh, ow, kh*kw, C]
    return p.reshape(n * oh * ow, kh * kw * c), oh, ow


def ref_forward(x_nchw, params, idx_feature):
    """Straightforward im2col implementation of the torch module (incl. the conv
    biases).  Matmul operands cast to bf16 (f32 accumulation) to mirror the
    kernel's MXU precision."""
    def dot(a, b):
        return jnp.dot(a.astype(BF16), b.astype(BF16), preferred_element_type=F32)

    n = x_nchw.shape[0]
    x = jnp.transpose(x_nchw, (0, 2, 3, 1))                    # NHWC
    w1 = jnp.transpose(params["W1"], (2, 3, 1, 0)).reshape(16, 20)
    p1, h1, w1o = _im2col(x, 4, 4, 2, 4)
    y1 = dot(p1, w1) + params["b1"][None, :]
    m = jnp.mean(y1, axis=0, keepdims=True)
    v = jnp.mean((y1 - m) ** 2, axis=0, keepdims=True)
    y1 = jnp.maximum((y1 - m) * jax.lax.rsqrt(v + BN_EPS) * params["g1"][None, :]
                     + params["beta1"][None, :], 0.0)
    x1 = y1.reshape(n, h1, w1o, 20)

    w2 = jnp.transpose(params["W2"], (2, 3, 1, 0)).reshape(180, 10)
    p2, h2, w2o = _im2col(x1, 3, 3, 2, 2)
    y2 = dot(p2, w2) + params["b2"][None, :]
    m = jnp.mean(y2, axis=0, keepdims=True)
    v = jnp.mean((y2 - m) ** 2, axis=0, keepdims=True)
    y2 = jnp.maximum((y2 - m) * jax.lax.rsqrt(v + BN_EPS) * params["g2"][None, :]
                     + params["beta2"][None, :], 0.0)
    x2 = jnp.transpose(y2.reshape(n, h2, w2o, 10), (0, 3, 1, 2))   # NCHW
    x2 = x2.at[0, idx_feature[0]].set(0.0)

    pooled = x2.reshape(n, 10, h2 // 2, 2, w2o // 2, 2).mean(axis=(3, 5))
    x3 = pooled.reshape(n, 250)
    h = jnp.maximum(dot(x3, params["W4a"]) + params["b4a"][None, :], 0.0)
    x4 = dot(h, params["W4b"]) + params["b4b"][None, :]
    return x2, x3, x4


# ----------------------------- main -------------------------------------------

if __name__ == "__main__":
    key = jax.random.PRNGKey(0)
    kx, kp, ki = jax.random.split(key, 3)

    # Input shape implied by the module (x3.view(-1, 250)): [N, 1, 28, 28]
    x = jax.random.normal(kx, (2, 1, 28, 28), F32)
    params = init_params(kp)
    consts = build_consts(params, batch=2)
    # deterministic replacement for numpy.random.randint(0, 9, 1)
    idx_feature = jax.random.randint(ki, (1,), 0, 9, dtype=jnp.int32)

    fwd = jax.jit(bayes_auto_forward)
    x2, x3, x4 = fwd(x, consts, idx_feature)
    jax.block_until_ready((x2, x3, x4))

    # sanity check against a plain-JAX reference of the same math; tolerance
    # absorbs the (intentional) bf16-operand MXU rounding and the dropped
    # (mathematically cancelled) conv biases.
    r2, r3, r4 = ref_forward(x, params, idx_feature)
    np.testing.assert_allclose(np.asarray(x2), np.asarray(r2), rtol=2e-2, atol=2e-2)
    np.testing.assert_allclose(np.asarray(x3), np.asarray(r3), rtol=2e-2, atol=2e-2)
    np.testing.assert_allclose(np.asarray(x4), np.asarray(r4), rtol=2e-2, atol=2e-2)

    assert x2.shape == (2, 10, 10, 10) and x3.shape == (2, 250) and x4.shape == (2, 10)
    print("KERNEL_OK")
</pallas_src>

<mosaic_0001>
module attributes {stable_mosaic.version = 11 : i64} {
  func.func @_bayes_fused_kernel(%arg0: memref<1xi32, #tpu.memory_space<smem>>, %arg1: memref<56x28xf32, #tpu.memory_space<vmem>>, %arg2: memref<160x56xbf16, #tpu.memory_space<vmem>>, %arg3: memref<112x340xbf16, #tpu.memory_space<vmem>>, %arg4: memref<340x20xf32, #tpu.memory_space<vmem>>, %arg5: memref<20x340xf32, #tpu.memory_space<vmem>>, %arg6: memref<1x20xf32, #tpu.memory_space<vmem>>, %arg7: memref<1x20xf32, #tpu.memory_space<vmem>>, %arg8: memref<72x34xbf16, #tpu.memory_space<vmem>>, %arg9: memref<1020x100xbf16, #tpu.memory_space<any>>, %arg10: memref<100x10xf32, #tpu.memory_space<vmem>>, %arg11: memref<10x100xf32, #tpu.memory_space<vmem>>, %arg12: memref<1x10xf32, #tpu.memory_space<vmem>>, %arg13: memref<1x10xf32, #tpu.memory_space<vmem>>, %arg14: memref<1x100xi32, #tpu.memory_space<vmem>>, %arg15: memref<40x20xbf16, #tpu.memory_space<vmem>>, %arg16: memref<500x256xbf16, #tpu.memory_space<any>>, %arg17: memref<256x50xbf16, #tpu.memory_space<any>>, %arg18: memref<1x50xf32, #tpu.memory_space<vmem>>, %arg19: memref<50x128xbf16, #tpu.memory_space<any>>, %arg20: memref<1x128xf32, #tpu.memory_space<vmem>>, %arg21: memref<20x128xf32, #tpu.memory_space<vmem>>, %arg22: memref<2x256xf32, #tpu.memory_space<vmem>>, %arg23: memref<2x128xf32, #tpu.memory_space<vmem>>, %arg24: memref<1020x100xbf16, #tpu.memory_space<vmem>>, %arg25: memref<500x256xbf16, #tpu.memory_space<vmem>>, %arg26: memref<256x50xbf16, #tpu.memory_space<vmem>>, %arg27: memref<50x128xbf16, #tpu.memory_space<vmem>>, %arg28: memref<4x!tpu.dma_semaphore, #tpu.memory_space<semaphore_mem>>) attributes {dimension_semantics = [], scalar_prefetch = 0 : i64, scratch_operands = 5 : i64, tpu.core_type = #tpu.core_type<tc>} {
    %c0_i32 = arith.constant 0 : i32
    %0 = tpu.memref_slice %arg28[%c0_i32] : memref<4x!tpu.dma_semaphore, #tpu.memory_space<semaphore_mem>> -> memref<1x!tpu.dma_semaphore, #tpu.memory_space<semaphore_mem>>
    %1 = tpu.memref_squeeze %0 : memref<1x!tpu.dma_semaphore, #tpu.memory_space<semaphore_mem>> -> memref<!tpu.dma_semaphore, #tpu.memory_space<semaphore_mem>>
    tpu.enqueue_dma source(%arg9 : memref<1020x100xbf16, #tpu.memory_space<any>>) target(%arg24 : memref<1020x100xbf16, #tpu.memory_space<vmem>>) target_semaphore(%1 : memref<!tpu.dma_semaphore, #tpu.memory_space<semaphore_mem>>)
    %c1_i32 = arith.constant 1 : i32
    %2 = tpu.memref_slice %arg28[%c1_i32] : memref<4x!tpu.dma_semaphore, #tpu.memory_space<semaphore_mem>> -> memref<1x!tpu.dma_semaphore, #tpu.memory_space<semaphore_mem>>
    %3 = tpu.memref_squeeze %2 : memref<1x!tpu.dma_semaphore, #tpu.memory_space<semaphore_mem>> -> memref<!tpu.dma_semaphore, #tpu.memory_space<semaphore_mem>>
    tpu.enqueue_dma source(%arg16 : memref<500x256xbf16, #tpu.memory_space<any>>) target(%arg25 : memref<500x256xbf16, #tpu.memory_space<vmem>>) target_semaphore(%3 : memref<!tpu.dma_semaphore, #tpu.memory_space<semaphore_mem>>)
    %c2_i32 = arith.constant 2 : i32
    %4 = tpu.memref_slice %arg28[%c2_i32] : memref<4x!tpu.dma_semaphore, #tpu.memory_space<semaphore_mem>> -> memref<1x!tpu.dma_semaphore, #tpu.memory_space<semaphore_mem>>
    %5 = tpu.memref_squeeze %4 : memref<1x!tpu.dma_semaphore, #tpu.memory_space<semaphore_mem>> -> memref<!tpu.dma_semaphore, #tpu.memory_space<semaphore_mem>>
    tpu.enqueue_dma source(%arg17 : memref<256x50xbf16, #tpu.memory_space<any>>) target(%arg26 : memref<256x50xbf16, #tpu.memory_space<vmem>>) target_semaphore(%5 : memref<!tpu.dma_semaphore, #tpu.memory_space<semaphore_mem>>)
    %c3_i32 = arith.constant 3 : i32
    %6 = tpu.memref_slice %arg28[%c3_i32] : memref<4x!tpu.dma_semaphore, #tpu.memory_space<semaphore_mem>> -> memref<1x!tpu.dma_semaphore, #tpu.memory_space<semaphore_mem>>
    %7 = tpu.memref_squeeze %6 : memref<1x!tpu.dma_semaphore, #tpu.memory_space<semaphore_mem>> -> memref<!tpu.dma_semaphore, #tpu.memory_space<semaphore_mem>>
    tpu.enqueue_dma source(%arg19 : memref<50x128xbf16, #tpu.memory_space<any>>) target(%arg27 : memref<50x128xbf16, #tpu.memory_space<vmem>>) target_semaphore(%7 : memref<!tpu.dma_semaphore, #tpu.memory_space<semaphore_mem>>)
    %c0 = arith.constant 0 : index
    %c0_0 = arith.constant 0 : index
    %8 = vector.load %arg2[%c0, %c0_0] : memref<160x56xbf16, #tpu.memory_space<vmem>>, vector<160x56xbf16>
    %c0_1 = arith.constant 0 : index
    %c0_2 = arith.constant 0 : index
    %9 = vector.load %arg1[%c0_1, %c0_2] : memref<56x28xf32, #tpu.memory_space<vmem>>, vector<56x28xf32>
    %10 = arith.truncf %9 : vector<56x28xf32> to vector<56x28xbf16>
    %cst = arith.constant dense<0.000000e+00> : vector<160x28xf32>
    %11 = tpu.matmul %8, %10, %cst {dimension_numbers = #tpu.dot_dimension_numbers<[1], [0], [0], [1], [0, 0, 1, 1], [], []>} : vector<160x56xbf16>, vector<56x28xbf16>, vector<160x28xf32> -> vector<160x28xf32>
    %12 = vector.extract_strided_slice %11 {offsets = [0, 0], sizes = [34, 28], strides = [1, 1]} : vector<160x28xf32> to vector<34x28xf32>
    %13 = vector.extract_strided_slice %11 {offsets = [40, 0], sizes = [34, 28], strides = [1, 1]} : vector<160x28xf32> to vector<34x28xf32>
    %14 = vector.extract_strided_slice %11 {offsets = [80, 0], sizes = [34, 28], strides = [1, 1]} : vector<160x28xf32> to vector<34x28xf32>
    %15 = vector.extract_strided_slice %11 {offsets = [120, 0], sizes = [34, 28], strides = [1, 1]} : vector<160x28xf32> to vector<34x28xf32>
    %16 = tpu.concatenate %12, %13, %14, %15 in 1 : vector<34x28xf32>, vector<34x28xf32>, vector<34x28xf32>, vector<34x28xf32> -> vector<34x112xf32>
    %c0_3 = arith.constant 0 : index
    %c0_4 = arith.constant 0 : index
    %17 = vector.load %arg3[%c0_3, %c0_4] : memref<112x340xbf16, #tpu.memory_space<vmem>>, vector<112x340xbf16>
    %18 = arith.truncf %16 : vector<34x112xf32> to vector<34x112xbf16>
    %cst_5 = arith.constant dense<0.000000e+00> : vector<34x340xf32>
    %19 = tpu.matmul %18, %17, %cst_5 {dimension_numbers = #tpu.dot_dimension_numbers<[1], [0], [0], [1], [0, 0, 1, 1], [], []>} : vector<34x112xbf16>, vector<112x340xbf16>, vector<34x340xf32> -> vector<34x340xf32>
    %c0_6 = arith.constant 0 : index
    %c0_7 = arith.constant 0 : index
    %20 = vector.load %arg4[%c0_6, %c0_7] : memref<340x20xf32, #tpu.memory_space<vmem>>, vector<340x20xf32>
    %c0_8 = arith.constant 0 : index
    %c0_9 = arith.constant 0 : index
    %21 = vector.load %arg5[%c0_8, %c0_9] : memref<20x340xf32, #tpu.memory_space<vmem>>, vector<20x340xf32>
    %c0_10 = arith.constant 0 : index
    %c0_11 = arith.constant 0 : index
    %22 = vector.load %arg6[%c0_10, %c0_11] : memref<1x20xf32, #tpu.memory_space<vmem>>, vector<1x20xf32>
    %c0_12 = arith.constant 0 : index
    %c0_13 = arith.constant 0 : index
    %23 = vector.load %arg7[%c0_12, %c0_13] : memref<1x20xf32, #tpu.memory_space<vmem>>, vector<1x20xf32>
    %cst_14 = arith.constant dense<0.000000e+00> : vector<340xf32>
    %24 = vector.multi_reduction <add>, %19, %cst_14 [0] : vector<34x340xf32> to vector<340xf32>
    %25 = vector.shape_cast %24 : vector<340xf32> to vector<1x340xf32>
    %26 = arith.mulf %19, %19 : vector<34x340xf32>
    %cst_15 = arith.constant dense<0.000000e+00> : vector<340xf32>
    %27 = vector.multi_reduction <add>, %26, %cst_15 [0] : vector<34x340xf32> to vector<340xf32>
    %28 = vector.shape_cast %27 : vector<340xf32> to vector<1x340xf32>
    %29 = tpu.concatenate %25, %28 in 0 : vector<1x340xf32>, vector<1x340xf32> -> vector<2x340xf32>
    %cst_16 = arith.constant dense<0.000000e+00> : vector<2x20xf32>
    %30 = tpu.matmul %29, %20, %cst_16 {dimension_numbers = #tpu.dot_dimension_numbers<[1], [0], [0], [1], [0, 0, 1, 1], [], []>} : vector<2x340xf32>, vector<340x20xf32>, vector<2x20xf32> -> vector<2x20xf32>
    %31 = vector.extract_strided_slice %30 {offsets = [0, 0], sizes = [1, 20], strides = [1, 1]} : vector<2x20xf32> to vector<1x20xf32>
    %cst_17 = arith.constant 5.780000e+02 : f32
    %32 = vector.broadcast %cst_17 : f32 to vector<1x20xf32>
    %33 = arith.divf %31, %32 : vector<1x20xf32>
    %34 = vector.extract_strided_slice %30 {offsets = [1, 0], sizes = [1, 20], strides = [1, 1]} : vector<2x20xf32> to vector<1x20xf32>
    %cst_18 = arith.constant 5.780000e+02 : f32
    %35 = vector.broadcast %cst_18 : f32 to vector<1x20xf32>
    %36 = arith.divf %34, %35 : vector<1x20xf32>
    %37 = arith.mulf %33, %33 : vector<1x20xf32>
    %38 = arith.subf %36, %37 : vector<1x20xf32>
    %cst_19 = arith.constant 0.000000e+00 : f32
    %39 = vector.broadcast %cst_19 : f32 to vector<1x20xf32>
    %40 = arith.maximumf %38, %39 : vector<1x20xf32>
    %cst_20 = arith.constant 9.99999974E-6 : f32
    %41 = vector.broadcast %cst_20 : f32 to vector<1x20xf32>
    %42 = arith.addf %40, %41 : vector<1x20xf32>
    %43 = math.rsqrt %42 : vector<1x20xf32>
    %44 = arith.mulf %22, %43 : vector<1x20xf32>
    %45 = arith.mulf %33, %44 : vector<1x20xf32>
    %46 = arith.subf %23, %45 : vector<1x20xf32>
    %47 = tpu.concatenate %44, %46 in 0 : vector<1x20xf32>, vector<1x20xf32> -> vector<2x20xf32>
    %cst_21 = arith.constant dense<0.000000e+00> : vector<2x340xf32>
    %48 = tpu.matmul %47, %21, %cst_21 {dimension_numbers = #tpu.dot_dimension_numbers<[1], [0], [0], [1], [0, 0, 1, 1], [], []>} : vector<2x20xf32>, vector<20x340xf32>, vector<2x340xf32> -> vector<2x340xf32>
    %49 = vector.extract_strided_slice %48 {offsets = [0, 0], sizes = [1, 340], strides = [1, 1]} : vector<2x340xf32> to vector<1x340xf32>
    %50 = vector.broadcast %49 : vector<1x340xf32> to vector<34x340xf32>
    %51 = arith.mulf %19, %50 : vector<34x340xf32>
    %52 = vector.extract_strided_slice %48 {offsets = [1, 0], sizes = [1, 340], strides = [1, 1]} : vector<2x340xf32> to vector<1x340xf32>
    %53 = vector.broadcast %52 : vector<1x340xf32> to vector<34x340xf32>
    %54 = arith.addf %51, %53 : vector<34x340xf32>
    %cst_22 = arith.constant 0.000000e+00 : f32
    %55 = vector.broadcast %cst_22 : f32 to vector<34x340xf32>
    %56 = arith.maximumf %54, %55 : vector<34x340xf32>
    %c0_23 = arith.constant 0 : index
    %c0_24 = arith.constant 0 : index
    %57 = vector.load %arg8[%c0_23, %c0_24] : memref<72x34xbf16, #tpu.memory_space<vmem>>, vector<72x34xbf16>
    %58 = arith.truncf %56 : vector<34x340xf32> to vector<34x340xbf16>
    %cst_25 = arith.constant dense<0.000000e+00> : vector<72x340xf32>
    %59 = tpu.matmul %57, %58, %cst_25 {dimension_numbers = #tpu.dot_dimension_numbers<[1], [0], [0], [1], [0, 0, 1, 1], [], []>} : vector<72x34xbf16>, vector<34x340xbf16>, vector<72x340xf32> -> vector<72x340xf32>
    %60 = vector.extract_strided_slice %59 {offsets = [0, 0], sizes = [20, 340], strides = [1, 1]} : vector<72x340xf32> to vector<20x340xf32>
    %61 = vector.extract_strided_slice %59 {offsets = [24, 0], sizes = [20, 340], strides = [1, 1]} : vector<72x340xf32> to vector<20x340xf32>
    %62 = vector.extract_strided_slice %59 {offsets = [48, 0], sizes = [20, 340], strides = [1, 1]} : vector<72x340xf32> to vector<20x340xf32>
    %63 = tpu.concatenate %60, %61, %62 in 1 : vector<20x340xf32>, vector<20x340xf32>, vector<20x340xf32> -> vector<20x1020xf32>
    %c0_i32_26 = arith.constant 0 : i32
    %64 = tpu.memref_slice %arg28[%c0_i32_26] : memref<4x!tpu.dma_semaphore, #tpu.memory_space<semaphore_mem>> -> memref<1x!tpu.dma_semaphore, #tpu.memory_space<semaphore_mem>>
    %65 = tpu.memref_squeeze %64 : memref<1x!tpu.dma_semaphore, #tpu.memory_space<semaphore_mem>> -> memref<!tpu.dma_semaphore, #tpu.memory_space<semaphore_mem>>
    tpu.wait_dma2 semaphore(%65 : memref<!tpu.dma_semaphore, #tpu.memory_space<semaphore_mem>>) src(%arg9 : memref<1020x100xbf16, #tpu.memory_space<any>>) dst(%arg24 : memref<1020x100xbf16, #tpu.memory_space<vmem>>)
    %c0_27 = arith.constant 0 : index
    %c0_28 = arith.constant 0 : index
    %66 = vector.load %arg24[%c0_27, %c0_28] : memref<1020x100xbf16, #tpu.memory_space<vmem>>, vector<1020x100xbf16>
    %67 = arith.truncf %63 : vector<20x1020xf32> to vector<20x1020xbf16>
    %cst_29 = arith.constant dense<0.000000e+00> : vector<20x100xf32>
    %68 = tpu.matmul %67, %66, %cst_29 {dimension_numbers = #tpu.dot_dimension_numbers<[1], [0], [0], [1], [0, 0, 1, 1], [], []>} : vector<20x1020xbf16>, vector<1020x100xbf16>, vector<20x100xf32> -> vector<20x100xf32>
    %c0_30 = arith.constant 0 : index
    %c0_31 = arith.constant 0 : index
    %69 = vector.load %arg10[%c0_30, %c0_31] : memref<100x10xf32, #tpu.memory_space<vmem>>, vector<100x10xf32>
    %c0_32 = arith.constant 0 : index
    %c0_33 = arith.constant 0 : index
    %70 = vector.load %arg11[%c0_32, %c0_33] : memref<10x100xf32, #tpu.memory_space<vmem>>, vector<10x100xf32>
    %c0_34 = arith.constant 0 : index
    %c0_35 = arith.constant 0 : index
    %71 = vector.load %arg12[%c0_34, %c0_35] : memref<1x10xf32, #tpu.memory_space<vmem>>, vector<1x10xf32>
    %c0_36 = arith.constant 0 : index
    %c0_37 = arith.constant 0 : index
    %72 = vector.load %arg13[%c0_36, %c0_37] : memref<1x10xf32, #tpu.memory_space<vmem>>, vector<1x10xf32>
    %cst_38 = arith.constant dense<0.000000e+00> : vector<100xf32>
    %73 = vector.multi_reduction <add>, %68, %cst_38 [0] : vector<20x100xf32> to vector<100xf32>
    %74 = vector.shape_cast %73 : vector<100xf32> to vector<1x100xf32>
    %75 = arith.mulf %68, %68 : vector<20x100xf32>
    %cst_39 = arith.constant dense<0.000000e+00> : vector<100xf32>
    %76 = vector.multi_reduction <add>, %75, %cst_39 [0] : vector<20x100xf32> to vector<100xf32>
    %77 = vector.shape_cast %76 : vector<100xf32> to vector<1x100xf32>
    %78 = tpu.concatenate %74, %77 in 0 : vector<1x100xf32>, vector<1x100xf32> -> vector<2x100xf32>
    %cst_40 = arith.constant dense<0.000000e+00> : vector<2x10xf32>
    %79 = tpu.matmul %78, %69, %cst_40 {dimension_numbers = #tpu.dot_dimension_numbers<[1], [0], [0], [1], [0, 0, 1, 1], [], []>} : vector<2x100xf32>, vector<100x10xf32>, vector<2x10xf32> -> vector<2x10xf32>
    %80 = vector.extract_strided_slice %79 {offsets = [0, 0], sizes = [1, 10], strides = [1, 1]} : vector<2x10xf32> to vector<1x10xf32>
    %cst_41 = arith.constant 2.000000e+02 : f32
    %81 = vector.broadcast %cst_41 : f32 to vector<1x10xf32>
    %82 = arith.divf %80, %81 : vector<1x10xf32>
    %83 = vector.extract_strided_slice %79 {offsets = [1, 0], sizes = [1, 10], strides = [1, 1]} : vector<2x10xf32> to vector<1x10xf32>
    %cst_42 = arith.constant 2.000000e+02 : f32
    %84 = vector.broadcast %cst_42 : f32 to vector<1x10xf32>
    %85 = arith.divf %83, %84 : vector<1x10xf32>
    %86 = arith.mulf %82, %82 : vector<1x10xf32>
    %87 = arith.subf %85, %86 : vector<1x10xf32>
    %cst_43 = arith.constant 0.000000e+00 : f32
    %88 = vector.broadcast %cst_43 : f32 to vector<1x10xf32>
    %89 = arith.maximumf %87, %88 : vector<1x10xf32>
    %cst_44 = arith.constant 9.99999974E-6 : f32
    %90 = vector.broadcast %cst_44 : f32 to vector<1x10xf32>
    %91 = arith.addf %89, %90 : vector<1x10xf32>
    %92 = math.rsqrt %91 : vector<1x10xf32>
    %93 = arith.mulf %71, %92 : vector<1x10xf32>
    %94 = arith.mulf %82, %93 : vector<1x10xf32>
    %95 = arith.subf %72, %94 : vector<1x10xf32>
    %96 = tpu.concatenate %93, %95 in 0 : vector<1x10xf32>, vector<1x10xf32> -> vector<2x10xf32>
    %cst_45 = arith.constant dense<0.000000e+00> : vector<2x100xf32>
    %97 = tpu.matmul %96, %70, %cst_45 {dimension_numbers = #tpu.dot_dimension_numbers<[1], [0], [0], [1], [0, 0, 1, 1], [], []>} : vector<2x10xf32>, vector<10x100xf32>, vector<2x100xf32> -> vector<2x100xf32>
    %98 = vector.extract_strided_slice %97 {offsets = [0, 0], sizes = [1, 100], strides = [1, 1]} : vector<2x100xf32> to vector<1x100xf32>
    %99 = vector.broadcast %98 : vector<1x100xf32> to vector<20x100xf32>
    %100 = arith.mulf %68, %99 : vector<20x100xf32>
    %101 = vector.extract_strided_slice %97 {offsets = [1, 0], sizes = [1, 100], strides = [1, 1]} : vector<2x100xf32> to vector<1x100xf32>
    %102 = vector.broadcast %101 : vector<1x100xf32> to vector<20x100xf32>
    %103 = arith.addf %100, %102 : vector<20x100xf32>
    %cst_46 = arith.constant 0.000000e+00 : f32
    %104 = vector.broadcast %cst_46 : f32 to vector<20x100xf32>
    %105 = arith.maximumf %103, %104 : vector<20x100xf32>
    %106 = tpu.iota {dimensions = array<i32: 0>} : vector<20x100xi32>
    %c10_i32 = arith.constant 10 : i32
    %107 = vector.broadcast %c10_i32 : i32 to vector<20x100xi32>
    %108 = arith.cmpi slt, %106, %107 : vector<20x100xi32>
    %c0_47 = arith.constant 0 : index
    %c0_48 = arith.constant 0 : index
    %109 = vector.load %arg14[%c0_47, %c0_48] : memref<1x100xi32, #tpu.memory_space<vmem>>, vector<1x100xi32>
    %c0_49 = arith.constant 0 : index
    %110 = memref.load %arg0[%c0_49] : memref<1xi32, #tpu.memory_space<smem>>
    %111 = vector.broadcast %110 : i32 to vector<1x100xi32>
    %112 = arith.cmpi eq, %109, %111 : vector<1x100xi32>
    %113 = vector.broadcast %112 : vector<1x100xi1> to vector<20x100xi1>
    %114 = arith.andi %108, %113 : vector<20x100xi1>
    %cst_50 = arith.constant 0.000000e+00 : f32
    %115 = vector.broadcast %cst_50 : f32 to vector<20x100xf32>
    %116 = arith.select %114, %115, %105 : vector<20x100xi1>, vector<20x100xf32>
    %cst_51 = arith.constant 0.000000e+00 : f32
    %117 = vector.broadcast %cst_51 : f32 to vector<20x28xf32>
    %118 = tpu.concatenate %116, %117 in 1 : vector<20x100xf32>, vector<20x28xf32> -> vector<20x128xf32>
    %c0_52 = arith.constant 0 : index
    %c0_53 = arith.constant 0 : index
    %119 = vector.load %arg21[%c0_52, %c0_53] : memref<20x128xf32, #tpu.memory_space<vmem>>, vector<20x128xf32>
    tpu.vector_store %arg21[%c0_52, %c0_53], %118 {strides = array<i32>} : memref<20x128xf32, #tpu.memory_space<vmem>>, vector<20x128xf32>,
    %c0_54 = arith.constant 0 : index
    %c0_55 = arith.constant 0 : index
    %120 = vector.load %arg15[%c0_54, %c0_55] : memref<40x20xbf16, #tpu.memory_space<vmem>>, vector<40x20xbf16>
    %121 = arith.truncf %116 : vector<20x100xf32> to vector<20x100xbf16>
    %cst_56 = arith.constant dense<0.000000e+00> : vector<40x100xf32>
    %122 = tpu.matmul %120, %121, %cst_56 {dimension_numbers = #tpu.dot_dimension_numbers<[1], [0], [0], [1], [0, 0, 1, 1], [], []>} : vector<40x20xbf16>, vector<20x100xbf16>, vector<40x100xf32> -> vector<40x100xf32>
    %123 = vector.extract_strided_slice %122 {offsets = [0, 0], sizes = [2, 100], strides = [1, 1]} : vector<40x100xf32> to vector<2x100xf32>
    %124 = vector.extract_strided_slice %122 {offsets = [8, 0], sizes = [2, 100], strides = [1, 1]} : vector<40x100xf32> to vector<2x100xf32>
    %125 = vector.extract_strided_slice %122 {offsets = [16, 0], sizes = [2, 100], strides = [1, 1]} : vector<40x100xf32> to vector<2x100xf32>
    %126 = vector.extract_strided_slice %122 {offsets = [24, 0], sizes = [2, 100], strides = [1, 1]} : vector<40x100xf32> to vector<2x100xf32>
    %127 = vector.extract_strided_slice %122 {offsets = [32, 0], sizes = [2, 100], strides = [1, 1]} : vector<40x100xf32> to vector<2x100xf32>
    %128 = tpu.concatenate %123, %124, %125, %126, %127 in 1 : vector<2x100xf32>, vector<2x100xf32>, vector<2x100xf32>, vector<2x100xf32>, vector<2x100xf32> -> vector<2x500xf32>
    %c1_i32_57 = arith.constant 1 : i32
    %129 = tpu.memref_slice %arg28[%c1_i32_57] : memref<4x!tpu.dma_semaphore, #tpu.memory_space<semaphore_mem>> -> memref<1x!tpu.dma_semaphore, #tpu.memory_space<semaphore_mem>>
    %130 = tpu.memref_squeeze %129 : memref<1x!tpu.dma_semaphore, #tpu.memory_space<semaphore_mem>> -> memref<!tpu.dma_semaphore, #tpu.memory_space<semaphore_mem>>
    tpu.wait_dma2 semaphore(%130 : memref<!tpu.dma_semaphore, #tpu.memory_space<semaphore_mem>>) src(%arg16 : memref<500x256xbf16, #tpu.memory_space<any>>) dst(%arg25 : memref<500x256xbf16, #tpu.memory_space<vmem>>)
    %c0_58 = arith.constant 0 : index
    %c0_59 = arith.constant 0 : index
    %131 = vector.load %arg25[%c0_58, %c0_59] : memref<500x256xbf16, #tpu.memory_space<vmem>>, vector<500x256xbf16>
    %132 = arith.truncf %128 : vector<2x500xf32> to vector<2x500xbf16>
    %cst_60 = arith.constant dense<0.000000e+00> : vector<2x256xf32>
    %133 = tpu.matmul %132, %131, %cst_60 {dimension_numbers = #tpu.dot_dimension_numbers<[1], [0], [0], [1], [0, 0, 1, 1], [], []>} : vector<2x500xbf16>, vector<500x256xbf16>, vector<2x256xf32> -> vector<2x256xf32>
    %c0_61 = arith.constant 0 : index
    %c0_62 = arith.constant 0 : index
    %134 = vector.load %arg22[%c0_61, %c0_62] : memref<2x256xf32, #tpu.memory_space<vmem>>, vector<2x256xf32>
    tpu.vector_store %arg22[%c0_61, %c0_62], %133 {strides = array<i32>} : memref<2x256xf32, #tpu.memory_space<vmem>>, vector<2x256xf32>,
    %c2_i32_63 = arith.constant 2 : i32
    %135 = tpu.memref_slice %arg28[%c2_i32_63] : memref<4x!tpu.dma_semaphore, #tpu.memory_space<semaphore_mem>> -> memref<1x!tpu.dma_semaphore, #tpu.memory_space<semaphore_mem>>
    %136 = tpu.memref_squeeze %135 : memref<1x!tpu.dma_semaphore, #tpu.memory_space<semaphore_mem>> -> memref<!tpu.dma_semaphore, #tpu.memory_space<semaphore_mem>>
    tpu.wait_dma2 semaphore(%136 : memref<!tpu.dma_semaphore, #tpu.memory_space<semaphore_mem>>) src(%arg17 : memref<256x50xbf16, #tpu.memory_space<any>>) dst(%arg26 : memref<256x50xbf16, #tpu.memory_space<vmem>>)
    %c0_64 = arith.constant 0 : index
    %c0_65 = arith.constant 0 : index
    %137 = vector.load %arg26[%c0_64, %c0_65] : memref<256x50xbf16, #tpu.memory_space<vmem>>, vector<256x50xbf16>
    %138 = arith.truncf %133 : vector<2x256xf32> to vector<2x256xbf16>
    %cst_66 = arith.constant dense<0.000000e+00> : vector<2x50xf32>
    %139 = tpu.matmul %138, %137, %cst_66 {dimension_numbers = #tpu.dot_dimension_numbers<[1], [0], [0], [1], [0, 0, 1, 1], [], []>} : vector<2x256xbf16>, vector<256x50xbf16>, vector<2x50xf32> -> vector<2x50xf32>
    %c0_67 = arith.constant 0 : index
    %c0_68 = arith.constant 0 : index
    %140 = vector.load %arg18[%c0_67, %c0_68] : memref<1x50xf32, #tpu.memory_space<vmem>>, vector<1x50xf32>
    %141 = vector.broadcast %140 : vector<1x50xf32> to vector<2x50xf32>
    %142 = arith.addf %139, %141 : vector<2x50xf32>
    %cst_69 = arith.constant 0.000000e+00 : f32
    %143 = vector.broadcast %cst_69 : f32 to vector<2x50xf32>
    %144 = arith.maximumf %142, %143 : vector<2x50xf32>
    %c3_i32_70 = arith.constant 3 : i32
    %145 = tpu.memref_slice %arg28[%c3_i32_70] : memref<4x!tpu.dma_semaphore, #tpu.memory_space<semaphore_mem>> -> memref<1x!tpu.dma_semaphore, #tpu.memory_space<semaphore_mem>>
    %146 = tpu.memref_squeeze %145 : memref<1x!tpu.dma_semaphore, #tpu.memory_space<semaphore_mem>> -> memref<!tpu.dma_semaphore, #tpu.memory_space<semaphore_mem>>
    tpu.wait_dma2 semaphore(%146 : memref<!tpu.dma_semaphore, #tpu.memory_space<semaphore_mem>>) src(%arg19 : memref<50x128xbf16, #tpu.memory_space<any>>) dst(%arg27 : memref<50x128xbf16, #tpu.memory_space<vmem>>)
    %c0_71 = arith.constant 0 : index
    %c0_72 = arith.constant 0 : index
    %147 = vector.load %arg27[%c0_71, %c0_72] : memref<50x128xbf16, #tpu.memory_space<vmem>>, vector<50x128xbf16>
    %148 = arith.truncf %144 : vector<2x50xf32> to vector<2x50xbf16>
    %cst_73 = arith.constant dense<0.000000e+00> : vector<2x128xf32>
    %149 = tpu.matmul %148, %147, %cst_73 {dimension_numbers = #tpu.dot_dimension_numbers<[1], [0], [0], [1], [0, 0, 1, 1], [], []>} : vector<2x50xbf16>, vector<50x128xbf16>, vector<2x128xf32> -> vector<2x128xf32>
    %c0_74 = arith.constant 0 : index
    %c0_75 = arith.constant 0 : index
    %150 = vector.load %arg20[%c0_74, %c0_75] : memref<1x128xf32, #tpu.memory_space<vmem>>, vector<1x128xf32>
    %151 = vector.broadcast %150 : vector<1x128xf32> to vector<2x128xf32>
    %152 = arith.addf %149, %151 : vector<2x128xf32>
    %c0_76 = arith.constant 0 : index
    %c0_77 = arith.constant 0 : index
    %153 = vector.load %arg23[%c0_76, %c0_77] : memref<2x128xf32, #tpu.memory_space<vmem>>, vector<2x128xf32>
    tpu.vector_store %arg23[%c0_76, %c0_77], %152 {strides = array<i32>} : memref<2x128xf32, #tpu.memory_space<vmem>>, vector<2x128xf32>,
    return
  }
}

</mosaic_0001>

<bundles_post_ra>
// kernel: bayes_auto_forward.1
= control target key start
LH: loop header
LB: loop body
LE: loop exit
PB: predicated region body
PF: predicated region fallthrough
CT: control target
= control target key end

     0   :  { %s6404_s0 = inlined_call_operand.<no memory space> [shape: s32[1], index: 0, kind: input, shape index: {}]   ;;  %s6405_s1 = inlined_call_operand.vmem [shape: f32[56,28], index: 1, kind: input, shape index: {}]   ;;  %s6406_s2 = inlined_call_operand.vmem [shape: bf16[160,56], index: 2, kind: input, shape index: {}]   ;;  %s6407_s3 = inlined_call_operand.vmem [shape: bf16[112,340], index: 3, kind: input, shape index: {}]   ;;  %s6408_s4 = inlined_call_operand.vmem [shape: f32[340,20], index: 4, kind: input, shape index: {}]   ;;  %s6409_s5 = inlined_call_operand.vmem [shape: f32[20,340], index: 5, kind: input, shape index: {}]   ;;  %s6410_s6 = inlined_call_operand.vmem [shape: f32[1,20], index: 6, kind: input, shape index: {}]   ;;  %s6411_s7 = inlined_call_operand.vmem [shape: f32[1,20], index: 7, kind: input, shape index: {}]   ;;  %s6412_s8 = inlined_call_operand.vmem [shape: bf16[72,34], index: 8, kind: input, shape index: {}]   ;;  %s6413_s9 = inlined_call_operand.vmem [shape: bf16[1020,100], index: 9, kind: input, shape index: {}]   ;;  %s6414_s10 = inlined_call_operand.vmem [shape: f32[100,10], index: 10, kind: input, shape index: {}]   ;;  %s6415_s11 = inlined_call_operand.vmem [shape: f32[10,100], index: 11, kind: input, shape index: {}]   ;;  %s6416_s12 = inlined_call_operand.vmem [shape: f32[1,10], index: 12, kind: input, shape index: {}]   ;;  %s6417_s13 = inlined_call_operand.vmem [shape: f32[1,10], index: 13, kind: input, shape index: {}]   ;;  %s6418_s14 = inlined_call_operand.vmem [shape: s32[1,100], index: 14, kind: input, shape index: {}]   ;;  %s6419_s15 = inlined_call_operand.vmem [shape: bf16[40,20], index: 15, kind: input, shape index: {}]   ;;  %s6420_s16 = inlined_call_operand.vmem [shape: bf16[500,256], index: 16, kind: input, shape index: {}]   ;;  %s6421_s17 = inlined_call_operand.vmem [shape: bf16[256,50], index: 17, kind: input, shape index: {}]   ;;  %s6422_s18 = inlined_call_operand.vmem [shape: f32[1,50], index: 18, kind: input, shape index: {}]   ;;  %s6423_s19 = inlined_call_operand.vmem [shape: bf16[50,128], index: 19, kind: input, shape index: {}]   ;;  %s6424_s20 = inlined_call_operand.vmem [shape: f32[1,128], index: 20, kind: input, shape index: {}]   ;;  %s6425_s21 = inlined_call_operand.vmem [shape: f32[20,128], index: 21, kind: output, shape index: {0}]   ;;  %s6426_s22 = inlined_call_operand.hbm [shape: f32[2,256], index: 22, kind: output, shape index: {1}]   ;;  %s6427_s23 = inlined_call_operand.hbm [shape: f32[2,128], index: 23, kind: output, shape index: {2}]  }
   0x1   :  { %6433 = sst [smem:[#allocation22_spill]] %s6404_s0 }
   0x2   :  { %6434 = sst [smem:[#allocation23_spill]] %s6405_s1 }
   0x3   :  { %6435 = sst [smem:[#allocation24_spill]] %s6406_s2 }
   0x4   :  { %6436 = sst [smem:[#allocation25_spill]] %s6407_s3 }
   0x5   :  { %6437 = sst [smem:[#allocation26_spill]] %s6408_s4 }
   0x6   :  { %6438 = sst [smem:[#allocation27_spill]] %s6409_s5 }
   0x7   :  { %6439 = sst [smem:[#allocation28_spill]] %s6410_s6 }
   0x8   :  { %6440 = sst [smem:[#allocation29_spill]] %s6411_s7 }
   0x9   :  { %30 = vsyncpa [#allocation9], 0 }
   0xa   :  { %31 = vsyncpa [#allocation11], 0  ;;  %v100_v0 = vld [vmem:[%s6413_s9] sm:$0xff]  ;;  %v102_v1 = vld [vmem:[%s6413_s9 + $0x8] sm:$0xff] }
   0xb   :  { %101 = vst [vmem:[#allocation2] sm:$0xff] %v100_v0  ;;  %103 = vst [vmem:[#allocation2 + $0x8] sm:$0xff] %v102_v1  ;;  %v104_v2 = vld [vmem:[%s6413_s9 + $0x10] sm:$0xff]  ;;  %v106_v3 = vld [vmem:[%s6413_s9 + $0x18] sm:$0xff] }
   0xc   :  { %v108_v4 = vld [vmem:[%s6413_s9 + $0x20] sm:$0xff]  ;;  %105 = vst [vmem:[#allocation2 + $0x10] sm:$0xff] %v104_v2  ;;  %107 = vst [vmem:[#allocation2 + $0x18] sm:$0xff] %v106_v3  ;;  %v110_v5 = vld [vmem:[%s6413_s9 + $0x28] sm:$0xff] }
   0xd   :  { %109 = vst [vmem:[#allocation2 + $0x20] sm:$0xff] %v108_v4  ;;  %v112_v6 = vld [vmem:[%s6413_s9 + $0x30] sm:$0xff]  ;;  %v114_v7 = vld [vmem:[%s6413_s9 + $0x38] sm:$0xff]  ;;  %111 = vst [vmem:[#allocation2 + $0x28] sm:$0xff] %v110_v5 }
   0xe   :  { %113 = vst [vmem:[#allocation2 + $0x30] sm:$0xff] %v112_v6  ;;  %115 = vst [vmem:[#allocation2 + $0x38] sm:$0xff] %v114_v7  ;;  %v116_v8 = vld [vmem:[%s6413_s9 + $0x40] sm:$0xff]  ;;  %v118_v9 = vld [vmem:[%s6413_s9 + $0x48] sm:$0xff] }
   0xf   :  { %v120_v10 = vld [vmem:[%s6413_s9 + $0x50] sm:$0xff]  ;;  %117 = vst [vmem:[#allocation2 + $0x40] sm:$0xff] %v116_v8  ;;  %119 = vst [vmem:[#allocation2 + $0x48] sm:$0xff] %v118_v9  ;;  %v122_v11 = vld [vmem:[%s6413_s9 + $0x58] sm:$0xff] }
  0x10   :  { %121 = vst [vmem:[#allocation2 + $0x50] sm:$0xff] %v120_v10  ;;  %v124_v12 = vld [vmem:[%s6413_s9 + $0x60] sm:$0xff]  ;;  %v126_v13 = vld [vmem:[%s6413_s9 + $0x68] sm:$0xff]  ;;  %123 = vst [vmem:[#allocation2 + $0x58] sm:$0xff] %v122_v11 }
  0x11   :  { %125 = vst [vmem:[#allocation2 + $0x60] sm:$0xff] %v124_v12  ;;  %127 = vst [vmem:[#allocation2 + $0x68] sm:$0xff] %v126_v13  ;;  %v128_v14 = vld [vmem:[%s6413_s9 + $0x70] sm:$0xff]  ;;  %v130_v15 = vld [vmem:[%s6413_s9 + $0x78] sm:$0xff] }
  0x12   :  { %v132_v16 = vld [vmem:[%s6413_s9 + $0x80] sm:$0xff]  ;;  %129 = vst [vmem:[#allocation2 + $0x70] sm:$0xff] %v128_v14  ;;  %131 = vst [vmem:[#allocation2 + $0x78] sm:$0xff] %v130_v15  ;;  %v134_v17 = vld [vmem:[%s6413_s9 + $0x88] sm:$0xff] }
  0x13   :  { %133 = vst [vmem:[#allocation2 + $0x80] sm:$0xff] %v132_v16  ;;  %v136_v18 = vld [vmem:[%s6413_s9 + $0x90] sm:$0xff]  ;;  %v138_v19 = vld [vmem:[%s6413_s9 + $0x98] sm:$0xff]  ;;  %135 = vst [vmem:[#allocation2 + $0x88] sm:$0xff] %v134_v17 }
  0x14   :  { %137 = vst [vmem:[#allocation2 + $0x90] sm:$0xff] %v136_v18  ;;  %139 = vst [vmem:[#allocation2 + $0x98] sm:$0xff] %v138_v19  ;;  %v140_v20 = vld [vmem:[%s6413_s9 + $0xa0] sm:$0xff]  ;;  %v142_v21 = vld [vmem:[%s6413_s9 + $0xa8] sm:$0xff] }
  0x15   :  { %v144_v22 = vld [vmem:[%s6413_s9 + $0xb0] sm:$0xff]  ;;  %141 = vst [vmem:[#allocation2 + $0xa0] sm:$0xff] %v140_v20  ;;  %143 = vst [vmem:[#allocation2 + $0xa8] sm:$0xff] %v142_v21  ;;  %v146_v23 = vld [vmem:[%s6413_s9 + $0xb8] sm:$0xff] }
  0x16   :  { %145 = vst [vmem:[#allocation2 + $0xb0] sm:$0xff] %v144_v22  ;;  %v148_v24 = vld [vmem:[%s6413_s9 + $0xc0] sm:$0xff]  ;;  %v150_v25 = vld [vmem:[%s6413_s9 + $0xc8] sm:$0xff]  ;;  %147 = vst [vmem:[#allocation2 + $0xb8] sm:$0xff] %v146_v23 }
  0x17   :  { %149 = vst [vmem:[#allocation2 + $0xc0] sm:$0xff] %v148_v24  ;;  %151 = vst [vmem:[#allocation2 + $0xc8] sm:$0xff] %v150_v25  ;;  %v152_v26 = vld [vmem:[%s6413_s9 + $0xd0] sm:$0xff]  ;;  %v154_v27 = vld [vmem:[%s6413_s9 + $0xd8] sm:$0xff] }
  0x18   :  { %v156_v28 = vld [vmem:[%s6413_s9 + $0xe0] sm:$0xff]  ;;  %153 = vst [vmem:[#allocation2 + $0xd0] sm:$0xff] %v152_v26  ;;  %155 = vst [vmem:[#allocation2 + $0xd8] sm:$0xff] %v154_v27  ;;  %v158_v29 = vld [vmem:[%s6413_s9 + $0xe8] sm:$0xff] }
  0x19   :  { %157 = vst [vmem:[#allocation2 + $0xe0] sm:$0xff] %v156_v28  ;;  %v160_v30 = vld [vmem:[%s6413_s9 + $0xf0] sm:$0xff]  ;;  %v162_v31 = vld [vmem:[%s6413_s9 + $0xf8] sm:$0xff]  ;;  %159 = vst [vmem:[#allocation2 + $0xe8] sm:$0xff] %v158_v29 }
  0x1a   :  { %161 = vst [vmem:[#allocation2 + $0xf0] sm:$0xff] %v160_v30  ;;  %163 = vst [vmem:[#allocation2 + $0xf8] sm:$0xff] %v162_v31  ;;  %v164_v32 = vld [vmem:[%s6413_s9 + $0x100] sm:$0xff]  ;;  %v166_v33 = vld [vmem:[%s6413_s9 + $0x108] sm:$0xff] }
  0x1b   :  { %v168_v34 = vld [vmem:[%s6413_s9 + $0x110] sm:$0xff]  ;;  %165 = vst [vmem:[#allocation2 + $0x100] sm:$0xff] %v164_v32  ;;  %167 = vst [vmem:[#allocation2 + $0x108] sm:$0xff] %v166_v33  ;;  %v170_v35 = vld [vmem:[%s6413_s9 + $0x118] sm:$0xff] }
  0x1c   :  { %169 = vst [vmem:[#allocation2 + $0x110] sm:$0xff] %v168_v34  ;;  %v172_v36 = vld [vmem:[%s6413_s9 + $0x120] sm:$0xff]  ;;  %v174_v37 = vld [vmem:[%s6413_s9 + $0x128] sm:$0xff]  ;;  %171 = vst [vmem:[#allocation2 + $0x118] sm:$0xff] %v170_v35 }
  0x1d   :  { %173 = vst [vmem:[#allocation2 + $0x120] sm:$0xff] %v172_v36  ;;  %175 = vst [vmem:[#allocation2 + $0x128] sm:$0xff] %v174_v37  ;;  %v176_v38 = vld [vmem:[%s6413_s9 + $0x130] sm:$0xff]  ;;  %v178_v39 = vld [vmem:[%s6413_s9 + $0x138] sm:$0xff] }
  0x1e   :  { %v180_v40 = vld [vmem:[%s6413_s9 + $0x140] sm:$0xff]  ;;  %177 = vst [vmem:[#allocation2 + $0x130] sm:$0xff] %v176_v38  ;;  %179 = vst [vmem:[#allocation2 + $0x138] sm:$0xff] %v178_v39  ;;  %v182_v41 = vld [vmem:[%s6413_s9 + $0x148] sm:$0xff] }
  0x1f   :  { %181 = vst [vmem:[#allocation2 + $0x140] sm:$0xff] %v180_v40  ;;  %v184_v42 = vld [vmem:[%s6413_s9 + $0x150] sm:$0xff]  ;;  %v186_v43 = vld [vmem:[%s6413_s9 + $0x158] sm:$0xff]  ;;  %183 = vst [vmem:[#allocation2 + $0x148] sm:$0xff] %v182_v41 }
  0x20   :  { %185 = vst [vmem:[#allocation2 + $0x150] sm:$0xff] %v184_v42  ;;  %187 = vst [vmem:[#allocation2 + $0x158] sm:$0xff] %v186_v43  ;;  %v188_v44 = vld [vmem:[%s6413_s9 + $0x160] sm:$0xff]  ;;  %v190_v45 = vld [vmem:[%s6413_s9 + $0x168] sm:$0xff] }
  0x21   :  { %v192_v46 = vld [vmem:[%s6413_s9 + $0x170] sm:$0xff]  ;;  %189 = vst [vmem:[#allocation2 + $0x160] sm:$0xff] %v188_v44  ;;  %191 = vst [vmem:[#allocation2 + $0x168] sm:$0xff] %v190_v45  ;;  %v194_v47 = vld [vmem:[%s6413_s9 + $0x178] sm:$0xff] }
  0x22   :  { %193 = vst [vmem:[#allocation2 + $0x170] sm:$0xff] %v192_v46  ;;  %v196_v48 = vld [vmem:[%s6413_s9 + $0x180] sm:$0xff]  ;;  %v198_v49 = vld [vmem:[%s6413_s9 + $0x188] sm:$0xff]  ;;  %195 = vst [vmem:[#allocation2 + $0x178] sm:$0xff] %v194_v47 }
  0x23   :  { %197 = vst [vmem:[#allocation2 + $0x180] sm:$0xff] %v196_v48  ;;  %199 = vst [vmem:[#allocation2 + $0x188] sm:$0xff] %v198_v49  ;;  %v200_v50 = vld [vmem:[%s6413_s9 + $0x190] sm:$0xff]  ;;  %v202_v51 = vld [vmem:[%s6413_s9 + $0x198] sm:$0xff] }
  0x24   :  { %v204_v52 = vld [vmem:[%s6413_s9 + $0x1a0] sm:$0xff]  ;;  %201 = vst [vmem:[#allocation2 + $0x190] sm:$0xff] %v200_v50  ;;  %203 = vst [vmem:[#allocation2 + $0x198] sm:$0xff] %v202_v51  ;;  %v206_v53 = vld [vmem:[%s6413_s9 + $0x1a8] sm:$0xff] }
  0x25   :  { %205 = vst [vmem:[#allocation2 + $0x1a0] sm:$0xff] %v204_v52  ;;  %v208_v54 = vld [vmem:[%s6413_s9 + $0x1b0] sm:$0xff]  ;;  %v210_v55 = vld [vmem:[%s6413_s9 + $0x1b8] sm:$0xff]  ;;  %207 = vst [vmem:[#allocation2 + $0x1a8] sm:$0xff] %v206_v53 }
  0x26   :  { %209 = vst [vmem:[#allocation2 + $0x1b0] sm:$0xff] %v208_v54  ;;  %211 = vst [vmem:[#allocation2 + $0x1b8] sm:$0xff] %v210_v55  ;;  %v212_v56 = vld [vmem:[%s6413_s9 + $0x1c0] sm:$0xff]  ;;  %v214_v57 = vld [vmem:[%s6413_s9 + $0x1c8] sm:$0xff] }
  0x27   :  { %v216_v58 = vld [vmem:[%s6413_s9 + $0x1d0] sm:$0xff]  ;;  %213 = vst [vmem:[#allocation2 + $0x1c0] sm:$0xff] %v212_v56  ;;  %215 = vst [vmem:[#allocation2 + $0x1c8] sm:$0xff] %v214_v57  ;;  %v218_v59 = vld [vmem:[%s6413_s9 + $0x1d8] sm:$0xff] }
  0x28   :  { %217 = vst [vmem:[#allocation2 + $0x1d0] sm:$0xff] %v216_v58  ;;  %v220_v60 = vld [vmem:[%s6413_s9 + $0x1e0] sm:$0xff]  ;;  %v222_v61 = vld [vmem:[%s6413_s9 + $0x1e8] sm:$0xff]  ;;  %219 = vst [vmem:[#allocation2 + $0x1d8] sm:$0xff] %v218_v59 }
  0x29   :  { %221 = vst [vmem:[#allocation2 + $0x1e0] sm:$0xff] %v220_v60  ;;  %223 = vst [vmem:[#allocation2 + $0x1e8] sm:$0xff] %v222_v61  ;;  %v224_v62 = vld [vmem:[%s6413_s9 + $0x1f0] sm:$0xff]  ;;  %v226_v63 = vld [vmem:[%s6413_s9 + $0x1f8] sm:$0xff] }
  0x2a   :  { %225 = vst [vmem:[#allocation2 + $0x1f0] sm:$0xff] %v224_v62  ;;  %227 = vst [vmem:[#allocation2 + $0x1f8] sm:$0xff] %v226_v63 }
  0x2b   :  { %235 = vsyncadd [#allocation6], 8192  ;;  %v270_v0 = vld [vmem:[%s6420_s16] sm:$0xff]  ;;  %v272_v1 = vld [vmem:[%s6420_s16 + $0x8] sm:$0xff] }
  0x2c   :  { %271 = vst [vmem:[#allocation3 + $0xb0] sm:$0xff] %v270_v0  ;;  %273 = vst [vmem:[#allocation3 + $0x1b0] sm:$0xff] %v272_v1  ;;  %v274_v2 = vld [vmem:[%s6420_s16 + $0x10] sm:$0xff]  ;;  %v276_v3 = vld [vmem:[%s6420_s16 + $0x18] sm:$0xff] }
  0x2d   :  { %v278_v4 = vld [vmem:[%s6420_s16 + $0x20] sm:$0xff]  ;;  %275 = vst [vmem:[#allocation3 + $0xd8] sm:$0xff] %v274_v2  ;;  %277 = vst [vmem:[#allocation3 + $0x18] sm:$0xff] %v276_v3  ;;  %v280_v5 = vld [vmem:[%s6420_s16 + $0x28] sm:$0xff] }
  0x2e   :  { %279 = vst [vmem:[#allocation3 + $0x50] sm:$0xff] %v278_v4  ;;  %v282_v6 = vld [vmem:[%s6420_s16 + $0x30] sm:$0xff]  ;;  %v284_v7 = vld [vmem:[%s6420_s16 + $0x38] sm:$0xff]  ;;  %281 = vst [vmem:[#allocation3 + $0x168] sm:$0xff] %v280_v5 }
  0x2f   :  { %283 = vst [vmem:[#allocation3 + $0x130] sm:$0xff] %v282_v6  ;;  %285 = vst [vmem:[#allocation3 + $0x48] sm:$0xff] %v284_v7  ;;  %v286_v8 = vld [vmem:[%s6420_s16 + $0x40] sm:$0xff]  ;;  %v288_v9 = vld [vmem:[%s6420_s16 + $0x48] sm:$0xff] }
  0x30   :  { %v290_v10 = vld [vmem:[%s6420_s16 + $0x50] sm:$0xff]  ;;  %287 = vst [vmem:[#allocation3 + $0x180] sm:$0xff] %v286_v8  ;;  %289 = vst [vmem:[#allocation3 + $0x110] sm:$0xff] %v288_v9  ;;  %v292_v11 = vld [vmem:[%s6420_s16 + $0x58] sm:$0xff] }
  0x31   :  { %291 = vst [vmem:[#allocation3 + $0x118] sm:$0xff] %v290_v10  ;;  %v294_v12 = vld [vmem:[%s6420_s16 + $0x60] sm:$0xff]  ;;  %v296_v13 = vld [vmem:[%s6420_s16 + $0x68] sm:$0xff]  ;;  %293 = vst [vmem:[#allocation3 + $0x98] sm:$0xff] %v292_v11 }
  0x32   :  { %295 = vst [vmem:[#allocation3 + $0x120] sm:$0xff] %v294_v12  ;;  %297 = vst [vmem:[#allocation3 + $0x150] sm:$0xff] %v296_v13  ;;  %v298_v14 = vld [vmem:[%s6420_s16 + $0x70] sm:$0xff]  ;;  %v300_v15 = vld [vmem:[%s6420_s16 + $0x78] sm:$0xff] }
  0x33   :  { %v302_v16 = vld [vmem:[%s6420_s16 + $0x80] sm:$0xff]  ;;  %299 = vst [vmem:[#allocation3 + $0x108] sm:$0xff] %v298_v14  ;;  %301 = vst [vmem:[#allocation3 + $0x60] sm:$0xff] %v300_v15  ;;  %v304_v17 = vld [vmem:[%s6420_s16 + $0x88] sm:$0xff] }
  0x34   :  { %303 = vst [vmem:[#allocation3 + $0xe0] sm:$0xff] %v302_v16  ;;  %v306_v18 = vld [vmem:[%s6420_s16 + $0x90] sm:$0xff]  ;;  %v308_v19 = vld [vmem:[%s6420_s16 + $0x98] sm:$0xff]  ;;  %305 = vst [vmem:[#allocation3 + $0x188] sm:$0xff] %v304_v17 }
  0x35   :  { %307 = vst [vmem:[#allocation3 + $0x138] sm:$0xff] %v306_v18  ;;  %309 = vst [vmem:[#allocation3 + $0x140] sm:$0xff] %v308_v19  ;;  %v310_v20 = vld [vmem:[%s6420_s16 + $0xa0] sm:$0xff]  ;;  %v312_v21 = vld [vmem:[%s6420_s16 + $0xa8] sm:$0xff] }
  0x36   :  { %v314_v22 = vld [vmem:[%s6420_s16 + $0xb0] sm:$0xff]  ;;  %311 = vst [vmem:[#allocation3 + $0x80] sm:$0xff] %v310_v20  ;;  %313 = vst [vmem:[#allocation3 + $0x1a8] sm:$0xff] %v312_v21  ;;  %v316_v23 = vld [vmem:[%s6420_s16 + $0xb8] sm:$0xff] }
  0x37   :  { %315 = vst [vmem:[#allocation3 + $0x1b8] sm:$0xff] %v314_v22  ;;  %v318_v24 = vld [vmem:[%s6420_s16 + $0xc0] sm:$0xff]  ;;  %v320_v25 = vld [vmem:[%s6420_s16 + $0xc8] sm:$0xff]  ;;  %317 = vst [vmem:[#allocation3 + $0x28] sm:$0xff] %v316_v23 }
  0x38   :  { %319 = vst [vmem:[#allocation3 + $0x1e8] sm:$0xff] %v318_v24  ;;  %321 = vst [vmem:[#allocation3 + $0xf8] sm:$0xff] %v320_v25  ;;  %v322_v26 = vld [vmem:[%s6420_s16 + $0xd0] sm:$0xff]  ;;  %v324_v27 = vld [vmem:[%s6420_s16 + $0xd8] sm:$0xff] }
  0x39   :  { %v326_v28 = vld [vmem:[%s6420_s16 + $0xe0] sm:$0xff]  ;;  %323 = vst [vmem:[#allocation3 + $0x160] sm:$0xff] %v322_v26  ;;  %325 = vst [vmem:[#allocation3 + $0x30] sm:$0xff] %v324_v27  ;;  %v328_v29 = vld [vmem:[%s6420_s16 + $0xe8] sm:$0xff] }
  0x3a   :  { %327 = vst [vmem:[#allocation3 + $0x1e0] sm:$0xff] %v326_v28  ;;  %v330_v30 = vld [vmem:[%s6420_s16 + $0xf0] sm:$0xff]  ;;  %v332_v31 = vld [vmem:[%s6420_s16 + $0xf8] sm:$0xff]  ;;  %329 = vst [vmem:[#allocation3] sm:$0xff] %v328_v29 }
  0x3b   :  { %331 = vst [vmem:[#allocation3 + $0xf0] sm:$0xff] %v330_v30  ;;  %333 = vst [vmem:[#allocation3 + $0x8] sm:$0xff] %v332_v31  ;;  %v334_v32 = vld [vmem:[%s6420_s16 + $0x100] sm:$0xff]  ;;  %v336_v33 = vld [vmem:[%s6420_s16 + $0x108] sm:$0xff] }
  0x3c   :  { %v338_v34 = vld [vmem:[%s6420_s16 + $0x110] sm:$0xff]  ;;  %335 = vst [vmem:[#allocation3 + $0x148] sm:$0xff] %v334_v32  ;;  %337 = vst [vmem:[#allocation3 + $0x1d0] sm:$0xff] %v336_v33  ;;  %v340_v35 = vld [vmem:[%s6420_s16 + $0x118] sm:$0xff] }
  0x3d   :  { %339 = vst [vmem:[#allocation3 + $0x100] sm:$0xff] %v338_v34  ;;  %v342_v36 = vld [vmem:[%s6420_s16 + $0x120] sm:$0xff]  ;;  %v344_v37 = vld [vmem:[%s6420_s16 + $0x128] sm:$0xff]  ;;  %341 = vst [vmem:[#allocation3 + $0xc8] sm:$0xff] %v340_v35 }
  0x3e   :  { %343 = vst [vmem:[#allocation3 + $0x40] sm:$0xff] %v342_v36  ;;  %345 = vst [vmem:[#allocation3 + $0xa8] sm:$0xff] %v344_v37  ;;  %v346_v38 = vld [vmem:[%s6420_s16 + $0x130] sm:$0xff]  ;;  %v348_v39 = vld [vmem:[%s6420_s16 + $0x138] sm:$0xff] }
  0x3f   :  { %v350_v40 = vld [vmem:[%s6420_s16 + $0x140] sm:$0xff]  ;;  %347 = vst [vmem:[#allocation3 + $0x1f0] sm:$0xff] %v346_v38  ;;  %349 = vst [vmem:[#allocation3 + $0x198] sm:$0xff] %v348_v39  ;;  %v352_v41 = vld [vmem:[%s6420_s16 + $0x148] sm:$0xff] }
  0x40   :  { %351 = vst [vmem:[#allocation3 + $0xc0] sm:$0xff] %v350_v40  ;;  %v354_v42 = vld [vmem:[%s6420_s16 + $0x150] sm:$0xff]  ;;  %v356_v43 = vld [vmem:[%s6420_s16 + $0x158] sm:$0xff]  ;;  %353 = vst [vmem:[#allocation3 + $0x20] sm:$0xff] %v352_v41 }
  0x41   :  { %355 = vst [vmem:[#allocation3 + $0x178] sm:$0xff] %v354_v42  ;;  %357 = vst [vmem:[#allocation3 + $0x1c8] sm:$0xff] %v356_v43  ;;  %v358_v44 = vld [vmem:[%s6420_s16 + $0x160] sm:$0xff]  ;;  %v360_v45 = vld [vmem:[%s6420_s16 + $0x168] sm:$0xff] }
  0x42   :  { %v362_v46 = vld [vmem:[%s6420_s16 + $0x170] sm:$0xff]  ;;  %359 = vst [vmem:[#allocation3 + $0x10] sm:$0xff] %v358_v44  ;;  %361 = vst [vmem:[#allocation3 + $0x70] sm:$0xff] %v360_v45  ;;  %v364_v47 = vld [vmem:[%s6420_s16 + $0x178] sm:$0xff] }
  0x43   :  { %363 = vst [vmem:[#allocation3 + $0x158] sm:$0xff] %v362_v46  ;;  %v366_v48 = vld [vmem:[%s6420_s16 + $0x180] sm:$0xff]  ;;  %v368_v49 = vld [vmem:[%s6420_s16 + $0x188] sm:$0xff]  ;;  %365 = vst [vmem:[#allocation3 + $0xd0] sm:$0xff] %v364_v47 }
  0x44   :  { %367 = vst [vmem:[#allocation3 + $0x78] sm:$0xff] %v366_v48  ;;  %369 = vst [vmem:[#allocation3 + $0x1a0] sm:$0xff] %v368_v49  ;;  %v370_v50 = vld [vmem:[%s6420_s16 + $0x190] sm:$0xff]  ;;  %v372_v51 = vld [vmem:[%s6420_s16 + $0x198] sm:$0xff] }
  0x45   :  { %v374_v52 = vld [vmem:[%s6420_s16 + $0x1a0] sm:$0xff]  ;;  %371 = vst [vmem:[#allocation3 + $0x1c0] sm:$0xff] %v370_v50  ;;  %373 = vst [vmem:[#allocation3 + $0xb8] sm:$0xff] %v372_v51  ;;  %v376_v53 = vld [vmem:[%s6420_s16 + $0x1a8] sm:$0xff] }
  0x46   :  { %375 = vst [vmem:[#allocation3 + $0x170] sm:$0xff] %v374_v52  ;;  %v378_v54 = vld [vmem:[%s6420_s16 + $0x1b0] sm:$0xff]  ;;  %v380_v55 = vld [vmem:[%s6420_s16 + $0x1b8] sm:$0xff]  ;;  %377 = vst [vmem:[#allocation3 + $0x38] sm:$0xff] %v376_v53 }
  0x47   :  { %379 = vst [vmem:[#allocation3 + $0x88] sm:$0xff] %v378_v54  ;;  %381 = vst [vmem:[#allocation3 + $0x190] sm:$0xff] %v380_v55  ;;  %v382_v56 = vld [vmem:[%s6420_s16 + $0x1c0] sm:$0xff]  ;;  %v384_v57 = vld [vmem:[%s6420_s16 + $0x1c8] sm:$0xff] }
  0x48   :  { %v386_v58 = vld [vmem:[%s6420_s16 + $0x1d0] sm:$0xff]  ;;  %383 = vst [vmem:[#allocation3 + $0x58] sm:$0xff] %v382_v56  ;;  %385 = vst [vmem:[#allocation3 + $0xa0] sm:$0xff] %v384_v57  ;;  %v388_v59 = vld [vmem:[%s6420_s16 + $0x1d8] sm:$0xff] }
  0x49   :  { %387 = vst [vmem:[#allocation3 + $0xe8] sm:$0xff] %v386_v58  ;;  %v390_v60 = vld [vmem:[%s6420_s16 + $0x1e0] sm:$0xff]  ;;  %v392_v61 = vld [vmem:[%s6420_s16 + $0x1e8] sm:$0xff]  ;;  %389 = vst [vmem:[#allocation3 + $0x68] sm:$0xff] %v388_v59 }
  0x4a   :  { %391 = vst [vmem:[#allocation3 + $0x128] sm:$0xff] %v390_v60  ;;  %393 = vst [vmem:[#allocation3 + $0x90] sm:$0xff] %v392_v61  ;;  %v394_v62 = vld [vmem:[%s6420_s16 + $0x1f0] sm:$0xff] }
  0x4b   :  { %395 = vst [vmem:[#allocation3 + $0x1d8] sm:$0xff] %v394_v62 }
  0x4c   :  { %403 = vsyncadd [#allocation6 + $0x1], 8064  ;;  %v438_v63 = vld [vmem:[%s6421_s17] sm:$0xff]  ;;  %v440_v0 = vld [vmem:[%s6421_s17 + $0x8] sm:$0xff] }
  0x4d   :  { %439 = vst [vmem:[#allocation4] sm:$0xff] %v438_v63  ;;  %441 = vst [vmem:[#allocation4 + $0x8] sm:$0xff] %v440_v0  ;;  %v442_v1 = vld [vmem:[%s6421_s17 + $0x10] sm:$0xff]  ;;  %v444_v2 = vld [vmem:[%s6421_s17 + $0x18] sm:$0xff] }
  0x4e   :  { %v446_v3 = vld [vmem:[%s6421_s17 + $0x20] sm:$0xff]  ;;  %443 = vst [vmem:[#allocation4 + $0x10] sm:$0xff] %v442_v1  ;;  %445 = vst [vmem:[#allocation4 + $0x18] sm:$0xff] %v444_v2  ;;  %v448_v4 = vld [vmem:[%s6421_s17 + $0x28] sm:$0xff] }
  0x4f   :  { %447 = vst [vmem:[#allocation4 + $0x20] sm:$0xff] %v446_v3  ;;  %v450_v5 = vld [vmem:[%s6421_s17 + $0x30] sm:$0xff]  ;;  %v452_v6 = vld [vmem:[%s6421_s17 + $0x38] sm:$0xff]  ;;  %449 = vst [vmem:[#allocation4 + $0x28] sm:$0xff] %v448_v4 }
  0x50   :  { %451 = vst [vmem:[#allocation4 + $0x30] sm:$0xff] %v450_v5  ;;  %453 = vst [vmem:[#allocation4 + $0x38] sm:$0xff] %v452_v6  ;;  %v454_v7 = vld [vmem:[%s6421_s17 + $0x40] sm:$0xff]  ;;  %v456_v8 = vld [vmem:[%s6421_s17 + $0x48] sm:$0xff] }
  0x51   :  { %v458_v9 = vld [vmem:[%s6421_s17 + $0x50] sm:$0xff]  ;;  %455 = vst [vmem:[#allocation4 + $0x40] sm:$0xff] %v454_v7  ;;  %457 = vst [vmem:[#allocation4 + $0x48] sm:$0xff] %v456_v8  ;;  %v460_v10 = vld [vmem:[%s6421_s17 + $0x58] sm:$0xff] }
  0x52   :  { %459 = vst [vmem:[#allocation4 + $0x50] sm:$0xff] %v458_v9  ;;  %v462_v11 = vld [vmem:[%s6421_s17 + $0x60] sm:$0xff]  ;;  %v464_v12 = vld [vmem:[%s6421_s17 + $0x68] sm:$0xff]  ;;  %461 = vst [vmem:[#allocation4 + $0x58] sm:$0xff] %v460_v10 }
  0x53   :  { %463 = vst [vmem:[#allocation4 + $0x60] sm:$0xff] %v462_v11  ;;  %465 = vst [vmem:[#allocation4 + $0x68] sm:$0xff] %v464_v12  ;;  %v466_v13 = vld [vmem:[%s6421_s17 + $0x70] sm:$0xff]  ;;  %v468_v14 = vld [vmem:[%s6421_s17 + $0x78] sm:$0xff] }
  0x54   :  { %467 = vst [vmem:[#allocation4 + $0x70] sm:$0xff] %v466_v13  ;;  %469 = vst [vmem:[#allocation4 + $0x78] sm:$0xff] %v468_v14 }
  0x55   :  { %477 = vsyncadd [#allocation6 + $0x2], 2048  ;;  %v517_v15 = vld [vmem:[%s6423_s19] sm:$0xff]  ;;  %v519_v16 = vld [vmem:[%s6423_s19 + $0x8] sm:$0xff] }
  0x56   :  { %518 = vst [vmem:[#allocation5] sm:$0xff] %v517_v15  ;;  %520 = vst [vmem:[#allocation5 + $0x8] sm:$0xff] %v519_v16  ;;  %v521_v17 = vld [vmem:[%s6423_s19 + $0x10] sm:$0xff]  ;;  %v3966_v18 = vld [vmem:[%s6423_s19 + $0x18] sm:$0xf] }
  0x57   :  { %522 = vst [vmem:[#allocation5 + $0x10] sm:$0xff] %v521_v17  ;;  %534 = vst [vmem:[#allocation5 + $0x18] sm:$0xf] %v3966_v18 }
  0x58   :  { %538 = vsyncadd [#allocation6 + $0x3], 448  ;;  %s6441_s3 = sld [smem:[#allocation23_spill]]  ;;  %vm651_vm0 = vcmask 1043456   ;;  %vm620_vm1 = vcmask 457728   ;;  %v4980_v43 = vmov 0.0  }
  0x59   :  { %s6442_s26 = sld [smem:[#allocation24_spill]]  ;;  %s4981_s5 = smov 28   ;;  %v4983_v16 = vmov 0   ;;  %vm4984_vm2 = vmmov 0   ;;  %vm828_vm3 = vcmask 228352   ;;  %vm839_vm4 = vcmask 687104  }
  0x5a   :  { %s6443_s29 = sld [smem:[#allocation25_spill]]  ;;  %s4982_s17 = smov 56   ;;  %1030 = vmatprep.mubr.bf16.mxu1 %v4983_v16  ;;  %vm988_vm5 = vcmask 916480   ;;  %vm1172_vm6 = vcmask 1041408   ;;  %vm1199_vm7 = vcmask 680960   ;;  %vm1260_vm8 = vcmask 1040384  }
  0x5b   :  { %s6444_s24 = sld [smem:[#allocation26_spill]]  ;;  %vm1447_vm9 = vcmask 162816   ;;  %vm1711_vm10 = vcmask 277504   ;;  %vm1961_vm11 = vcmask 326656  }
  0x5c   :  { %s6445_s25 = sld [smem:[#allocation27_spill]] }
  0x5d   :  { %s6447_s6 = sld [smem:[#allocation29_spill]] }
  0x5e   :  { %v565_v19 = vld [vmem:[%s6441_s3 + $0x30] sm:$0xff]  ;;  %v563_v20 = vld [vmem:[%s6441_s3 + $0x20] sm:$0xff]  ;;  %v564_v22 = vld [vmem:[%s6441_s3 + $0x28] sm:$0xff] }
  0x5f   :  { %v569_v21 = vpack.c.bf16 %v565_v19, %v565_v19  ;;  %v568_v23 = vpack.c.bf16 %v564_v22, %v563_v20  ;;  %v561_v24 = vld [vmem:[%s6441_s3 + $0x10] sm:$0xff]  ;;  %v562_v25 = vld [vmem:[%s6441_s3 + $0x18] sm:$0xff]  ;;  %v4720_v27 = vld [vmem:[%s6442_s26] sm:$0xff]  }
  0x60   :  { %v567_v28 = vpack.c.bf16 %v562_v25, %v561_v24  ;;  %v559_v29 = vld [vmem:[%s6441_s3] sm:$0xff]  ;;  %4464 = vmatprep.mubr.msk.bf16.mxu0 %vm620_vm1, %v4720_v27  ;;  %v560_v30 = vld [vmem:[%s6441_s3 + $0x8] sm:$0xff]  ;;  %v4722_v33 = vld [vmem:[%s6442_s26 + $0x10] sm:$0xff]  }
  0x61   :  { %4634 = vmatprep.subr.msk.bf16.mxu0 %vm651_vm0, %v569_v21  ;;  %v653_v26 = vsel %vm651_vm0, %v569_v21, 0  ;;  %v566_v31 = vpack.c.bf16 %v560_v30, %v559_v29  ;;  %v4721_v32 = vld [vmem:[%s6442_s26 + $0x8] sm:$0xff]   ;;  %v4723_v34 = vld [vmem:[%s6442_s26 + $0x18] sm:$0xff]   ;;  %v4724_v35 = vld [vmem:[%s6442_s26 + $0x20] sm:$0xff]  }
  0x62   :  { %4457 = vmatpush3.bf16.msra.mxu0 %v653_v26  ;;  %v4725_v36 = vld [vmem:[%s6442_s26 + $0x28] sm:$0xff]   ;;  %v4726_v37 = vld [vmem:[%s6442_s26 + $0x30] sm:$0xff]   ;;  %v4727_v38 = vld [vmem:[%s6442_s26 + $0x38] sm:$0xff]  }
  0x63   :  { %4458 = vmatprep.subr.bf16.mxu0 %v568_v23  ;;  %v4728_v39 = vld [vmem:[%s6442_s26 + $0x40] sm:$0xff]   ;;  %v4729_v40 = vld [vmem:[%s6442_s26 + $0x48] sm:$0xff]   ;;  %v4733_v44 = vld [vmem:[%s6443_s29 + $0x90] ss:$12 sps:$4 sm:$0xff]  }
  0x64   :  { %v4730_v41 = vld [vmem:[%s6443_s29 + $0x98] ss:$12 sps:$4 sm:$0xff]   ;;  %v4731_v42 = vld [vmem:[%s6443_s29 + $0x94] ss:$12 sps:$4 sm:$0xff]   ;;  %v4735_v48 = vld [vmem:[%s6443_s29 + $0x7c] ss:$12 sps:$4 sm:$0xff]  }
  0x65   :  { %1000 = vmatprep.subr.bf16.mxu1 %v4731_v42  ;;  %v4734_v45 = vld [vmem:[%s6443_s29 + $0x80] ss:$12 sps:$4 sm:$0xff]   ;;  %v4737_v50 = vld [vmem:[%s6443_s29 + $0x78] ss:$12 sps:$4 sm:$0xff]   ;;  %v4738_v52 = vld [vmem:[%s6443_s29 + $0x68] ss:$12 sps:$4 sm:$0xff]  }
  0x66   :  { %4459 = vmatpush3.bf16.msra.mxu0 %v568_v23  ;;  %1001 = vmatpush1.bf16.msra.mxu1 %v4733_v44  ;;  %v4739_v53 = vld [vmem:[%s6443_s29 + $0x64] ss:$12 sps:$4 sm:$0xff]   ;;  %v4741_v55 = vld [vmem:[%s6443_s29 + $0x60] ss:$12 sps:$4 sm:$0xff]   ;;  %v4744_v59 = vld [vmem:[%s6443_s29 + $0x48] ss:$12 sps:$4 sm:$0xff]  }
  0x67   :  { %4460 = vmatprep.subr.bf16.mxu0 %v567_v28  ;;  %1002 = vmatprep.subr.bf16.mxu1 %v4735_v48  ;;  %v4742_v57 = vld [vmem:[%s6443_s29 + $0x4c] ss:$12 sps:$4 sm:$0xff]   ;;  %v4745_v60 = vld [vmem:[%s6443_s29 + $0x50] ss:$12 sps:$4 sm:$0xff]   ;;  %v4746_v61 = vld [vmem:[%s6443_s29 + $0x34] ss:$12 sps:$4 sm:$0xff]  }
  0x68   :  { %v4748_v63 = vld [vmem:[%s6443_s29 + $0x30] ss:$12 sps:$4 sm:$0xff]   ;;  %v4749_v0 = vld [vmem:[%s6443_s29 + $0x38] ss:$12 sps:$4 sm:$0xff]   ;;  %v4753_v7 = vld [vmem:[%s6443_s29 + $0x20] ss:$12 sps:$4 sm:$0xff]  }
  0x69   :  { %v4750_v4 = vld [vmem:[%s6443_s29 + $0x1c] ss:$12 sps:$4 sm:$0xff]   ;;  %v4752_v6 = vld [vmem:[%s6443_s29 + $0x18] ss:$12 sps:$4 sm:$0xff]   ;;  %v4756_v12 = vld [vmem:[%s6443_s29] ss:$12 sps:$4 sm:$0xff]  }
  0x6a   :  { %4461 = vmatpush3.bf16.msra.mxu0 %v567_v28  ;;  %1003 = vmatpush1.bf16.msra.mxu1 %v4737_v50  ;;  %v4754_v10 = vld [vmem:[%s6443_s29 + $0x4] ss:$12 sps:$4 sm:$0xff]   ;;  %v4757_v13 = vld [vmem:[%s6443_s29 + $0x8] ss:$12 sps:$4 sm:$0xff]   ;;  %s4985_s29 = smov 84  }
  0x6b   :  { %4462 = vmatprep.subr.bf16.mxu0 %v566_v31  ;;  %1004 = vmatprep.subr.bf16.mxu1 %v4739_v53 }
  0x6e   :  { %4463 = vmatpush3.bf16.msra.mxu0 %v566_v31  ;;  %1005 = vmatpush1.bf16.msra.mxu1 %v4741_v55 }
  0x6f   :  { %4484 = vmatprep.subr.bf16.mxu0 %v4980_v43  ;;  %1006 = vmatprep.subr.bf16.mxu1 %v4742_v57 }
  0x71   :  { %4465 = vmatmul.mubr.msk.bf16.vlgmr.msra.gmra.mxu0 %vm620_vm1, %v4721_v32 }
  0x72   :  { %4468 = vmatprep.mubr.msk.bf16.mxu0 %vm620_vm1, %v4722_v33  ;;  %4485 = vmatpush3.bf16.msra.mxu0 %v4730_v41 }
  0x73   :  { %4486 = vmatprep.subr.bf16.mxu0 %v4980_v43  ;;  %1007 = vmatpush1.bf16.msra.mxu1 %v4744_v59 }
  0x74   :  { %1008 = vmatprep.subr.bf16.mxu1 %v4746_v61 }
  0x76   :  { %4487 = vmatpush3.bf16.msra.mxu0 %v4734_v45 }
  0x77   :  { %4488 = vmatprep.subr.bf16.mxu0 %v4980_v43  ;;  %1009 = vmatpush1.bf16.msra.mxu1 %v4748_v63 }
  0x78   :  { %1010 = vmatprep.subr.bf16.mxu1 %v4750_v4  ;;  %v1145_v4 = vld [vmem:[%s6444_s24 + $0xf0] sm:$0xff] }
  0x79   :  { %4469 = vmatmul.mubr.msk.bf16.gmra.mxu0 %vm620_vm1, %v4723_v34 }
  0x7a   :  { %4472 = vmatprep.mubr.msk.bf16.mxu0 %vm620_vm1, %v4724_v35  ;;  %4489 = vmatpush3.bf16.msra.mxu0 %v4738_v52 }
  0x7b   :  { %4490 = vmatprep.subr.bf16.mxu0 %v4980_v43  ;;  %1011 = vmatpush1.bf16.msra.mxu1 %v4752_v6  ;;  %v1144_v6 = vld [vmem:[%s6444_s24 + $0xe8] sm:$0xff] }
  0x7c   :  { %1012 = vmatprep.subr.bf16.mxu1 %v4754_v10  ;;  %v1142_v10 = vld [vmem:[%s6444_s24 + $0xd8] sm:$0xff] }
  0x7e   :  { %4491 = vmatpush3.bf16.msra.mxu0 %v4745_v60 }
  0x7f   :  { %4492 = vmatprep.subr.bf16.mxu0 %v4980_v43  ;;  %1013 = vmatpush1.bf16.msra.mxu1 %v4756_v12  ;;  %v1126_v12 = vld [vmem:[%s6444_s24 + $0x58] sm:$0xff] }
  0x81   :  { %4473 = vmatmul.mubr.msk.bf16.gmra.mxu0 %vm620_vm1, %v4725_v36 }
  0x82   :  { %4476 = vmatprep.mubr.msk.bf16.mxu0 %vm620_vm1, %v4726_v37  ;;  %4493 = vmatpush3.bf16.msra.mxu0 %v4749_v0 }
  0x83   :  { %4494 = vmatprep.subr.bf16.mxu0 %v4980_v43 }
  0x86   :  { %4495 = vmatpush3.bf16.msra.mxu0 %v4753_v7  ;;  %v1128_v7 = vld [vmem:[%s6444_s24 + $0x68] sm:$0xff] }
  0x87   :  { %4496 = vmatprep.subr.bf16.mxu0 %v4980_v43 }
  0x89   :  { %4477 = vmatmul.mubr.msk.bf16.gmra.mxu0 %vm620_vm1, %v4727_v38 }
  0x8a   :  { %4480 = vmatprep.mubr.msk.bf16.mxu0 %vm620_vm1, %v4728_v39  ;;  %4497 = vmatpush3.bf16.msra.mxu0 %v4757_v13  ;;  %v1141_v13 = vld [vmem:[%s6444_s24 + $0xd0] sm:$0xff] }
  0x8b   :  { %4510 = vmatprep.subr.mxu0 %v4980_v43 }
  0x91   :  { %4481 = vmatmul.mubr.msk.bf16.gmra.mxu0 %vm620_vm1, %v4729_v40 }
  0x92   :  { %4498 = vmatprep.mubr.msk.bf16.mxu0 %vm4984_vm2, %v4980_v43 }
 0x131   :  { %v5633_v46 = vpop.f32.mrf.mxu0 }
 0x133   :  { %v5635_v47 = vpop.f32.mrf.mxu0 }
 0x135   :  { %v5640_v49 = vpop.f32.mrf.mxu0 }
 0x137   :  { %v5645_v51 = vpop.f32.mrf.mxu0 }
 0x139   :  { %v4470_v54 = vpop.f32.mrf.mxu0 }
 0x13b   :  { %v5657_v56 = vpop.f32.mrf.mxu0 }
 0x13d   :  { %v4471_v58 = vpop.f32.mrf.mxu0 }
 0x13f   :  { %v708_v62 = vpop.f32.mrf.mxu0 }
 0x140   :  { %v4650_v1 = vpack.i.bf16 %v4470_v54, %v708_v62 }
 0x141   :  { %v4474_v2 = vpop.f32.mrf.mxu0 }
 0x142   :  { %4651 = vrot.lane.b32.xlu0 %v4650_v1, %s4981_s5 }
 0x143   :  { %v721_v3 = vpop.f32.mrf.mxu0 }
 0x144   :  { %v4665_v23 = vpack.i.bf16 %v721_v3, %v4471_v58  ;;  %v1130_v3 = vld [vmem:[%s6444_s24 + $0x78] sm:$0xff] }
 0x145   :  { %v4475_v5 = vpop.f32.mrf.mxu0 }
 0x146   :  { %v4655_v8 = vpack.i.bf16 %v4475_v5, %v4474_v2  ;;  %v1129_v5 = vld [vmem:[%s6444_s24 + $0x70] sm:$0xff] }
 0x147   :  { %v724_v9 = vpop.f32.mrf.mxu0 }
 0x148   :  { %4656 = vrot.lane.b32.xlu0 %v4655_v8, %s4982_s17  ;;  %v1143_v8 = vld [vmem:[%s6444_s24 + $0xe0] sm:$0xff] }
 0x149   :  { %v4478_v11 = vpop.f32.mrf.mxu0 }
 0x14b   :  { %v737_v14 = vpop.f32.mrf.mxu0 }
 0x14d   :  { %v4479_v15 = vpop.f32.mrf.mxu0 }
 0x14f   :  { %v740_v17 = vpop.f32.mrf.mxu0 }
 0x150   :  { %v4670_v18 = vpack.i.bf16 %v740_v17, %v737_v14  ;;  %v1156_v14 = vld [vmem:[%s6444_s24 + $0x148] sm:$0xff] }
 0x151   :  { %v4482_v19 = vpop.f32.mrf.mxu0  ;;  %v1140_v17 = vld [vmem:[%s6444_s24 + $0xc8] sm:$0xff] }
 0x152   :  { %4671 = vrot.lane.b32.xlu0 %v4670_v18, %s4982_s17  ;;  %v1155_v18 = vld [vmem:[%s6444_s24 + $0x140] sm:$0xff] }
 0x153   :  { %v753_v20 = vpop.f32.mrf.mxu0 }
 0x154   :  { %v4660_v21 = vpack.i.bf16 %v753_v20, %v4479_v15  ;;  %v1125_v15 = vld [vmem:[%s6444_s24 + $0x50] sm:$0xff]  ;;  %v1139_v20 = vld [vmem:[%s6444_s24 + $0xc0] sm:$0xff] }
 0x155   :  { %v4483_v22 = vpop.f32.mrf.mxu0 }
 0x156   :  { %781 = vrot.lane.b32.xlu0 %v724_v9, %s4981_s5  ;;  %4661 = vrot.lane.b32.xlu1 %v4660_v21, %s4985_s29  ;;  %v1127_v9 = vld [vmem:[%s6444_s24 + $0x60] sm:$0xff]  ;;  %v1154_v21 = vld [vmem:[%s6444_s24 + $0x138] sm:$0xff] }
 0x157   :  { %v756_v24 = vpop.f32.mrf.mxu0 }
 0x158   :  { %v4675_v25 = vpack.i.bf16 %v4482_v19, %v756_v24  ;;  %v1124_v19 = vld [vmem:[%s6444_s24 + $0x48] sm:$0xff]  ;;  %v1153_v24 = vld [vmem:[%s6444_s24 + $0x130] sm:$0xff] }
 0x15a   :  { %4666 = vrot.lane.b32.xlu1 %v4665_v23, %s4981_s5  ;;  %821 = vrot.lane.b32.xlu0 %v4483_v22, %s4985_s29  ;;  %v1123_v22 = vld [vmem:[%s6444_s24 + $0x40] sm:$0xff]  ;;  %v1138_v23 = vld [vmem:[%s6444_s24 + $0xb8] sm:$0xff]  ;;  %s6446_s5 = sld [smem:[#allocation28_spill]] }
 0x15e   :  { %4676 = vrot.lane.b32.xlu1 %v4675_v25, %s4985_s29  ;;  %v1122_v25 = vld [vmem:[%s6444_s24 + $0x38] sm:$0xff] }
 0x162   :  { %801 = vrot.lane.b32.xlu1 %v4478_v11, %s4982_s17  ;;  %v1157_v11 = vld [vmem:[%s6444_s24 + $0x150] sm:$0xf] }
 0x1b4   :  { %v4652_v26 = vpop.permute.xlu0 %4651 }
 0x1b5   :  { %v4654_v28 = vunpack.i.h.bf16 %v4652_v26  ;;  %v4653_v29 = vunpack.i.l.bf16 %v4652_v26  ;;  %v1137_v26 = vld [vmem:[%s6444_s24 + $0xb0] sm:$0xff] }
 0x1b7   :  { %v830_v33 = vsel %vm828_vm3, %v5645_v51, %v4654_v28  ;;  %v829_v34 = vsel %vm828_vm3, %v5635_v47, %v4653_v29  ;;  %v1121_v28 = vld [vmem:[%s6444_s24 + $0x30] sm:$0xff]  ;;  %v1136_v29 = vld [vmem:[%s6444_s24 + $0xa8] sm:$0xff] }
 0x1ba   :  { %v4657_v27 = vpop.permute.xlu0 %4656 }
 0x1bb   :  { %v4659_v30 = vunpack.i.h.bf16 %v4657_v27  ;;  %v4658_v31 = vunpack.i.l.bf16 %v4657_v27  ;;  %v1152_v27 = vld [vmem:[%s6444_s24 + $0x128] sm:$0xff] }
 0x1bd   :  { %v835_v37 = vsel %vm620_vm1, %v830_v33, %v4659_v30  ;;  %v834_v38 = vsel %vm620_vm1, %v829_v34, %v4658_v31  ;;  %v1151_v30 = vld [vmem:[%s6444_s24 + $0x120] sm:$0xff]  ;;  %v1120_v31 = vld [vmem:[%s6444_s24 + $0x28] sm:$0xff]  ;;  %v1150_v33 = vld [vmem:[%s6444_s24 + $0x118] sm:$0xff] }
 0x1be   :  { %v1119_v34 = vld [vmem:[%s6444_s24 + $0x20] sm:$0xff] }
 0x1c4   :  { %v4672_v41 = vpop.permute.xlu0 %4671 }
 0x1c5   :  { %v4674_v51 = vunpack.i.h.bf16 %v4672_v41  ;;  %v4673_v52 = vunpack.i.l.bf16 %v4672_v41  ;;  %v1132_v41 = vld [vmem:[%s6444_s24 + $0x88] sm:$0xff] }
 0x1c8   :  { %v4662_v32 = vpop.permute.xlu1 %4661  ;;  %v782_v57 = vpop.permute.xlu0 %781 }
 0x1c9   :  { %v4664_v35 = vunpack.i.h.bf16 %v4662_v32  ;;  %v4663_v36 = vunpack.i.l.bf16 %v4662_v32  ;;  %v833_v62 = vsel %vm828_vm3, %v5657_v56, %v782_v57  ;;  %v1146_v56 = vld [vmem:[%s6444_s24 + $0xf8] sm:$0xff]  ;;  %v1135_v32 = vld [vmem:[%s6444_s24 + $0xa0] sm:$0xff] }
 0x1ca   :  { %4236 = vmatprep.subr.mxu1 %v1146_v56 }
 0x1cb   :  { %v841_v39 = vsel %vm839_vm4, %v835_v37, %v4664_v35  ;;  %v840_v40 = vsel %vm839_vm4, %v834_v38, %v4663_v36  ;;  %v1134_v35 = vld [vmem:[%s6444_s24 + $0x98] sm:$0xff]  ;;  %v1149_v36 = vld [vmem:[%s6444_s24 + $0x110] sm:$0xff] }
 0x1cc   :  { %v873_v42 = vpack.c.bf16 %v841_v39, %v840_v40  ;;  %v4667_v44 = vpop.permute.xlu1 %4666  ;;  %v822_v0 = vpop.permute.xlu0 %821  ;;  %v1118_v37 = vld [vmem:[%s6444_s24 + $0x18] sm:$0xff]  ;;  %v1133_v38 = vld [vmem:[%s6444_s24 + $0x90] sm:$0xff]  ;;  %v1148_v39 = vld [vmem:[%s6444_s24 + $0x108] sm:$0xff] }
 0x1cd   :  { %v4669_v45 = vunpack.i.h.bf16 %v4667_v44  ;;  %v4668_v48 = vunpack.i.l.bf16 %v4667_v44  ;;  %v1117_v40 = vld [vmem:[%s6444_s24 + $0x10] sm:$0xff]  ;;  %v1116_v44 = vld [vmem:[%s6444_s24 + $0x8] sm:$0xff] }
 0x1ce   :  { %4008 = vmatmul.mubr.msk.bf16.vlgmr.msra.gmra.mxu1 %vm988_vm5, %v873_v42  ;;  %4499 = vmatmul.mubr.msk.bf16.vlgmr.msra.gmra.mxu0 %vm988_vm5, %v873_v42  ;;  %v1147_v42 = vld [vmem:[%s6444_s24 + $0x100] sm:$0xff] }
 0x1cf   :  { %v832_v47 = vsel %vm828_vm3, %v5640_v49, %v4669_v45  ;;  %v831_v50 = vsel %vm828_vm3, %v5633_v46, %v4668_v48  ;;  %1040 = vmatprep.mubr.bf16.mxu1 %v4983_v16  ;;  %4502 = vmatprep.mubr.msk.bf16.mxu0 %vm4984_vm2, %v4980_v43  ;;  %v1131_v45 = vld [vmem:[%s6444_s24 + $0x80] sm:$0xff] }
 0x1d0   :  { %v4677_v53 = vpop.permute.xlu1 %4676  ;;  %v836_v58 = vsel %vm620_vm1, %v831_v50, %v4673_v52  ;;  %v837_v59 = vsel %vm620_vm1, %v832_v47, %v4674_v51  ;;  %4237 = vmatpush3.msra.mxu1 %v1130_v3  ;;  %4511 = vmatpush3.msk.msra.mxu0 %vm651_vm0, %v1157_v11  ;;  %v1115_v48 = vld [vmem:[%s6444_s24] sm:$0xff] }
 0x1d1   :  { %v4679_v54 = vunpack.i.h.bf16 %v4677_v53  ;;  %v4678_v55 = vunpack.i.l.bf16 %v4677_v53  ;;  %4238 = vmatprep.subr.mxu1 %v1145_v4  ;;  %4512 = vmatprep.subr.mxu0 %v4980_v43 }
 0x1d2   :  { %4239 = vmatpush3.msra.mxu1 %v1129_v5  ;;  %4513 = vmatpush3.msra.mxu0 %v1156_v14 }
 0x1d3   :  { %v843_v49 = vsel %vm839_vm4, %v837_v59, %v4679_v54  ;;  %v842_v60 = vsel %vm839_vm4, %v836_v58, %v4678_v55  ;;  %4240 = vmatprep.subr.mxu1 %v1144_v6  ;;  %4514 = vmatprep.subr.mxu0 %v4980_v43 }
 0x1d4   :  { %v874_v46 = vpack.c.bf16 %v843_v49, %v842_v60  ;;  %v802_v61 = vpop.permute.xlu1 %801  ;;  %4241 = vmatpush3.msra.mxu1 %v1128_v7  ;;  %4515 = vmatpush3.msra.mxu0 %v1155_v18 }
 0x1d5   :  { %v838_v63 = vsel %vm620_vm1, %v833_v62, %v802_v61  ;;  %4242 = vmatprep.subr.mxu1 %v1143_v8  ;;  %4516 = vmatprep.subr.mxu0 %v4980_v43 }
 0x1d6   :  { %4009 = vmatmul.mubr.msk.bf16.gmra.mxu1 %vm988_vm5, %v874_v46  ;;  %4503 = vmatmul.mubr.msk.bf16.gmra.mxu0 %vm988_vm5, %v874_v46  ;;  %v844_v1 = vsel %vm839_vm4, %v838_v63, %v822_v0 }
 0x1d7   :  { %1050 = vmatprep.mubr.bf16.mxu1 %v4983_v16  ;;  %4506 = vmatprep.mubr.msk.bf16.mxu0 %vm4984_vm2, %v4980_v43  ;;  %v875_v2 = vpack.c.bf16 %v844_v1, %v844_v1 }
 0x1d8   :  { %4243 = vmatpush3.msra.mxu1 %v1127_v9  ;;  %4517 = vmatpush3.msra.mxu0 %v1154_v21 }
 0x1d9   :  { %4244 = vmatprep.subr.mxu1 %v1142_v10  ;;  %4518 = vmatprep.subr.mxu0 %v4980_v43 }
 0x1da   :  { %4245 = vmatpush3.msra.mxu1 %v1126_v12  ;;  %4519 = vmatpush3.msra.mxu0 %v1153_v24 }
 0x1db   :  { %4246 = vmatprep.subr.mxu1 %v1141_v13  ;;  %4520 = vmatprep.subr.mxu0 %v4980_v43 }
 0x1dc   :  { %4247 = vmatpush3.msra.mxu1 %v1125_v15  ;;  %4521 = vmatpush3.msra.mxu0 %v1152_v27 }
 0x1dd   :  { %4248 = vmatprep.subr.mxu1 %v1140_v17  ;;  %4522 = vmatprep.subr.mxu0 %v4980_v43 }
 0x1de   :  { %4010 = vmatmul.mubr.msk.bf16.gmra.mxu1 %vm988_vm5, %v875_v2  ;;  %4507 = vmatmul.mubr.msk.bf16.gmra.mxu0 %vm988_vm5, %v875_v2 }
 0x1df   :  { %4532 = vmatprep.mubr.msk.f32.mxu0 %vm4984_vm2, %v4980_v43  ;;  %4249 = vmatpush3.msra.mxu1 %v1124_v19 }
 0x1e0   :  { %4250 = vmatprep.subr.mxu1 %v1139_v20  ;;  %4523 = vmatpush3.msra.mxu0 %v1151_v30 }
 0x1e1   :  { %4251 = vmatpush3.msra.mxu1 %v1123_v22  ;;  %4524 = vmatprep.subr.mxu0 %v4980_v43 }
 0x1e2   :  { %4252 = vmatprep.subr.mxu1 %v1138_v23  ;;  %4525 = vmatpush3.msra.mxu0 %v1150_v33 }
 0x1e3   :  { %4253 = vmatpush3.msra.mxu1 %v1122_v25  ;;  %4526 = vmatprep.subr.mxu0 %v4980_v43 }
 0x1e4   :  { %4254 = vmatprep.subr.mxu1 %v1137_v26  ;;  %4527 = vmatpush3.msra.mxu0 %v1149_v36 }
 0x1e5   :  { %4255 = vmatpush3.msra.mxu1 %v1121_v28  ;;  %4528 = vmatprep.subr.mxu0 %v4980_v43 }
 0x1e6   :  { %4256 = vmatprep.subr.mxu1 %v1136_v29  ;;  %4529 = vmatpush3.msra.mxu0 %v1148_v39 }
 0x1e7   :  { %4257 = vmatpush3.msra.mxu1 %v1120_v31  ;;  %4530 = vmatprep.subr.mxu0 %v4980_v43 }
 0x1e8   :  { %4258 = vmatprep.subr.mxu1 %v1135_v32  ;;  %4531 = vmatpush3.msra.mxu0 %v1147_v42 }
 0x1e9   :  { %4259 = vmatpush3.msra.mxu1 %v1119_v34 }
 0x1ea   :  { %4260 = vmatprep.subr.mxu1 %v1134_v35 }
 0x1eb   :  { %4261 = vmatpush3.msra.mxu1 %v1118_v37 }
 0x1ec   :  { %4262 = vmatprep.subr.mxu1 %v1133_v38 }
 0x1ed   :  { %4263 = vmatpush3.msra.mxu1 %v1117_v40 }
 0x1ee   :  { %4264 = vmatprep.subr.mxu1 %v1132_v41 }
 0x1ef   :  { %4265 = vmatpush3.msra.mxu1 %v1116_v44 }
 0x1f0   :  { %4266 = vmatprep.subr.mxu1 %v1131_v45 }
 0x1f1   :  { %4267 = vmatpush3.msra.mxu1 %v1115_v48 }
 0x1f2   :  { %4535 = vmatprep.subr.mxu1 %v4980_v43 }
 0x28e   :  { %v5886_v47 = vpop.f32.mrf.mxu1  ;;  %v5888_v50 = vpop.f32.mrf.mxu0 }
 0x28f   :  { %v1210_v55 = vmul.f32 %v5888_v50, %v5888_v50  ;;  %v1208_v61 = vmul.f32 %v5886_v47, %v5886_v47  ;;  %v1192_v62 = vsel %vm839_vm4, %v5888_v50, 0.0 }
 0x290   :  { %v5890_v51 = vpop.f32.mrf.mxu1  ;;  %v4500_v52 = vpop.f32.mrf.mxu0 }
 0x291   :  { %v1245_v1 = vsel %vm839_vm4, %v1210_v55, 0.0  ;;  %v1209_v6 = vmul.f32 %v5890_v51, %v5890_v51 }
 0x292   :  { %v5892_v53 = vpop.f32.mrf.mxu1  ;;  %v5894_v54 = vpop.f32.mrf.mxu0 }
 0x293   :  { %v1213_v57 = vmul.f32 %v5894_v54, %v5894_v54  ;;  %v1211_v49 = vmul.f32 %v5892_v53, %v5892_v53  ;;  %v1193_v63 = vsel %vm839_vm4, %v5894_v54, 0.0  ;;  %v1169_v7 = vadd.f32 %v5892_v53, %v5886_v47 }
 0x294   :  { %v5900_v58 = vpop.f32.mrf.mxu1  ;;  %v4501_v59 = vpop.f32.mrf.mxu0  ;;  %v1194_v11 = vadd.f32 %v1193_v63, %v1192_v62 }
 0x295   :  { %v1212_v0 = vmul.f32 %v5900_v58, %v5900_v58  ;;  %v1246_v2 = vsel %vm839_vm4, %v1213_v57, 0.0  ;;  %v1223_v10 = vadd.f32 %v1211_v49, %v1208_v61  ;;  %v1181_v12 = vadd.f32 %v5900_v58, %v5890_v51 }
 0x296   :  { %v5904_v60 = vpop.f32.mrf.mxu1  ;;  %v5906_v46 = vpop.f32.mrf.mxu0  ;;  %v1247_v17 = vadd.f32 %v1246_v2, %v1245_v1 }
 0x297   :  { %v1214_v56 = vmul.f32 %v5904_v60, %v5904_v60  ;;  %v1216_v3 = vmul.f32 %v5906_v46, %v5906_v46  ;;  %v1195_v8 = vsel %vm839_vm4, %v5906_v46, 0.0  ;;  %v1234_v18 = vadd.f32 %v1212_v0, %v1209_v6 }
 0x298   :  { %v5922_v4 = vpop.f32.mrf.mxu1  ;;  %v4504_v5 = vpop.f32.mrf.mxu0  ;;  %v1170_v19 = vadd.f32 %v1169_v7, %v5904_v60  ;;  %v1196_v22 = vadd.f32 %v1195_v8, %v1194_v11 }
 0x299   :  { %v1215_v9 = vmul.f32 %v5922_v4, %v5922_v4  ;;  %v1248_v13 = vsel %vm839_vm4, %v1216_v3, 0.0  ;;  %v1224_v21 = vadd.f32 %v1223_v10, %v1214_v56  ;;  %v1182_v28 = vadd.f32 %v1181_v12, %v5922_v4 }
 0x29a   :  { %v5935_v14 = vpop.f32.mrf.mxu1  ;;  %v5937_v15 = vpop.f32.mrf.mxu0  ;;  %v1249_v27 = vadd.f32 %v1248_v13, %v1247_v17 }
 0x29b   :  { %v1217_v20 = vmul.f32 %v5935_v14, %v5935_v14  ;;  %v1197_v23 = vsel %vm839_vm4, %v5937_v15, 0.0  ;;  %v1219_v24 = vmul.f32 %v5937_v15, %v5937_v15  ;;  %v1235_v29 = vadd.f32 %v1234_v18, %v1215_v9 }
 0x29c   :  { %v5946_v25 = vpop.f32.mrf.mxu1  ;;  %v4505_v26 = vpop.f32.mrf.mxu0  ;;  %v1171_v31 = vadd.f32 %v1170_v19, %v5935_v14  ;;  %v1198_v33 = vadd.f32 %v1197_v23, %v1196_v22 }
 0x29d   :  { %v1218_v30 = vmul.f32 %v5946_v25, %v5946_v25  ;;  %v1225_v32 = vadd.f32 %v1224_v21, %v1217_v20  ;;  %v1250_v34 = vsel %vm839_vm4, %v1219_v24, 0.0  ;;  %v1183_v38 = vadd.f32 %v1182_v28, %v5946_v25 }
 0x29e   :  { %v5953_v35 = vpop.f32.mrf.mxu1  ;;  %v5955_v36 = vpop.f32.mrf.mxu0  ;;  %v1251_v37 = vadd.f32 %v1250_v34, %v1249_v27 }
 0x29f   :  { %v1173_v39 = vsel %vm1172_vm6, %v5953_v35, 0.0  ;;  %v1220_v40 = vmul.f32 %v5953_v35, %v5953_v35  ;;  %v1236_v41 = vadd.f32 %v1235_v29, %v1218_v30  ;;  %v1200_v44 = vsel %vm1199_vm7, %v5955_v36, 0.0 }
 0x2a0   :  { %v1174_v42 = vadd.f32 %v1173_v39, %v1171_v31  ;;  %v1222_v45 = vmul.f32 %v5955_v36, %v5955_v36  ;;  %v5966_v48 = vpop.f32.mrf.mxu1  ;;  %v4508_v52 = vpop.f32.mrf.mxu0  ;;  %v1201_v57 = vadd.f32 %v1200_v44, %v1198_v33 }
 0x2a1   :  { %v1226_v55 = vsel %vm1172_vm6, %v1220_v40, 0.0  ;;  %v1184_v59 = vsel %vm1172_vm6, %v5966_v48, 0.0  ;;  %v1221_v49 = vmul.f32 %v5966_v48, %v5966_v48 }
 0x2a2   :  { %v1175_v61 = vrot.slane %v1174_v42, 4  ;;  %v1227_v62 = vadd.f32 %v1226_v55, %v1225_v32  ;;  %v1252_v63 = vsel %vm1199_vm7, %v1222_v45, 0.0  ;;  %v1185_v0 = vadd.f32 %v1184_v59, %v1183_v38  ;;  %v1056_v1 = vpop.f32.mrf.mxu1  ;;  %v1112_v2 = vpop.f32.mrf.mxu0 }
 0x2a3   :  { %v1202_v56 = vrot.slane %v1201_v57, 4  ;;  %v1253_v3 = vadd.f32 %v1252_v63, %v1251_v37  ;;  %v1237_v5 = vsel %vm1172_vm6, %v1221_v49, 0.0  ;;  %v1165_v63 = vld [vmem:[%s6445_s25 + $0x38] sm:$0xf]  ;;  %v1166_v1 = vld [vmem:[%s6445_s25 + $0x40] sm:$0xf] }
 0x2a4   :  { %v1176_v6 = vadd.f32 %v1175_v61, %v1174_v42  ;;  %v1228_v7 = vrot.slane %v1227_v62, 4  ;;  %v1186_v8 = vrot.slane %v1185_v0, 4  ;;  %v1238_v9 = vadd.f32 %v1237_v5, %v1236_v41  ;;  %v1057_v10 = vpop.f32.mrf.mxu1  ;;  %v4509_v11 = vpop.f32.mrf.mxu0  ;;  %4016 = vmatprep.subr.msk.mxu0 %vm651_vm0, %v1165_v63  ;;  %v1162_v2 = vld [vmem:[%s6445_s25 + $0x20] sm:$0xff]  ;;  %v1159_v5 = vld [vmem:[%s6445_s25 + $0x8] sm:$0xff] }
 0x2a5   :  { %v1203_v12 = vadd.f32 %v1202_v56, %v1201_v57  ;;  %v1254_v13 = vrot.slane %v1253_v3, 4  ;;  %v1161_v56 = vld [vmem:[%s6445_s25 + $0x18] sm:$0xff] }
 0x2a6   :  { %v1177_v17 = vrot.slane %v1176_v6, 2  ;;  %v1229_v18 = vadd.f32 %v1228_v7, %v1227_v62  ;;  %v1187_v19 = vadd.f32 %v1186_v8, %v1185_v0  ;;  %v1239_v20 = vrot.slane %v1238_v9, 4  ;;  %v1164_v0 = vld [vmem:[%s6445_s25 + $0x30] sm:$0xf] }
 0x2a7   :  { %v1204_v21 = vrot.slane %v1203_v12, 2  ;;  %v1255_v22 = vadd.f32 %v1254_v13, %v1253_v3  ;;  %v1163_v3 = vld [vmem:[%s6445_s25 + $0x28] sm:$0xff]  ;;  %v1160_v7 = vld [vmem:[%s6445_s25 + $0x10] sm:$0xff] }
 0x2a8   :  { %v1230_v23 = vrot.slane %v1229_v18, 2  ;;  %v1188_v24 = vrot.slane %v1187_v19, 2  ;;  %v1240_v26 = vadd.f32 %v1239_v20, %v1238_v9  ;;  %v1178_v27 = vadd.f32 %v1177_v17, %v1176_v6  ;;  %v1158_v6 = vld [vmem:[%s6445_s25] sm:$0xff] }
 0x2a9   :  { %v1205_v28 = vadd.f32 %v1204_v21, %v1203_v12  ;;  %v1256_v29 = vrot.slane %v1255_v22, 2 }
 0x2aa   :  { %v1231_v30 = vadd.f32 %v1230_v23, %v1229_v18  ;;  %v1189_v31 = vadd.f32 %v1188_v24, %v1187_v19  ;;  %v1241_v32 = vrot.slane %v1240_v26, 2  ;;  %v1179_v40 = vrot.slane %v1178_v27, 1 }
 0x2ab   :  { %v1206_v33 = vrot.slane %v1205_v28, 1  ;;  %v1257_v34 = vadd.f32 %v1256_v29, %v1255_v22  ;;  %v4986_v23 = vmov 1966171168  }
 0x2ac   :  { %v1190_v37 = vrot.slane %v1189_v31, 1  ;;  %v1242_v38 = vadd.f32 %v1241_v32, %v1240_v26  ;;  %v1232_v39 = vrot.slane %v1231_v30, 1  ;;  %v1180_v49 = vadd.f32 %v1179_v40, %v1178_v27 }
 0x2ad   :  { %v1258_v41 = vrot.slane %v1257_v34, 1  ;;  %v1207_v44 = vadd.f32 %v1206_v33, %v1205_v28  ;;  %v1422_v24 = vunpack.c.l.s4 %v4986_v23  ;;  %v1424_v26 = vlaneseq  ;;  %v1167_v33 = vld [vmem:[%s6446_s5] sm:$0x1] }
 0x2ae   :  { %v1243_v42 = vrot.slane %v1242_v38, 1  ;;  %v1233_v52 = vadd.f32 %v1232_v39, %v1231_v30  ;;  %v1191_v55 = vadd.f32 %v1190_v37, %v1189_v31 }
 0x2af   :  { %v1259_v45 = vadd.f32 %v1258_v41, %v1257_v34  ;;  %v1423_v27 = vunpack.c.0.s8 %v1422_v24  ;;  %v6015_v28 = vshrl.u32 %v1424_v26, 7 }
 0x2b0   :  { %v1244_v57 = vadd.f32 %v1243_v42, %v1242_v38  ;;  %v1261_v62 = vsel %vm1260_vm8, %v1180_v49, %v1233_v52  ;;  %v1168_v38 = vld [vmem:[%s6447_s6] sm:$0x1] }
 0x2b1   :  { %v1263_v59 = vsel %vm1260_vm8, %v1207_v44, %v1259_v45  ;;  %v6018_v29 = vsub.s32 %v1423_v27, %v6015_v28  ;;  %v6029_v40 = vsub.s32 0, %v6015_v28  ;;  %v6039_v45 = vsub.s32 1, %v6015_v28 }
 0x2b2   :  { %4533 = vmatmul.mubr.msk.f32.vlgmr.msra.gmra.mxu0 %vm839_vm4, %v1263_v59  ;;  %v1262_v61 = vsel %vm1260_vm8, %v1191_v55, %v1244_v57 }
 0x2b3   :  { %1334 = vmatprep.mubr.f32.mxu1 %v1262_v61  ;;  %1524 = vmatprep.mubr.f32.mxu0 %v4980_v43 }
 0x2b4   :  { %1335 = vmatmul.mubr.f32.vlgmr.msra.gmra.mxu1 %v1261_v62  ;;  %4017 = vmatpush1.msk.msra.mxu0 %vm651_vm0, %v1164_v0 }
 0x2b5   :  { %4541 = vmatprep.mubr.msk.f32.mxu1 %vm4984_vm2, %v4980_v43  ;;  %4536 = vmatpush3.msk.msra.mxu1 %vm651_vm0, %v1166_v1 }
 0x2b6   :  { %1488 = vmatprep.subr.mxu0 %v1162_v2  ;;  %4537 = vmatprep.subr.mxu1 %v4980_v43 }
 0x2b7   :  { %1489 = vmatpush1.msra.mxu0 %v1161_v56  ;;  %4538 = vmatpush3.msra.mxu1 %v1163_v3 }
 0x2b8   :  { %1490 = vmatprep.subr.mxu0 %v1159_v5  ;;  %4539 = vmatprep.subr.mxu1 %v4980_v43 }
 0x2b9   :  { %1491 = vmatpush1.msra.mxu0 %v1158_v6  ;;  %4540 = vmatpush3.msra.mxu1 %v1160_v7 }
 0x2ba   :  { %4544 = vmatprep.subr.bf16.mxu0 %v4980_v43 }
 0x372   :  { %v1406_v8 = vpop.f32.mrf.mxu0 }
 0x374   :  { %v4534_v9 = vpop.f32.mrf.mxu0  ;;  %v4268_v10 = vpop.f32.mrf.mxu1 }
 0x376   :  { %v4269_v11 = vpop.f32.mrf.mxu1 }
 0x377   :  { %v4270_v12 = vadd.f32 %v4269_v11, %v4268_v10 }
 0x379   :  { %v1407_v13 = vadd.f32 %v4270_v12, %v1406_v8 }
 0x37b   :  { %v1411_v17 = vmul.f32 0.0017301039, %v1407_v13 }
 0x37d   :  { %v1412_v18 = vmul.f32 %v1411_v17, %v1411_v17 }
 0x37f   :  { %v1414_v19 = vrot.slane %v1412_v18, 7 }
 0x381   :  { %v1416_v20 = vsub.f32 %v1411_v17, %v1414_v19 }
 0x383   :  { %v1417_v21 = vmax.f32 %v1416_v20, 0.0 }
 0x385   :  { %v1418_v22 = vadd.f32 1e-05, %v1417_v21 }
 0x387   :  { %4763 = vrsqrt.f32 %v1418_v22 }
 0x394   :  { %v4764_v30 = vpop.eup %4763 }
 0x395   :  { %v1427_v31 = vrot.slane %v4764_v30, %v6018_v29 }
 0x397   :  { %v1428_v32 = vcombine.high %v1427_v31, %v1427_v31 }
 0x399   :  { %v1435_v34 = vrot.slane %v1428_v32, %v6018_v29 }
 0x39b   :  { %v1437_v37 = vmul.f32 %v1435_v34, %v1167_v33 }
 0x39d   :  { %v1438_v39 = vmul.f32 %v1437_v37, %v1411_v17 }
 0x39f   :  { %v1439_v41 = vsub.f32 %v1168_v38, %v1438_v39 }
 0x3a1   :  { %v1444_v42 = vrot.slane %v1439_v41, %v6029_v40 }
 0x3a3   :  { %v1446_v44 = vsel %vm1260_vm8, %v1437_v37, %v1444_v42 }
 0x3a4   :  { %4018 = vmatmul.mubr.msk.f32.vlgmr.msra.gmra.mxu0 %vm1447_vm9, %v1446_v44  ;;  %4542 = vmatmul.mubr.msk.f32.vlgmr.msra.gmra.mxu1 %vm1447_vm9, %v1446_v44 }
 0x3a5   :  { %4550 = vmatprep.mubr.msk.bf16.mxu0 %vm4984_vm2, %v4980_v43  ;;  %1768 = vmatprep.mubr.bf16.mxu1 %v4983_v16 }
 0x464   :  { %v1526_v52 = vpop.f32.mrf.mxu0  ;;  %v1597_v55 = vpop.f32.mrf.mxu1 }
 0x465   :  { %v1604_v57 = vrot.slane %v1526_v52, %v6029_v40  ;;  %v1612_v59 = vrot.slane %v1597_v55, %v6029_v40  ;;  %v1631_v49 = vrot.slane %v1526_v52, %v6039_v45  ;;  %v1639_v61 = vrot.slane %v1597_v55, %v6039_v45 }
 0x466   :  { %v1528_v62 = vpop.f32.mrf.mxu0  ;;  %v4543_v63 = vpop.f32.mrf.mxu1 }
 0x467   :  { %v1608_v0 = vrot.slane %v1528_v62, %v6029_v40  ;;  %v1635_v1 = vrot.slane %v1528_v62, %v6039_v45  ;;  %v1627_v2 = vmul.f32 %v1612_v59, %v5955_v36  ;;  %v1625_v56 = vmul.f32 %v1604_v57, %v5953_v35 }
 0x468   :  { %v1621_v3 = vmul.f32 %v1612_v59, %v5906_v46  ;;  %v1624_v5 = vmul.f32 %v1612_v59, %v5937_v15  ;;  %v1619_v6 = vmul.f32 %v1604_v57, %v5904_v60  ;;  %v1622_v7 = vmul.f32 %v1604_v57, %v5935_v14 }
 0x469   :  { %v1654_v8 = vadd.f32 %v1639_v61, %v1627_v2  ;;  %v1626_v9 = vmul.f32 %v1608_v0, %v5966_v48  ;;  %v1652_v10 = vadd.f32 %v1631_v49, %v1625_v56  ;;  %v1620_v11 = vmul.f32 %v1608_v0, %v5922_v4 }
 0x46a   :  { %v1623_v12 = vmul.f32 %v1608_v0, %v5946_v25  ;;  %v1648_v13 = vadd.f32 %v1639_v61, %v1621_v3  ;;  %v1651_v36 = vadd.f32 %v1639_v61, %v1624_v5  ;;  %v1646_v17 = vadd.f32 %v1631_v49, %v1619_v6  ;;  %v4762_v3 = vld [vmem:[%s6412_s8 + $0x20] ss:$0 sps:$4 sm:$0xff]  }
 0x46b   :  { %v1669_v35 = vmax.f32 %v1654_v8, 0.0  ;;  %v1653_v18 = vadd.f32 %v1635_v1, %v1626_v9  ;;  %v1667_v46 = vmax.f32 %v1652_v10, 0.0  ;;  %v1647_v19 = vadd.f32 %v1635_v1, %v1620_v11 }
 0x46c   :  { %v1650_v15 = vadd.f32 %v1635_v1, %v1623_v12  ;;  %v1649_v20 = vadd.f32 %v1631_v49, %v1622_v7  ;;  %v1663_v48 = vmax.f32 %v1648_v13, 0.0  ;;  %v1666_v24 = vmax.f32 %v1651_v36, 0.0 }
 0x46d   :  { %v1687_v60 = vpack.c.bf16 %v1669_v35, %v1669_v35  ;;  %v1668_v21 = vmax.f32 %v1653_v18, 0.0  ;;  %v1685_v14 = vpack.c.bf16 %v1667_v46, %v1667_v46  ;;  %v1662_v22 = vmax.f32 %v1647_v19, 0.0 }
 0x46e   :  { %v1665_v23 = vmax.f32 %v1650_v15, 0.0  ;;  %v1661_v25 = vmax.f32 %v1646_v17, 0.0  ;;  %v1614_v27 = vmul.f32 %v1608_v0, %v5890_v51  ;;  %v1664_v31 = vmax.f32 %v1649_v20, 0.0 }
 0x46f   :  { %v1734_v4 = vsel %vm1260_vm8, %v1687_v60, 0  ;;  %v1686_v26 = vpack.c.bf16 %v1668_v21, %v1668_v21  ;;  %v1617_v32 = vmul.f32 %v1608_v0, %v5900_v58  ;;  %v1615_v33 = vmul.f32 %v1612_v59, %v5888_v50 }
 0x470   :  { %4545 = vmatpush3.bf16.msra.mxu0 %v1734_v4  ;;  %v1683_v30 = vpack.c.bf16 %v1665_v23, %v1662_v22  ;;  %v1728_v34 = vsel %vm1260_vm8, %v1685_v14, 0  ;;  %v1641_v37 = vadd.f32 %v1635_v1, %v1614_v27  ;;  %v1618_v38 = vmul.f32 %v1612_v59, %v5894_v54 }
 0x471   :  { %4026 = vmatprep.subr.msk.bf16.mxu1 %vm1260_vm8, %v1686_v26  ;;  %4546 = vmatprep.subr.bf16.mxu0 %v4980_v43  ;;  %v1613_v39 = vmul.f32 %v1604_v57, %v5886_v47  ;;  %v1684_v51 = vpack.c.bf16 %v1666_v24, %v1663_v48  ;;  %v1644_v41 = vadd.f32 %v1635_v1, %v1617_v32 }
 0x472   :  { %1747 = vmatpush1.bf16.msra.mxu1 %v1728_v34  ;;  %v1642_v42 = vadd.f32 %v1639_v61, %v1615_v33  ;;  %v1616_v44 = vmul.f32 %v1604_v57, %v5892_v53  ;;  %v1656_v58 = vmax.f32 %v1641_v37, 0.0  ;;  %v1645_v50 = vadd.f32 %v1639_v61, %v1618_v38  ;;  %v4758_v53 = vld [vmem:[%s6412_s8] sm:$0xff]   ;;  %v4759_v57 = vld [vmem:[%s6412_s8 + $0x8] sm:$0xff]   ;;  %v4761_v61 = vld [vmem:[%s6412_s8 + $0x18] sm:$0xff]  }
 0x473   :  { %1748 = vmatprep.subr.bf16.mxu1 %v1683_v30  ;;  %v1640_v52 = vadd.f32 %v1631_v49, %v1613_v39  ;;  %v1682_v55 = vpack.c.bf16 %v1664_v31, %v1661_v25  ;;  %v1659_v62 = vmax.f32 %v1644_v41, 0.0 }
 0x474   :  { %4547 = vmatpush3.bf16.msra.mxu0 %v1684_v51  ;;  %v1657_v63 = vmax.f32 %v1642_v42, 0.0  ;;  %v1643_v0 = vadd.f32 %v1631_v49, %v1616_v44  ;;  %v1660_v54 = vmax.f32 %v1645_v50, 0.0  ;;  %v4760_v49 = vld [vmem:[%s6412_s8 + $0x10] sm:$0xff]   ;;  %s4987_s8 = smov 40  }
 0x475   :  { %4548 = vmatprep.subr.bf16.mxu0 %v4980_v43  ;;  %v1655_v59 = vmax.f32 %v1640_v52, 0.0  ;;  %v1680_v47 = vpack.c.bf16 %v1659_v62, %v1656_v58 }
 0x476   :  { %1749 = vmatpush1.bf16.msra.mxu1 %v1682_v55  ;;  %v1658_v2 = vmax.f32 %v1643_v0, 0.0  ;;  %v1681_v1 = vpack.c.bf16 %v1660_v54, %v1657_v63 }
 0x477   :  { %1750 = vmatprep.subr.bf16.mxu1 %v1680_v47 }
 0x478   :  { %v1679_v56 = vpack.c.bf16 %v1658_v2, %v1655_v59  ;;  %4549 = vmatpush3.bf16.msra.mxu0 %v1681_v1 }
 0x47a   :  { %1751 = vmatpush1.bf16.msra.mxu1 %v1679_v56 }
 0x47b   :  { %4551 = vmatmul.mubr.msk.bf16.vlgmr.msra.gmra.mxu0 %vm1711_vm10, %v4758_v53 }
 0x47c   :  { %4554 = vmatprep.mubr.msk.bf16.mxu0 %vm4984_vm2, %v4980_v43 }
 0x47d   :  { %4027 = vmatmul.mubr.msk.bf16.vlgmr.msra.gmra.mxu1 %vm1711_vm10, %v4758_v53 }
 0x47e   :  { %1778 = vmatprep.mubr.bf16.mxu1 %v4983_v16 }
 0x483   :  { %4555 = vmatmul.mubr.msk.bf16.gmra.mxu0 %vm1711_vm10, %v4759_v57 }
 0x484   :  { %4558 = vmatprep.mubr.msk.bf16.mxu0 %vm4984_vm2, %v4980_v43 }
 0x485   :  { %4028 = vmatmul.mubr.msk.bf16.gmra.mxu1 %vm1711_vm10, %v4759_v57 }
 0x486   :  { %1788 = vmatprep.mubr.bf16.mxu1 %v4983_v16 }
 0x48b   :  { %4559 = vmatmul.mubr.msk.bf16.gmra.mxu0 %vm1711_vm10, %v4760_v49 }
 0x48c   :  { %4562 = vmatprep.mubr.msk.bf16.mxu0 %vm4984_vm2, %v4980_v43 }
 0x48d   :  { %4029 = vmatmul.mubr.msk.bf16.gmra.mxu1 %vm1711_vm10, %v4760_v49 }
 0x48e   :  { %1798 = vmatprep.mubr.bf16.mxu1 %v4983_v16 }
 0x493   :  { %4563 = vmatmul.mubr.msk.bf16.gmra.mxu0 %vm1711_vm10, %v4761_v61 }
 0x494   :  { %4566 = vmatprep.mubr.msk.bf16.mxu0 %vm4984_vm2, %v4980_v43 }
 0x495   :  { %4030 = vmatmul.mubr.msk.bf16.gmra.mxu1 %vm1711_vm10, %v4761_v61 }
 0x496   :  { %1808 = vmatprep.mubr.bf16.mxu1 %v4983_v16 }
 0x49b   :  { %4567 = vmatmul.mubr.msk.bf16.gmra.mxu0 %vm1711_vm10, %v4762_v3 }
 0x49d   :  { %4031 = vmatmul.mubr.msk.bf16.gmra.mxu1 %vm1711_vm10, %v4762_v3 }
 0x53b   :  { %v6104_v5 = vpop.f32.mrf.mxu0 }
 0x53d   :  { %v6106_v6 = vpop.f32.mrf.mxu1  ;;  %v4552_v7 = vpop.f32.mrf.mxu0 }
 0x53f   :  { %v6108_v8 = vpop.f32.mrf.mxu1  ;;  %v6110_v9 = vpop.f32.mrf.mxu0 }
 0x541   :  { %v6112_v10 = vpop.f32.mrf.mxu1  ;;  %v4553_v11 = vpop.f32.mrf.mxu0 }
 0x543   :  { %v6114_v12 = vpop.f32.mrf.mxu1  ;;  %v6116_v13 = vpop.f32.mrf.mxu0 }
 0x545   :  { %v6118_v36 = vpop.f32.mrf.mxu1  ;;  %v4556_v17 = vpop.f32.mrf.mxu0 }
 0x547   :  { %v6120_v35 = vpop.f32.mrf.mxu1  ;;  %v1862_v18 = vpop.f32.mrf.mxu0 }
 0x549   :  { %v1784_v46 = vpop.f32.mrf.mxu1  ;;  %v4557_v19 = vpop.f32.mrf.mxu0 }
 0x54b   :  { %v1786_v15 = vpop.f32.mrf.mxu1  ;;  %v1867_v60 = vpop.f32.mrf.mxu0 }
 0x54c   :  { %v4680_v20 = vpack.i.bf16 %v1786_v15, %v1784_v46 }
 0x54d   :  { %v1790_v21 = vpop.f32.mrf.mxu1  ;;  %v4560_v22 = vpop.f32.mrf.mxu0 }
 0x54e   :  { %v4685_v14 = vpack.i.bf16 %v1790_v21, %v1862_v18  ;;  %4681 = vrot.lane.b32.xlu1 %v4680_v20, %s4985_s29 }
 0x54f   :  { %v1792_v23 = vpop.f32.mrf.mxu1  ;;  %v1870_v24 = vpop.f32.mrf.mxu0 }
 0x550   :  { %v4690_v48 = vpack.i.bf16 %v1867_v60, %v1792_v23  ;;  %4686 = vrot.lane.b32.xlu0 %v4685_v14, %s4985_s29 }
 0x551   :  { %v1794_v4 = vpop.f32.mrf.mxu1  ;;  %v4561_v26 = vpop.f32.mrf.mxu0 }
 0x552   :  { %4691 = vrot.lane.b32.xlu1 %v4690_v48, %s4985_s29 }
 0x553   :  { %v1796_v25 = vpop.f32.mrf.mxu1  ;;  %v1875_v30 = vpop.f32.mrf.mxu0 }
 0x554   :  { %v4695_v27 = vpack.i.bf16 %v1796_v25, %v1794_v4 }
 0x555   :  { %v1800_v31 = vpop.f32.mrf.mxu1  ;;  %v4564_v32 = vpop.f32.mrf.mxu0 }
 0x556   :  { %1914 = vrot.lane.b32.xlu1 %v1870_v24, %s4985_s29  ;;  %4696 = vrot.lane.b32.xlu0 %v4695_v27, %s4985_s29 }
 0x557   :  { %v1802_v33 = vpop.f32.mrf.mxu1  ;;  %v1878_v37 = vpop.f32.mrf.mxu0 }
 0x558   :  { %v4700_v34 = vpack.i.bf16 %v1802_v33, %v1800_v31 }
 0x559   :  { %v1804_v38 = vpop.f32.mrf.mxu1  ;;  %v4565_v51 = vpop.f32.mrf.mxu0 }
 0x55a   :  { %v4705_v39 = vpack.i.bf16 %v1804_v38, %v1875_v30  ;;  %4701 = vrot.lane.b32.xlu0 %v4700_v34, %s4987_s8 }
 0x55b   :  { %v1806_v41 = vpop.f32.mrf.mxu1  ;;  %v1883_v44 = vpop.f32.mrf.mxu0 }
 0x55c   :  { %v4710_v42 = vpack.i.bf16 %v1878_v37, %v1806_v41  ;;  %4706 = vrot.lane.b32.xlu1 %v4705_v39, %s4987_s8 }
 0x55d   :  { %v1810_v58 = vpop.f32.mrf.mxu1  ;;  %v4568_v50 = vpop.f32.mrf.mxu0 }
 0x55e   :  { %4711 = vrot.lane.b32.xlu0 %v4710_v42, %s4987_s8 }
 0x55f   :  { %v1812_v52 = vpop.f32.mrf.mxu1  ;;  %v1886_v62 = vpop.f32.mrf.mxu0 }
 0x560   :  { %v4715_v55 = vpack.i.bf16 %v1812_v52, %v1810_v58 }
 0x561   :  { %v1814_v63 = vpop.f32.mrf.mxu1  ;;  %v4569_v0 = vpop.f32.mrf.mxu0 }
 0x562   :  { %4716 = vrot.lane.b32.xlu1 %v4715_v55, %s4987_s8  ;;  %1959 = vrot.lane.b32.xlu0 %v1883_v44, %s4987_s8 }
 0x563   :  { %v1815_v54 = vpop.f32.mrf.mxu1 }
 0x5c0   :  { %v4682_v59 = vpop.permute.xlu1 %4681 }
 0x5c1   :  { %v4684_v47 = vunpack.i.h.bf16 %v4682_v59  ;;  %v4683_v2 = vunpack.i.l.bf16 %v4682_v59 }
 0x5c2   :  { %v4687_v1 = vpop.permute.xlu0 %4686 }
 0x5c3   :  { %v1916_v56 = vsel %vm839_vm4, %v4683_v2, %v4684_v47  ;;  %v6130_v53 = vsel %vm839_vm4, %v6104_v5, %v4683_v2  ;;  %v4689_v57 = vunpack.i.h.bf16 %v4687_v1  ;;  %v4688_v49 = vunpack.i.l.bf16 %v4687_v1 }
 0x5c4   :  { %v4692_v61 = vpop.permute.xlu1 %4691 }
 0x5c5   :  { %v6134_v3 = vsel %vm839_vm4, %v6110_v9, %v4689_v57  ;;  %v6137_v7 = vsel %vm839_vm4, %v4684_v47, %v4688_v49  ;;  %v4694_v11 = vunpack.i.h.bf16 %v4692_v61  ;;  %v4693_v17 = vunpack.i.l.bf16 %v4692_v61 }
 0x5c7   :  { %v1918_v18 = vsel %vm839_vm4, %v4689_v57, %v4693_v17  ;;  %v6141_v46 = vsel %vm839_vm4, %v4693_v17, %v4694_v11 }
 0x5c8   :  { %v4697_v19 = vpop.permute.xlu0 %4696  ;;  %v1915_v20 = vpop.permute.xlu1 %1914 }
 0x5c9   :  { %v4699_v5 = vunpack.i.h.bf16 %v4697_v19  ;;  %v4698_v15 = vunpack.i.l.bf16 %v4697_v19 }
 0x5cb   :  { %v6144_v60 = vsel %vm839_vm4, %v4699_v5, %v1915_v20  ;;  %v6147_v9 = vsel %vm839_vm4, %v4698_v15, %v4699_v5  ;;  %v6151_v21 = vsel %vm839_vm4, %v6116_v13, %v4698_v15 }
 0x5cc   :  { %v4702_v14 = vpop.permute.xlu0 %4701 }
 0x5cd   :  { %v4704_v22 = vunpack.i.h.bf16 %v4702_v14  ;;  %v4703_v23 = vunpack.i.l.bf16 %v4702_v14 }
 0x5ce   :  { %v4707_v48 = vpop.permute.xlu1 %4706 }
 0x5cf   :  { %v6154_v24 = vsel %vm1961_vm11, %v4703_v23, %v4704_v22  ;;  %v6157_v4 = vsel %vm1961_vm11, %v4688_v49, %v4703_v23  ;;  %v4709_v26 = vunpack.i.h.bf16 %v4707_v48  ;;  %v4708_v25 = vunpack.i.l.bf16 %v4707_v48 }
 0x5d0   :  { %v4712_v27 = vpop.permute.xlu0 %4711 }
 0x5d1   :  { %v6160_v30 = vsel %vm1961_vm11, %v4694_v11, %v4709_v26  ;;  %v6163_v13 = vsel %vm1961_vm11, %v4704_v22, %v4708_v25  ;;  %v4714_v31 = vunpack.i.h.bf16 %v4712_v27  ;;  %v4713_v32 = vunpack.i.l.bf16 %v4712_v27 }
 0x5d3   :  { %v6166_v33 = vsel %vm1961_vm11, %v4709_v26, %v4713_v32  ;;  %v6169_v34 = vsel %vm1961_vm11, %v4713_v32, %v4714_v31 }
 0x5d4   :  { %v4717_v37 = vpop.permute.xlu1 %4716  ;;  %v1960_v38 = vpop.permute.xlu0 %1959 }
 0x5d5   :  { %v4719_v39 = vunpack.i.h.bf16 %v4717_v37  ;;  %v4718_v51 = vunpack.i.l.bf16 %v4717_v37 }
 0x5d7   :  { %v6172_v41 = vsel %vm1961_vm11, %v4718_v51, %v4719_v39  ;;  %v6175_v42 = vsel %vm1961_vm11, %v1915_v20, %v4718_v51  ;;  %v6178_v44 = vsel %vm1961_vm11, %v4719_v39, %v1960_v38 }
 0x5d8   :  { %4968 = dma.done.wait [#allocation6], 8192 }
 0x5d9   :  { %4969 = vsyncadd [#allocation6], 4294959104  ;;  %v2116_v58 = vpack.c.bf16 %v6114_v12, %v6108_v8  ;;  %v2118_v50 = vpack.c.bf16 %v1918_v18, %v1916_v56  ;;  %v4765_v52 = vld [vmem:[#allocation2 + $0x78] sm:$0xff]   ;;  %v4769_v0 = vld [vmem:[#allocation2 + $0x70] sm:$0xff]   ;;  %v2115_v37 = vpack.c.bf16 %v6112_v10, %v6106_v6  ;;  %v2117_v38 = vpack.c.bf16 %v6134_v3, %v6130_v53  ;;  %s6448_s3 = sld [smem:[#allocation22_spill]]  ;;  %s4988_s5 = smov 100  }
 0x5da   :  { %v4766_v55 = vld [vmem:[#allocation2 + $0xf8] sm:$0xff]   ;;  %4295 = vmatprep.subr.bf16.mxu1 %v4765_v52  ;;  %v4770_v54 = vld [vmem:[#allocation2 + $0xf0] sm:$0xff]   ;;  %v4773_v2 = vld [vmem:[#allocation2 + $0x68] sm:$0xff]   ;;  %vm2521_vm12 = vcmask 1045504   ;;  %v2126_v52 = vpack.c.bf16 %v6147_v9, %v6147_v9  ;;  %v2125_v9 = vpack.c.bf16 %v6151_v21, %v6151_v21  ;;  %vm2514_vm13 = vcmask 1014784   ;;  %s4990_s1 = smov 44  }
 0x5db   :  { %2557 = vmatprep.mubr.bf16.mxu1 %v2116_v58  ;;  %2605 = vmatprep.mubr.bf16.mxu0 %v2118_v50  ;;  %v4767_v62 = vld [vmem:[#allocation2 + $0x38] sm:$0xff]   ;;  %v4771_v59 = vld [vmem:[#allocation2 + $0x30] sm:$0xff]   ;;  %v4774_v8 = vld [vmem:[#allocation2 + $0xe8] sm:$0xff]   ;;  %v2124_v58 = vpack.c.bf16 %v6120_v35, %v6120_v35  ;;  %v2123_v35 = vpack.c.bf16 %v6118_v36, %v6118_v36  ;;  %vm2734_vm14 = vcmask 818176   ;;  %vm2738_vm15 = vcmask 814080   ;;  %s4991_s2 = smov 16  }
 0x5dc   :  { %4323 = vmatprep.subr.bf16.mxu0 %v4766_v55  ;;  %v4768_v63 = vld [vmem:[#allocation2 + $0xb8] sm:$0xff]   ;;  %4296 = vmatpush3.bf16.msra.mxu1 %v4767_v62  ;;  %v4772_v47 = vld [vmem:[#allocation2 + $0xb0] sm:$0xff]   ;;  %v4775_v12 = vld [vmem:[#allocation2 + $0x28] sm:$0xff]  }
 0x5dd   :  { %4324 = vmatpush3.bf16.msra.mxu0 %v4768_v63  ;;  %4297 = vmatprep.subr.bf16.mxu1 %v4769_v0  ;;  %v4776_v1 = vld [vmem:[#allocation2 + $0xa8] sm:$0xff]   ;;  %v4777_v56 = vld [vmem:[#allocation2 + $0x60] sm:$0xff]   ;;  %v4781_v11 = vld [vmem:[#allocation2 + $0x58] sm:$0xff]   ;;  %v2120_v0 = vpack.c.bf16 %v6160_v30, %v6157_v4 }
 0x5de   :  { %4325 = vmatprep.subr.bf16.mxu0 %v4770_v54  ;;  %v4778_v57 = vld [vmem:[#allocation2 + $0xe0] sm:$0xff]   ;;  %v4782_v17 = vld [vmem:[#allocation2 + $0xd8] sm:$0xff]   ;;  %v4785_v5 = vld [vmem:[#allocation2 + $0x50] sm:$0xff]  }
 0x5df   :  { %v4779_v49 = vld [vmem:[#allocation2 + $0x20] sm:$0xff]   ;;  %v4783_v18 = vld [vmem:[#allocation2 + $0x18] sm:$0xff]   ;;  %v4786_v15 = vld [vmem:[#allocation2 + $0xd0] sm:$0xff]  }
 0x5e0   :  { %4298 = vmatpush3.bf16.msra.mxu1 %v4771_v59  ;;  %v4780_v61 = vld [vmem:[#allocation2 + $0xa0] sm:$0xff]   ;;  %v4784_v19 = vld [vmem:[#allocation2 + $0x98] sm:$0xff]   ;;  %v4787_v20 = vld [vmem:[#allocation2 + $0x10] sm:$0xff]   ;;  %v2122_v59 = vpack.c.bf16 %v6169_v34, %v6163_v13 }
 0x5e1   :  { %4326 = vmatpush3.bf16.msra.mxu0 %v4772_v47  ;;  %4299 = vmatprep.subr.bf16.mxu1 %v4773_v2  ;;  %v4788_v14 = vld [vmem:[#allocation2 + $0x90] sm:$0xff]   ;;  %v4789_v22 = vld [vmem:[#allocation2 + $0x48] sm:$0xff]   ;;  %v4793_v25 = vld [vmem:[#allocation2 + $0x40] sm:$0xff]  }
 0x5e2   :  { %4327 = vmatprep.subr.bf16.mxu0 %v4774_v8  ;;  %v4790_v23 = vld [vmem:[#allocation2 + $0xc8] sm:$0xff]   ;;  %v4794_v27 = vld [vmem:[#allocation2 + $0xc0] sm:$0xff]   ;;  %v4797_v39 = vld [vmem:[#allocation2 + $0x178] sm:$0xff]  }
 0x5e3   :  { %v4791_v48 = vld [vmem:[#allocation2 + $0x8] sm:$0xff]   ;;  %v4795_v31 = vld [vmem:[#allocation2] sm:$0xff]   ;;  %v4798_v51 = vld [vmem:[#allocation2 + $0x1f8] sm:$0x3f]  }
 0x5e4   :  { %4300 = vmatpush3.bf16.msra.mxu1 %v4775_v12  ;;  %v4792_v26 = vld [vmem:[#allocation2 + $0x88] sm:$0xff]   ;;  %v4796_v32 = vld [vmem:[#allocation2 + $0x80] sm:$0xff]   ;;  %v4799_v50 = vld [vmem:[#allocation2 + $0x138] sm:$0xff]  }
 0x5e5   :  { %4328 = vmatpush3.bf16.msra.mxu0 %v4776_v1  ;;  %4301 = vmatprep.subr.bf16.mxu1 %v4777_v56  ;;  %v4800_v55 = vld [vmem:[#allocation2 + $0x1b8] sm:$0xff]   ;;  %v4801_v6 = vld [vmem:[#allocation2 + $0x170] sm:$0xff]   ;;  %v4805_v62 = vld [vmem:[#allocation2 + $0x168] sm:$0xff]  }
 0x5e6   :  { %4329 = vmatprep.subr.bf16.mxu0 %v4778_v57  ;;  %v4802_v10 = vld [vmem:[#allocation2 + $0x1f0] sm:$0xff]   ;;  %v4806_v63 = vld [vmem:[#allocation2 + $0x1e8] sm:$0xff]   ;;  %v4809_v36 = vld [vmem:[#allocation2 + $0x160] sm:$0xff]  }
 0x5e7   :  { %v4803_v53 = vld [vmem:[#allocation2 + $0x130] sm:$0xff]   ;;  %v4807_v54 = vld [vmem:[#allocation2 + $0x128] sm:$0xff]   ;;  %v4810_v2 = vld [vmem:[#allocation2 + $0x1e0] sm:$0xff]  }
 0x5e8   :  { %4302 = vmatpush3.bf16.msra.mxu1 %v4779_v49  ;;  %v4804_v3 = vld [vmem:[#allocation2 + $0x1b0] sm:$0xff]   ;;  %v4808_v47 = vld [vmem:[#allocation2 + $0x1a8] sm:$0xff]   ;;  %v4811_v21 = vld [vmem:[#allocation2 + $0x120] sm:$0xff]  }
 0x5e9   :  { %4330 = vmatpush3.bf16.msra.mxu0 %v4780_v61  ;;  %4303 = vmatprep.subr.bf16.mxu1 %v4781_v11  ;;  %v4812_v4 = vld [vmem:[#allocation2 + $0x1a0] sm:$0xff]   ;;  %v4813_v30 = vld [vmem:[#allocation2 + $0x158] sm:$0xff]   ;;  %v4817_v12 = vld [vmem:[#allocation2 + $0x150] sm:$0xff]  }
 0x5ea   :  { %4331 = vmatprep.subr.bf16.mxu0 %v4782_v17  ;;  %v4814_v13 = vld [vmem:[#allocation2 + $0x1d8] sm:$0xff]   ;;  %v4818_v1 = vld [vmem:[#allocation2 + $0x1d0] sm:$0xff]   ;;  %v4821_v49 = vld [vmem:[#allocation2 + $0x148] sm:$0xff]  }
 0x5eb   :  { %v4815_v34 = vld [vmem:[#allocation2 + $0x118] sm:$0xff]   ;;  %v4819_v56 = vld [vmem:[#allocation2 + $0x110] sm:$0xff]   ;;  %v4822_v61 = vld [vmem:[#allocation2 + $0x1c8] sm:$0xff]  }
 0x5ec   :  { %4304 = vmatpush3.bf16.msra.mxu1 %v4783_v18  ;;  %v4816_v8 = vld [vmem:[#allocation2 + $0x198] sm:$0xff]   ;;  %v4820_v57 = vld [vmem:[#allocation2 + $0x190] sm:$0xff]   ;;  %v4823_v11 = vld [vmem:[#allocation2 + $0x108] sm:$0xff]  }
 0x5ed   :  { %4332 = vmatpush3.bf16.msra.mxu0 %v4784_v19  ;;  %4305 = vmatprep.subr.bf16.mxu1 %v4785_v5  ;;  %v4824_v17 = vld [vmem:[#allocation2 + $0x188] sm:$0xff]   ;;  %v4825_v18 = vld [vmem:[#allocation2 + $0x140] sm:$0xff]  }
 0x5ee   :  { %4333 = vmatprep.subr.bf16.mxu0 %v4786_v15  ;;  %v4826_v19 = vld [vmem:[#allocation2 + $0x1c0] sm:$0xff]  }
 0x5ef   :  { %v4827_v5 = vld [vmem:[#allocation2 + $0x100] sm:$0xff]  }
 0x5f0   :  { %4306 = vmatpush3.bf16.msra.mxu1 %v4787_v20  ;;  %v4828_v15 = vld [vmem:[#allocation2 + $0x180] sm:$0xff]   ;;  %v2119_v20 = vpack.c.bf16 %v6141_v46, %v6137_v7  ;;  %v2127_v7 = vpack.c.bf16 %v6144_v60, %v6144_v60  ;;  %v2129_v46 = vpack.c.bf16 %v6172_v41, %v6172_v41  ;;  %v2728_v60 = vld [vmem:[%s6414_s10 + $0x58] sm:$0xff]  ;;  %v2726_v41 = vld [vmem:[%s6414_s10 + $0x48] sm:$0xff] }
 0x5f1   :  { %4334 = vmatpush3.bf16.msra.mxu0 %v4788_v14  ;;  %4307 = vmatprep.subr.bf16.mxu1 %v4789_v22  ;;  %v2121_v14 = vpack.c.bf16 %v6166_v33, %v6154_v24  ;;  %v2128_v22 = vpack.c.bf16 %v6175_v42, %v6175_v42  ;;  %v2729_v24 = vld [vmem:[%s6414_s10 + $0x60] sm:$0xf]  ;;  %v2727_v33 = vld [vmem:[%s6414_s10 + $0x50] sm:$0xff] }
 0x5f2   :  { %4335 = vmatprep.subr.bf16.mxu0 %v4790_v23  ;;  %v2130_v23 = vpack.c.bf16 %v6178_v44, %v6178_v44  ;;  %v2725_v42 = vld [vmem:[%s6414_s10 + $0x40] sm:$0xff]  ;;  %v2724_v44 = vld [vmem:[%s6414_s10 + $0x38] sm:$0xff] }
 0x5f4   :  { %4308 = vmatpush3.bf16.msra.mxu1 %v4791_v48  ;;  %v2723_v48 = vld [vmem:[%s6414_s10 + $0x30] sm:$0xff] }
 0x5f5   :  { %4336 = vmatpush3.bf16.msra.mxu0 %v4792_v26  ;;  %4309 = vmatprep.subr.bf16.mxu1 %v4793_v25  ;;  %v2722_v26 = vld [vmem:[%s6414_s10 + $0x28] sm:$0xff]  ;;  %v2721_v25 = vld [vmem:[%s6414_s10 + $0x20] sm:$0xff] }
 0x5f6   :  { %4337 = vmatprep.subr.bf16.mxu0 %v4794_v27  ;;  %v2720_v27 = vld [vmem:[%s6414_s10 + $0x18] sm:$0xff] }
 0x5f8   :  { %4310 = vmatpush3.bf16.msra.mxu1 %v4795_v31  ;;  %v2719_v31 = vld [vmem:[%s6414_s10 + $0x10] sm:$0xff] }
 0x5f9   :  { %4338 = vmatpush3.bf16.msra.mxu0 %v4796_v32  ;;  %4351 = vmatprep.subr.bf16.mxu1 %v4797_v39  ;;  %v2718_v32 = vld [vmem:[%s6414_s10 + $0x8] sm:$0xff] }
 0x5fa   :  { %4635 = vmatprep.subr.msk.bf16.mxu0 %vm2521_vm12, %v4798_v51  ;;  %vm3105_vm12 = vcmask 359424  }
 0x5fb   :  { %2558 = vmatmul.mubr.bf16.vlgmr.msra.gmra.mxu1 %v2115_v37  ;;  %v2717_v37 = vld [vmem:[%s6414_s10] sm:$0xff]  ;;  %s4989_s10 = smov 72  }
 0x5fc   :  { %2606 = vmatmul.mubr.bf16.vlgmr.msra.gmra.mxu0 %v2117_v38  ;;  %4352 = vmatpush3.bf16.msra.mxu1 %v4799_v50 }
 0x5fd   :  { %4380 = vmatpush3.bf16.msra.mxu0 %v4800_v55  ;;  %2565 = vmatprep.mubr.bf16.mxu1 %v2124_v58 }
 0x5fe   :  { %4353 = vmatprep.subr.bf16.mxu1 %v4801_v6  ;;  %2613 = vmatprep.mubr.bf16.mxu0 %v2126_v52 }
 0x5ff   :  { %4381 = vmatprep.subr.bf16.mxu0 %v4802_v10 }
 0x600   :  { %4354 = vmatpush3.bf16.msra.mxu1 %v4803_v53 }
 0x601   :  { %4382 = vmatpush3.bf16.msra.mxu0 %v4804_v3  ;;  %4355 = vmatprep.subr.bf16.mxu1 %v4805_v62 }
 0x602   :  { %4383 = vmatprep.subr.bf16.mxu0 %v4806_v63 }
 0x603   :  { %2566 = vmatmul.mubr.bf16.gmra.mxu1 %v2123_v35 }
 0x604   :  { %4356 = vmatpush3.bf16.msra.mxu1 %v4807_v54  ;;  %2614 = vmatmul.mubr.bf16.gmra.mxu0 %v2125_v9 }
 0x605   :  { %4384 = vmatpush3.bf16.msra.mxu0 %v4808_v47  ;;  %2653 = vmatprep.mubr.bf16.mxu1 %v2120_v0 }
 0x606   :  { %4357 = vmatprep.subr.bf16.mxu1 %v4809_v36  ;;  %4101 = vmatprep.mubr.msk.bf16.mxu0 %vm2514_vm13, %v2122_v59 }
 0x607   :  { %4385 = vmatprep.subr.bf16.mxu0 %v4810_v2 }
 0x608   :  { %4358 = vmatpush3.bf16.msra.mxu1 %v4811_v21 }
 0x609   :  { %4386 = vmatpush3.bf16.msra.mxu0 %v4812_v4  ;;  %4359 = vmatprep.subr.bf16.mxu1 %v4813_v30 }
 0x60a   :  { %4387 = vmatprep.subr.bf16.mxu0 %v4814_v13 }
 0x60c   :  { %4360 = vmatpush3.bf16.msra.mxu1 %v4815_v34 }
 0x60d   :  { %4388 = vmatpush3.bf16.msra.mxu0 %v4816_v8  ;;  %4361 = vmatprep.subr.bf16.mxu1 %v4817_v12 }
 0x60e   :  { %4389 = vmatprep.subr.bf16.mxu0 %v4818_v1 }
 0x610   :  { %4362 = vmatpush3.bf16.msra.mxu1 %v4819_v56 }
 0x611   :  { %4390 = vmatpush3.bf16.msra.mxu0 %v4820_v57  ;;  %4363 = vmatprep.subr.bf16.mxu1 %v4821_v49 }
 0x612   :  { %4391 = vmatprep.subr.bf16.mxu0 %v4822_v61 }
 0x614   :  { %4364 = vmatpush3.bf16.msra.mxu1 %v4823_v11 }
 0x615   :  { %4392 = vmatpush3.bf16.msra.mxu0 %v4824_v17  ;;  %4365 = vmatprep.subr.bf16.mxu1 %v4825_v18 }
 0x616   :  { %4393 = vmatprep.subr.bf16.mxu0 %v4826_v19 }
 0x618   :  { %4366 = vmatpush3.bf16.msra.mxu1 %v4827_v5 }
 0x619   :  { %4394 = vmatpush3.bf16.msra.mxu0 %v4828_v15  ;;  %4570 = vmatprep.subr.mxu1 %v4980_v43 }
 0x61a   :  { %4599 = vmatprep.subr.mxu0 %v4980_v43 }
 0x61b   :  { %2654 = vmatmul.mubr.bf16.vlgmr.msra.gmra.mxu1 %v2119_v20 }
 0x61c   :  { %2702 = vmatmul.mubr.bf16.vlgmr.msra.gmra.mxu0 %v2121_v14  ;;  %2661 = vmatprep.mubr.bf16.mxu1 %v2128_v22 }
 0x61d   :  { %4102 = vmatprep.mubr.msk.bf16.mxu0 %vm2514_vm13, %v2130_v23  ;;  %4571 = vmatpush3.msk.msra.mxu1 %vm651_vm0, %v2729_v24  ;;  %vm2875_vm0 = vcmask 80896   ;;  %vm3107_vm13 = vcmask 130048  }
 0x61e   :  { %4572 = vmatprep.subr.mxu1 %v4980_v43 }
 0x61f   :  { %4573 = vmatpush3.msra.mxu1 %v2728_v60 }
 0x620   :  { %4574 = vmatprep.subr.mxu1 %v4980_v43 }
 0x621   :  { %4575 = vmatpush3.msra.mxu1 %v2727_v33 }
 0x622   :  { %4576 = vmatprep.subr.mxu1 %v4980_v43 }
 0x623   :  { %2662 = vmatmul.mubr.bf16.gmra.mxu1 %v2127_v7 }
 0x624   :  { %2710 = vmatmul.mubr.bf16.gmra.mxu0 %v2129_v46  ;;  %4596 = vmatprep.mubr.msk.f32.mxu1 %vm4984_vm2, %v4980_v43 }
 0x625   :  { %4603 = vmatprep.mubr.msk.f32.mxu0 %vm4984_vm2, %v4980_v43  ;;  %4577 = vmatpush3.msra.mxu1 %v2726_v41 }
 0x626   :  { %4578 = vmatprep.subr.mxu1 %v4980_v43 }
 0x627   :  { %4579 = vmatpush3.msra.mxu1 %v2725_v42 }
 0x628   :  { %4580 = vmatprep.subr.mxu1 %v4980_v43 }
 0x629   :  { %4581 = vmatpush3.msra.mxu1 %v2724_v44 }
 0x62a   :  { %4582 = vmatprep.subr.mxu1 %v4980_v43 }
 0x62b   :  { %4583 = vmatpush3.msra.mxu1 %v2723_v48 }
 0x62c   :  { %4584 = vmatprep.subr.mxu1 %v4980_v43 }
 0x62d   :  { %4585 = vmatpush3.msra.mxu1 %v2722_v26 }
 0x62e   :  { %4586 = vmatprep.subr.mxu1 %v4980_v43 }
 0x62f   :  { %4587 = vmatpush3.msra.mxu1 %v2721_v25 }
 0x630   :  { %4588 = vmatprep.subr.mxu1 %v4980_v43 }
 0x631   :  { %4589 = vmatpush3.msra.mxu1 %v2720_v27 }
 0x632   :  { %4590 = vmatprep.subr.mxu1 %v4980_v43 }
 0x633   :  { %4591 = vmatpush3.msra.mxu1 %v2719_v31 }
 0x634   :  { %4592 = vmatprep.subr.mxu1 %v4980_v43 }
 0x635   :  { %4593 = vmatpush3.msra.mxu1 %v2718_v32 }
 0x636   :  { %4594 = vmatprep.subr.mxu1 %v4980_v43 }
 0x637   :  { %4595 = vmatpush3.msra.mxu1 %v2717_v37 }
 0x6bb   :  { %v4311_v38 = vpop.f32.mrf.mxu1 }
 0x6bc   :  { %v4339_v39 = vpop.f32.mrf.mxu0 }
 0x6bd   :  { %v4312_v51 = vpop.f32.mrf.mxu1 }
 0x6be   :  { %v4340_v58 = vpop.f32.mrf.mxu0  ;;  %v4313_v54 = vadd.f32 %v4312_v51, %v4311_v38 }
 0x6bf   :  { %v4314_v50 = vpop.f32.mrf.mxu1  ;;  %v4341_v59 = vadd.f32 %v4340_v58, %v4339_v39 }
 0x6c0   :  { %v4342_v52 = vpop.f32.mrf.mxu0 }
 0x6c1   :  { %v4315_v55 = vpop.f32.mrf.mxu1  ;;  %v2608_v21 = vadd.f32 %v4341_v59, %v4313_v54 }
 0x6c2   :  { %v4343_v6 = vpop.f32.mrf.mxu0  ;;  %v4316_v4 = vadd.f32 %v4315_v55, %v4314_v50 }
 0x6c3   :  { %v4317_v10 = vpop.f32.mrf.mxu1  ;;  %v4344_v30 = vadd.f32 %v4343_v6, %v4342_v52 }
 0x6c4   :  { %v4345_v53 = vpop.f32.mrf.mxu0 }
 0x6c5   :  { %v4318_v3 = vpop.f32.mrf.mxu1  ;;  %v2611_v49 = vadd.f32 %v4344_v30, %v4316_v4  ;;  %v2730_v4 = vld [vmem:[%s6415_s11] sm:$0xff] }
 0x6c6   :  { %v4346_v35 = vpop.f32.mrf.mxu0  ;;  %v4319_v61 = vadd.f32 %v4318_v3, %v4317_v10 }
 0x6c7   :  { %v4320_v62 = vpop.f32.mrf.mxu1  ;;  %v4347_v11 = vadd.f32 %v4346_v35, %v4345_v53 }
 0x6c8   :  { %v4348_v9 = vpop.f32.mrf.mxu0 }
 0x6c9   :  { %v4321_v63 = vpop.f32.mrf.mxu1  ;;  %v2616_v23 = vadd.f32 %v4347_v11, %v4319_v61 }
 0x6ca   :  { %v4349_v0 = vpop.f32.mrf.mxu0 }
 0x6db   :  { %v4367_v47 = vpop.f32.mrf.mxu1 }
 0x6dc   :  { %v4395_v36 = vpop.f32.mrf.mxu0 }
 0x6dd   :  { %v4368_v2 = vpop.f32.mrf.mxu1 }
 0x6de   :  { %v4369_v13 = vadd.f32 %v4368_v2, %v4367_v47  ;;  %v4396_v34 = vpop.f32.mrf.mxu0 }
 0x6df   :  { %v4370_v8 = vpop.f32.mrf.mxu1  ;;  %v4397_v56 = vadd.f32 %v4396_v34, %v4395_v36 }
 0x6e0   :  { %v2656_v12 = vadd.f32 %v4369_v13, %v2608_v21  ;;  %v4398_v1 = vpop.f32.mrf.mxu0  ;;  %v2731_v21 = vld [vmem:[%s6415_s11 + $0x8] sm:$0x3] }
 0x6e1   :  { %v4371_v57 = vpop.f32.mrf.mxu1  ;;  %4600 = vmatpush3.msk.msra.mxu0 %vm1172_vm6, %v2731_v21 }
 0x6e2   :  { %v4372_v17 = vadd.f32 %v4371_v57, %v4370_v8  ;;  %v4399_v18 = vpop.f32.mrf.mxu0  ;;  %v6270_v19 = vadd.f32 %v4397_v56, %v2656_v12  ;;  %4601 = vmatprep.subr.mxu0 %v4980_v43 }
 0x6e3   :  { %v4373_v5 = vpop.f32.mrf.mxu1  ;;  %v4400_v20 = vadd.f32 %v4399_v18, %v4398_v1  ;;  %4602 = vmatpush3.msra.mxu0 %v2730_v4 }
 0x6e4   :  { %v2659_v15 = vadd.f32 %v4372_v17, %v2611_v49  ;;  %v4401_v14 = vpop.f32.mrf.mxu0  ;;  %v2747_v60 = vmul.f32 %v6270_v19, %v6270_v19  ;;  %v2735_v27 = vsel %vm2734_vm14, %v6270_v19, 0.0  ;;  %4606 = vmatprep.subr.bf16.mxu0 %v4980_v43  ;;  %v2732_v17 = vld [vmem:[%s6416_s12] sm:$0x1] }
 0x6e5   :  { %v4374_v22 = vpop.f32.mrf.mxu1 }
 0x6e6   :  { %v6272_v7 = vadd.f32 %v4400_v20, %v2659_v15  ;;  %v4375_v46 = vadd.f32 %v4374_v22, %v4373_v5  ;;  %v4402_v24 = vpop.f32.mrf.mxu0  ;;  %v2750_v39 = vsel %vm2734_vm14, %v2747_v60, 0.0  ;;  %v2733_v15 = vld [vmem:[%s6417_s13] sm:$0x1] }
 0x6e7   :  { %v4376_v33 = vpop.f32.mrf.mxu1  ;;  %v4403_v48 = vadd.f32 %v4402_v24, %v4401_v14 }
 0x6e8   :  { %v2736_v41 = vsel %vm2734_vm14, %v6272_v7, 0.0  ;;  %v2748_v42 = vmul.f32 %v6272_v7, %v6272_v7  ;;  %v2664_v44 = vadd.f32 %v4375_v46, %v2616_v23  ;;  %v4404_v26 = vpop.f32.mrf.mxu0  ;;  %v2978_v46 = vstv %s6448_s3 }
 0x6e9   :  { %v4377_v25 = vpop.f32.mrf.mxu1  ;;  %v2737_v38 = vadd.f32 %v2736_v41, %v2735_v27  ;;  %v2971_v41 = vadd.s32 8, %v6015_v28 }
 0x6ea   :  { %v2751_v31 = vsel %vm2734_vm14, %v2748_v42, 0.0  ;;  %v6283_v32 = vadd.f32 %v4403_v48, %v2664_v44  ;;  %v4405_v37 = vpop.f32.mrf.mxu0 }
 0x6eb   :  { %v2752_v50 = vadd.f32 %v2751_v31, %v2750_v39  ;;  %vm2974_vm4 = vcmp.lt.s32.totalorder %v2971_v41, 10 }
 0x6ec   :  { %v2739_v51 = vsel %vm2738_vm15, %v6283_v32, 0.0  ;;  %v2749_v58 = vmul.f32 %v6283_v32, %v6283_v32 }
 0x6ed   :  { %v2740_v52 = vadd.f32 %v2739_v51, %v2737_v38 }
 0x6ee   :  { %v2753_v55 = vsel %vm2738_vm15, %v2749_v58, 0.0 }
 0x6ef   :  { %v2741_v6 = vrot.slane %v2740_v52, 4  ;;  %v2754_v10 = vadd.f32 %v2753_v55, %v2752_v50 }
 0x6f1   :  { %v2742_v53 = vadd.f32 %v2741_v6, %v2740_v52  ;;  %v2755_v3 = vrot.slane %v2754_v10, 4  ;;  %v4829_v6 = vld [vmem:[%s6419_s15] sm:$0xff]  }
 0x6f3   :  { %v2743_v35 = vrot.slane %v2742_v53, 2  ;;  %v2756_v62 = vadd.f32 %v2755_v3, %v2754_v10  ;;  %v4830_v10 = vld [vmem:[%s6419_s15 + $0x8] sm:$0xff]  }
 0x6f5   :  { %v2744_v9 = vadd.f32 %v2743_v35, %v2742_v53  ;;  %v2757_v63 = vrot.slane %v2756_v62, 2  ;;  %v4831_v53 = vld [vmem:[%s6419_s15 + $0x10] ss:$0 sps:$4 sm:$0xff]  }
 0x6f7   :  { %v2745_v0 = vrot.slane %v2744_v9, 1  ;;  %v2758_v54 = vadd.f32 %v2757_v63, %v2756_v62 }
 0x6f9   :  { %v2759_v59 = vrot.slane %v2758_v54, 1  ;;  %v2746_v47 = vadd.f32 %v2745_v0, %v2744_v9 }
 0x6fb   :  { %v2760_v36 = vadd.f32 %v2759_v59, %v2758_v54 }
 0x6fd   :  { %v2761_v2 = vsel %vm1260_vm8, %v2746_v47, %v2760_v36 }
 0x6fe   :  { %4597 = vmatmul.mubr.msk.f32.vlgmr.msra.gmra.mxu1 %vm2734_vm14, %v2761_v2 }
 0x7be   :  { %v2834_v30 = vpop.f32.mrf.mxu1 }
 0x7bf   :  { %v2839_v13 = vmul.f32 0.005, %v2834_v30 }
 0x7c0   :  { %v4598_v34 = vpop.f32.mrf.mxu1 }
 0x7c1   :  { %v2840_v8 = vmul.f32 %v2839_v13, %v2839_v13 }
 0x7c3   :  { %v2842_v12 = vrot.slane %v2840_v8, 7 }
 0x7c5   :  { %v2844_v1 = vsub.f32 %v2839_v13, %v2842_v12 }
 0x7c7   :  { %v2845_v56 = vmax.f32 %v2844_v1, 0.0 }
 0x7c9   :  { %v2846_v57 = vadd.f32 1e-05, %v2845_v56 }
 0x7cb   :  { %4832 = vrsqrt.f32 %v2846_v57 }
 0x7d8   :  { %v4833_v49 = vpop.eup %4832 }
 0x7d9   :  { %v2855_v61 = vrot.slane %v4833_v49, %v6018_v29 }
 0x7db   :  { %v2856_v11 = vcombine.high %v2855_v61, %v2855_v61 }
 0x7dd   :  { %v2863_v18 = vrot.slane %v2856_v11, %v6018_v29  ;;  %v2976_v29 = vld [vmem:[%s6418_s14] sm:$0x1] }
 0x7de   :  { %vm2979_vm1 = vcmp.eq.s32.totalorder %v2976_v29, %v2978_v46 }
 0x7df   :  { %v2865_v5 = vmul.f32 %v2863_v18, %v2732_v17  ;;  %v2980_v24 = vsel %vm2979_vm1, 1, %v4983_v16 }
 0x7e0   :  { %v2984_v33 = vrot.slane %v2980_v24, %v6029_v40 }
 0x7e1   :  { %v2866_v20 = vmul.f32 %v2865_v5, %v2839_v13 }
 0x7e2   :  { %vm6326_vm3 = vcmp.eq.s32.totalorder %v2984_v33, 1 }
 0x7e3   :  { %v2867_v14 = vsub.f32 %v2733_v15, %v2866_v20  ;;  %vm6332_vm5 = vmand %vm2974_vm4, %vm6326_vm3 }
 0x7e4   :  { %vm4110_vm7 = vmneg %vm6332_vm5 }
 0x7e5   :  { %v2872_v22 = vrot.slane %v2867_v14, %v6029_v40  ;;  %vm4111_vm10 = vmneg %vm6326_vm3 }
 0x7e6   :  { %vm4112_vm11 = vmpackc.low %vm4110_vm7, %vm4111_vm10 }
 0x7e7   :  { %v2874_v23 = vsel %vm1260_vm8, %v2865_v5, %v2872_v22 }
 0x7e8   :  { %4604 = vmatmul.mubr.msk.f32.vlgmr.msra.gmra.mxu0 %vm2875_vm0, %v2874_v23 }
 0x7e9   :  { %4610 = vmatprep.mubr.msk.bf16.mxu0 %vm4984_vm2, %v4980_v43 }
 0x8a8   :  { %v2948_v60 = vpop.f32.mrf.mxu0 }
 0x8a9   :  { %v2955_v42 = vrot.slane %v2948_v60, %v6029_v40  ;;  %v2962_v27 = vrot.slane %v2948_v60, %v6039_v45 }
 0x8aa   :  { %v4605_v44 = vpop.f32.mrf.mxu0 }
 0x8ab   :  { %v2956_v48 = vmul.f32 %v2955_v42, %v6270_v19  ;;  %v2957_v26 = vmul.f32 %v2955_v42, %v6272_v7  ;;  %v2958_v25 = vmul.f32 %v2955_v42, %v6283_v32 }
 0x8ad   :  { %v2963_v16 = vadd.f32 %v2962_v27, %v2956_v48  ;;  %v2964_v37 = vadd.f32 %v2962_v27, %v2957_v26  ;;  %v2965_v38 = vadd.f32 %v2962_v27, %v2958_v25 }
 0x8af   :  { %v2966_v28 = vmax.f32 %v2963_v16, 0.0  ;;  %v2967_v39 = vmax.f32 %v2964_v37, 0.0  ;;  %v2968_v40 = vmax.f32 %v2965_v38, 0.0 }
 0x8b1   :  { %v2989_v45 = vsel %vm6326_vm3, 0.0, %v2966_v28  ;;  %v2994_v7 = vsel %vm2734_vm14, %v2968_v40, 0.0  ;;  %v3004_v32 = vpack.c.bf16 %v2968_v40, %v2968_v40  ;;  %v2990_v58 = vsel %vm6332_vm5, 0.0, %v2967_v39 }
 0x8b2   :  { %v2992_v51 = vsel %vm2734_vm14, %v2989_v45, 0.0  ;;  %2997 = vst [vmem:[%s6425_s21 + $0x10] sm:$0xf] %v2994_v7  ;;  %v2993_v52 = vsel %vm2734_vm14, %v2990_v58, 0.0  ;;  %v4113_v55 = vpack.c.bf16 %v2967_v39, %v2966_v28 }
 0x8b3   :  { %2995 = vst [vmem:[%s6425_s21] sm:$0xff] %v2992_v51  ;;  %v3028_v50 = vsel %vm1172_vm6, %v3004_v32, 0  ;;  %2996 = vst [vmem:[%s6425_s21 + $0x8] sm:$0xff] %v2993_v52 }
 0x8b4   :  { %4607 = vmatpush3.bf16.msra.mxu0 %v3028_v50 }
 0x8b5   :  { %4608 = vmatprep.subr.bf16.mxu0 %v4980_v43 }
 0x8b8   :  { %4609 = vmatpush3.bf16.msk.msra.mxu0 %vm4112_vm11, %v4113_v55 }
 0x8bb   :  { %4611 = vmatmul.mubr.msk.bf16.vlgmr.msra.gmra.mxu0 %vm1447_vm9, %v4829_v6 }
 0x8bc   :  { %4614 = vmatprep.mubr.msk.bf16.mxu0 %vm4984_vm2, %v4980_v43 }
 0x8c3   :  { %4615 = vmatmul.mubr.msk.bf16.gmra.mxu0 %vm1447_vm9, %v4830_v10 }
 0x8c4   :  { %4618 = vmatprep.mubr.msk.bf16.mxu0 %vm4984_vm2, %v4980_v43 }
 0x8cb   :  { %4619 = vmatmul.mubr.msk.bf16.gmra.mxu0 %vm1447_vm9, %v4831_v53  ;;  %vm3103_vm9 = vcmask 588800  }
 0x97b   :  { %v3064_v3 = vpop.f32.mrf.mxu0 }
 0x97d   :  { %v4612_v35 = vpop.f32.mrf.mxu0 }
 0x97f   :  { %v3067_v62 = vpop.f32.mrf.mxu0 }
 0x980   :  { %3087 = vrot.lane.b32.xlu0 %v3067_v62, %s4988_s5 }
 0x981   :  { %v4613_v9 = vpop.f32.mrf.mxu0 }
 0x983   :  { %v3072_v63 = vpop.f32.mrf.mxu0 }
 0x984   :  { %3091 = vrot.lane.b32.xlu0 %v3072_v63, %s4989_s10 }
 0x985   :  { %v4616_v0 = vpop.f32.mrf.mxu0 }
 0x987   :  { %v3075_v54 = vpop.f32.mrf.mxu0 }
 0x988   :  { %3095 = vrot.lane.b32.xlu1 %v3075_v54, %s4990_s1 }
 0x989   :  { %v4617_v59 = vpop.f32.mrf.mxu0 }
 0x98b   :  { %v3080_v47 = vpop.f32.mrf.mxu0 }
 0x98c   :  { %3099 = vrot.lane.b32.xlu1 %v3080_v47, %s4991_s2 }
 0x98d   :  { %v4620_v36 = vpop.f32.mrf.mxu0 }
 0x98f   :  { %v3083_v2 = vpop.f32.mrf.mxu0 }
 0x991   :  { %v4621_v21 = vpop.f32.mrf.mxu0 }
 0x9f2   :  { %v3088_v4 = vpop.permute.xlu0 %3087 }
 0x9f3   :  { %v6375_v30 = vsel %vm2734_vm14, %v3064_v3, %v3088_v4 }
 0x9f6   :  { %v3092_v13 = vpop.permute.xlu0 %3091 }
 0x9f7   :  { %v3104_v34 = vsel %vm3103_vm9, %v3088_v4, %v3092_v13 }
 0x9fa   :  { %v3096_v8 = vpop.permute.xlu1 %3095 }
 0x9fb   :  { %v6377_v12 = vsel %vm3105_vm12, %v3092_v13, %v3096_v8 }
 0x9fe   :  { %v3100_v1 = vpop.permute.xlu1 %3099 }
 0x9ff   :  { %v3108_v56 = vsel %vm3107_vm13, %v3096_v8, %v3100_v1 }
 0xa00   :  { %4970 = dma.done.wait [#allocation6 + $0x1], 8064 }
 0xa01   :  { %4971 = vsyncadd [#allocation6 + $0x1], 4294959232  ;;  %v3177_v57 = vpack.c.bf16 %v3104_v34, %v3104_v34  ;;  %v3179_v49 = vpack.c.bf16 %v3108_v56, %v3108_v56  ;;  %vm3495_vm15 = vcmask 949248   ;;  %v4834_v61 = vld [vmem:[#allocation3 + $0x10c] ss:$-168 sps:$4 sm:$0xff]   ;;  %v3157_v15 = vld [vmem:[#allocation3 + $0x10] sm:$0xff] }
 0xa02   :  { %v4836_v11 = vld [vmem:[#allocation3 + $0x15c] ss:$-136 sps:$4 sm:$0xff]   ;;  %3505 = vmatprep.subr.bf16.mxu1 %v4834_v61  ;;  %v4838_v17 = vld [vmem:[#allocation3 + $0x108] ss:$-168 sps:$4 sm:$0xff]   ;;  %v4839_v18 = vld [vmem:[#allocation3 + $0x158] ss:$-136 sps:$4 sm:$0xff]  }
 0xa03   :  { %3537 = vmatprep.mubr.bf16.mxu1 %v3177_v57  ;;  %4183 = vmatprep.mubr.msk.bf16.mxu0 %vm3495_vm15, %v3179_v49  ;;  %v4840_v5 = vld [vmem:[#allocation3 + $0x124] ss:$48 sps:$4 sm:$0xff]   ;;  %v4842_v14 = vld [vmem:[#allocation3 + $0x120] ss:$48 sps:$4 sm:$0xff]   ;;  %v3123_v22 = vld [vmem:[#allocation3 + $0x118] sm:$0xff] }
 0xa04   :  { %3546 = vmatprep.subr.bf16.mxu0 %v4836_v11  ;;  %3506 = vmatpush1.bf16.msra.mxu1 %v4838_v17  ;;  %v3158_v20 = vld [vmem:[#allocation3 + $0x70] sm:$0xff]  ;;  %v3124_v46 = vld [vmem:[#allocation3 + $0x98] sm:$0xff]  ;;  %v3153_v33 = vld [vmem:[#allocation3 + $0xc0] sm:$0xff] }
 0xa05   :  { %3547 = vmatpush1.bf16.msra.mxu0 %v4839_v18  ;;  %3507 = vmatprep.subr.bf16.mxu1 %v4840_v5  ;;  %v4163_v23 = vcombine.high %v3157_v15, %v3158_v20  ;;  %v4162_v29 = vcombine.low %v3157_v15, %v3158_v20  ;;  %v4129_v24 = vcombine.high %v3123_v22, %v3124_v46  ;;  %v4843_v60 = vld [vmem:[#allocation3 + $0x17c] ss:$80 sps:$4 sm:$0xff]   ;;  %v4845_v42 = vld [vmem:[#allocation3 + $0x178] ss:$80 sps:$4 sm:$0xff]   ;;  %v3154_v44 = vld [vmem:[#allocation3 + $0x20] sm:$0xff] }
 0xa06   :  { %v4128_v41 = vcombine.low %v3123_v22, %v3124_v46  ;;  %v4846_v48 = vld [vmem:[#allocation3 + $0x184] ss:$-112 sps:$4 sm:$0xff]   ;;  %v4159_v26 = vcombine.high %v3153_v33, %v3154_v44  ;;  %v4848_v25 = vld [vmem:[#allocation3 + $0x180] ss:$-112 sps:$4 sm:$0xff]   ;;  %v4158_v27 = vcombine.low %v3153_v33, %v3154_v44  ;;  %v3115_v40 = vld [vmem:[#allocation3 + $0xd8] sm:$0xff] }
 0xa07   :  { %3548 = vmatprep.subr.bf16.mxu0 %v4163_v23  ;;  %v4849_v31 = vld [vmem:[#allocation3 + $0x134] ss:$-232 sps:$4 sm:$0xff]   ;;  %v4853_v37 = vld [vmem:[#allocation3 + $0x130] ss:$-232 sps:$4 sm:$0xff]   ;;  %v3116_v19 = vld [vmem:[#allocation3 + $0x18] sm:$0xff] }
 0xa08   :  { %3508 = vmatpush1.bf16.msra.mxu1 %v4842_v14  ;;  %v4851_v16 = vld [vmem:[#allocation3 + $0x1f4] ss:$-88 sps:$4 sm:$0xff]   ;;  %v4854_v38 = vld [vmem:[#allocation3 + $0x1f0] ss:$-88 sps:$4 sm:$0xff]   ;;  %v4857_v39 = vld [vmem:[#allocation3 + $0x44] ss:$104 sps:$4 sm:$0xff]   ;;  %v4121_v32 = vcombine.high %v3115_v40, %v3116_v19  ;;  %v4120_v52 = vcombine.low %v3115_v40, %v3116_v19 }
 0xa09   :  { %3549 = vmatpush1.bf16.msra.mxu0 %v4162_v29  ;;  %3509 = vmatprep.subr.bf16.mxu1 %v4129_v24  ;;  %v4855_v28 = vld [vmem:[#allocation3 + $0x54] ss:$280 sps:$4 sm:$0xff]   ;;  %v4859_v45 = vld [vmem:[#allocation3 + $0x50] ss:$280 sps:$4 sm:$0xff]   ;;  %v3175_v53 = vld [vmem:[#allocation3 + $0x1d8] sm:$0x33] }
 0xa0a   :  { %3550 = vmatprep.subr.bf16.mxu0 %v4843_v60  ;;  %v4860_v7 = vld [vmem:[#allocation3 + $0x40] ss:$104 sps:$4 sm:$0xff]   ;;  %v4861_v51 = vld [vmem:[#allocation3 + $0x104] ss:$-56 sps:$4 sm:$0xff]   ;;  %v3113_v58 = vld [vmem:[#allocation3 + $0xb0] sm:$0xff]  ;;  %v4181_v9 = vcombine.high %v3175_v53, %v3175_v53  ;;  %v4180_v63 = vcombine.low %v3175_v53, %v3175_v53 }
 0xa0b   :  { %v3114_v50 = vld [vmem:[#allocation3 + $0x1b0] sm:$0xff]  ;;  %v4863_v55 = vld [vmem:[#allocation3 + $0x100] ss:$-56 sps:$4 sm:$0xff]   ;;  %v4878_v49 = vld [vmem:[#allocation3 + $0x1ec] ss:$-240 sps:$4 sm:$0xff]  }
 0xa0c   :  { %3510 = vmatpush1.bf16.msra.mxu1 %v4128_v41  ;;  %v4119_v6 = vcombine.high %v3113_v58, %v3114_v50  ;;  %v4864_v10 = vld [vmem:[#allocation3 + $0x14c] ss:$136 sps:$4 sm:$0xff]   ;;  %v4118_v3 = vcombine.low %v3113_v58, %v3114_v50  ;;  %v4866_v35 = vld [vmem:[#allocation3 + $0x148] ss:$136 sps:$4 sm:$0xff]   ;;  %v3141_v0 = vld [vmem:[#allocation3 + $0x1e0] sm:$0xff]  ;;  %v3500_v47 = vsel %vm1172_vm6, %v4180_v63, 0 }
 0xa0d   :  { %3551 = vmatpush1.bf16.msra.mxu0 %v4845_v42  ;;  %3511 = vmatprep.subr.bf16.mxu1 %v4846_v48  ;;  %v4867_v62 = vld [vmem:[#allocation3 + $0xf4] ss:$-232 sps:$4 sm:$0xff]   ;;  %v3142_v54 = vld [vmem:[#allocation3] sm:$0xff]  ;;  %v4870_v59 = vld [vmem:[#allocation3 + $0xf0] ss:$-232 sps:$4 sm:$0xff]  }
 0xa0e   :  { %3552 = vmatprep.subr.bf16.mxu0 %v4159_v26  ;;  %v4147_v36 = vcombine.high %v3141_v0, %v3142_v54  ;;  %v4872_v2 = vld [vmem:[#allocation3 + $0x12c] ss:$-152 sps:$4 sm:$0xff]   ;;  %v4146_v13 = vcombine.low %v3141_v0, %v3142_v54  ;;  %v4874_v34 = vld [vmem:[#allocation3 + $0x128] ss:$-152 sps:$4 sm:$0xff]   ;;  %v4880_v61 = vld [vmem:[#allocation3 + $0x5c] ss:$72 sps:$4 sm:$0xff]   ;;  %v3176_v26 = vpack.c.bf16 %v6375_v30, %v6375_v30 }
 0xa0f   :  { %v3171_v21 = vld [vmem:[#allocation3 + $0xe8] sm:$0xff]  ;;  %v4875_v8 = vld [vmem:[#allocation3 + $0x164] ss:$-304 sps:$4 sm:$0xff]   ;;  %v4877_v56 = vld [vmem:[#allocation3 + $0x160] ss:$-304 sps:$4 sm:$0xff]  }
 0xa10   :  { %3512 = vmatpush1.bf16.msra.mxu1 %v4848_v25  ;;  %v3172_v4 = vld [vmem:[#allocation3 + $0x68] sm:$0xff]  ;;  %v4883_v17 = vld [vmem:[#allocation3 + $0x58] ss:$72 sps:$4 sm:$0xff]   ;;  %v4892_v22 = vld [vmem:[#allocation3 + $0x174] ss:$-312 sps:$4 sm:$0xff]   ;;  %v3178_v25 = vpack.c.bf16 %v6377_v12, %v6377_v12 }
 0xa11   :  { %3553 = vmatpush1.bf16.msra.mxu0 %v4158_v27  ;;  %3513 = vmatprep.subr.bf16.mxu1 %v4849_v31  ;;  %v4177_v1 = vcombine.high %v3171_v21, %v3172_v4  ;;  %v4176_v57 = vcombine.low %v3171_v21, %v3172_v4  ;;  %v4882_v11 = vld [vmem:[#allocation3 + $0x1e8] ss:$-240 sps:$4 sm:$0xff]   ;;  %v4884_v18 = vld [vmem:[#allocation3 + $0x1bc] ss:$-400 sps:$4 sm:$0xff]  }
 0xa12   :  { %3554 = vmatprep.subr.bf16.mxu0 %v4851_v16  ;;  %v4886_v5 = vld [vmem:[#allocation3 + $0x8c] ss:$264 sps:$4 sm:$0xff]   ;;  %v4888_v15 = vld [vmem:[#allocation3 + $0x1b8] ss:$-400 sps:$4 sm:$0xff]   ;;  %v4896_v46 = vld [vmem:[#allocation3 + $0x13c] ss:$8 sps:$4 sm:$0xff]  }
 0xa13   :  { %v4889_v20 = vld [vmem:[#allocation3 + $0x88] ss:$264 sps:$4 sm:$0xff]   ;;  %v4890_v14 = vld [vmem:[#allocation3 + $0x84] ss:$296 sps:$4 sm:$0xff]   ;;  %v4900_v60 = vld [vmem:[#allocation3 + $0x138] ss:$8 sps:$4 sm:$0xff]  }
 0xa14   :  { %3514 = vmatpush1.bf16.msra.mxu1 %v4853_v37  ;;  %v4894_v23 = vld [vmem:[#allocation3 + $0x80] ss:$296 sps:$4 sm:$0xff]   ;;  %v4895_v29 = vld [vmem:[#allocation3 + $0x170] ss:$-312 sps:$4 sm:$0xff]   ;;  %v4898_v24 = vld [vmem:[#allocation3 + $0x1c4] ss:$-264 sps:$4 sm:$0xff]  }
 0xa15   :  { %3555 = vmatpush1.bf16.msra.mxu0 %v4854_v38  ;;  %3515 = vmatprep.subr.bf16.mxu1 %v4855_v28  ;;  %v4901_v33 = vld [vmem:[#allocation3 + $0x1c0] ss:$-264 sps:$4 sm:$0xff]   ;;  %v4902_v41 = vld [vmem:[#allocation3 + $0xe4] ss:$168 sps:$4 sm:$0xff]  }
 0xa16   :  { %3556 = vmatprep.subr.bf16.mxu0 %v4857_v39  ;;  %v4904_v42 = vld [vmem:[#allocation3 + $0x7c] ss:$296 sps:$4 sm:$0xff]   ;;  %v4906_v44 = vld [vmem:[#allocation3 + $0xe0] ss:$168 sps:$4 sm:$0xff]  }
 0xa17   :  { %v4907_v48 = vld [vmem:[#allocation3 + $0x78] ss:$296 sps:$4 sm:$0xff]  }
 0xa18   :  { %3516 = vmatpush1.bf16.msra.mxu1 %v4859_v45 }
 0xa19   :  { %3557 = vmatpush1.bf16.msra.mxu0 %v4860_v7  ;;  %3517 = vmatprep.subr.bf16.mxu1 %v4121_v32 }
 0xa1a   :  { %3558 = vmatprep.subr.bf16.mxu0 %v4861_v51 }
 0xa1c   :  { %3518 = vmatpush1.bf16.msra.mxu1 %v4120_v52 }
 0xa1d   :  { %3559 = vmatpush1.bf16.msra.mxu0 %v4863_v55  ;;  %3519 = vmatprep.subr.bf16.mxu1 %v4119_v6 }
 0xa1e   :  { %3560 = vmatprep.subr.bf16.mxu0 %v4864_v10 }
 0xa20   :  { %3520 = vmatpush1.bf16.msra.mxu1 %v4118_v3 }
 0xa21   :  { %3561 = vmatpush1.bf16.msra.mxu0 %v4866_v35  ;;  %3521 = vmatprep.subr.bf16.mxu1 %v4867_v62 }
 0xa22   :  { %4182 = vmatprep.subr.msk.bf16.mxu0 %vm1172_vm6, %v4181_v9 }
 0xa24   :  { %3522 = vmatpush2.bf16.msra.mxu1 %v4870_v59 }
 0xa25   :  { %3563 = vmatpush2.bf16.msra.mxu0 %v3500_v47  ;;  %3523 = vmatprep.subr.bf16.mxu1 %v4147_v36 }
 0xa26   :  { %3564 = vmatprep.subr.bf16.mxu0 %v4872_v2 }
 0xa28   :  { %3524 = vmatpush2.bf16.msra.mxu1 %v4146_v13 }
 0xa29   :  { %3565 = vmatpush2.bf16.msra.mxu0 %v4874_v34  ;;  %3525 = vmatprep.subr.bf16.mxu1 %v4875_v8 }
 0xa2a   :  { %3566 = vmatprep.subr.bf16.mxu0 %v4177_v1 }
 0xa2c   :  { %3526 = vmatpush2.bf16.msra.mxu1 %v4877_v56 }
 0xa2d   :  { %3567 = vmatpush2.bf16.msra.mxu0 %v4176_v57  ;;  %3527 = vmatprep.subr.bf16.mxu1 %v4878_v49 }
 0xa2e   :  { %3568 = vmatprep.subr.bf16.mxu0 %v4880_v61 }
 0xa30   :  { %3528 = vmatpush2.bf16.msra.mxu1 %v4882_v11 }
 0xa31   :  { %3569 = vmatpush2.bf16.msra.mxu0 %v4883_v17  ;;  %3529 = vmatprep.subr.bf16.mxu1 %v4884_v18 }
 0xa32   :  { %3570 = vmatprep.subr.bf16.mxu0 %v4886_v5 }
 0xa34   :  { %3530 = vmatpush2.bf16.msra.mxu1 %v4888_v15 }
 0xa35   :  { %3571 = vmatpush2.bf16.msra.mxu0 %v4889_v20  ;;  %3531 = vmatprep.subr.bf16.mxu1 %v4890_v14 }
 0xa36   :  { %3572 = vmatprep.subr.bf16.mxu0 %v4892_v22 }
 0xa38   :  { %3532 = vmatpush2.bf16.msra.mxu1 %v4894_v23 }
 0xa39   :  { %3573 = vmatpush2.bf16.msra.mxu0 %v4895_v29  ;;  %3533 = vmatprep.subr.bf16.mxu1 %v4896_v46 }
 0xa3a   :  { %3574 = vmatprep.subr.bf16.mxu0 %v4898_v24 }
 0xa3c   :  { %3534 = vmatpush2.bf16.msra.mxu1 %v4900_v60 }
 0xa3d   :  { %3575 = vmatpush2.bf16.msra.mxu0 %v4901_v33  ;;  %3535 = vmatprep.subr.bf16.mxu1 %v4902_v41 }
 0xa3e   :  { %3576 = vmatprep.subr.bf16.mxu0 %v4904_v42 }
 0xa40   :  { %3536 = vmatpush2.bf16.msra.mxu1 %v4906_v44 }
 0xa41   :  { %3577 = vmatpush2.bf16.msra.mxu0 %v4907_v48 }
 0xa43   :  { %3538 = vmatmul.mubr.bf16.vlgmr.msra.gmra.mxu1 %v3176_v26 }
 0xa44   :  { %3579 = vmatmul.mubr.bf16.vlgmr.msra.gmra.mxu0 %v3178_v25 }
 0xb03   :  { %v3539_v27 = vpop.f32.mrf.mxu1 }
 0xb04   :  { %v3580_v31 = vpop.f32.mrf.mxu0 }
 0xb05   :  { %v3541_v16 = vpop.f32.mrf.mxu1  ;;  %v3581_v38 = vadd.f32 %v3580_v31, %v3539_v27 }
 0xb06   :  { %v3582_v37 = vpop.f32.mrf.mxu0 }
 0xb07   :  { %v3583_v28 = vadd.f32 %v3582_v37, %v3541_v16  ;;  %v3543_v39 = vpop.f32.mrf.mxu1 }
 0xb08   :  { %v3584_v40 = vpop.f32.mrf.mxu0 }
 0xb09   :  { %v3589_v19 = vcombine.low %v3581_v38, %v3583_v28  ;;  %v3544_v45 = vpop.f32.mrf.mxu1 }
 0xb0a   :  { %v3585_v7 = vpop.f32.mrf.mxu0 }
 0xb0b   :  { %4184 = vst.sshfl [vmem:[#allocation8] sm:$0x33 pattern:$0x76325410] %v3589_v19 }
 0xb0c   :  { %4972 = dma.done.wait [#allocation6 + $0x2], 2048 }
 0xb0d   :  { %4973 = vsyncadd [#allocation6 + $0x2], 4294965248  ;;  %v3636_v30 = vpack.c.bf16 %v3583_v28, %v3583_v28  ;;  %v4908_v12 = vld [vmem:[#allocation4 + $0x78] sm:$0xff]   ;;  %v4910_v51 = vld [vmem:[#allocation4 + $0x70] sm:$0xff]   ;;  %v3635_v54 = vpack.c.bf16 %v3581_v38, %v3581_v38 }
 0xb0e   :  { %v4909_v32 = vld [vmem:[#allocation4 + $0x38] sm:$0xff]   ;;  %4429 = vmatprep.subr.bf16.mxu1 %v4908_v12  ;;  %v4911_v58 = vld [vmem:[#allocation4 + $0x30] sm:$0xff]   ;;  %v4912_v50 = vld [vmem:[#allocation4 + $0x68] sm:$0xff]  }
 0xb0f   :  { %3772 = vmatprep.mubr.bf16.mxu1 %v3636_v30  ;;  %4430 = vmatpush3.bf16.msra.mxu1 %v4909_v32  ;;  %v4913_v52 = vld [vmem:[#allocation4 + $0x28] sm:$0xff]   ;;  %v4914_v55 = vld [vmem:[#allocation4 + $0x60] sm:$0xff]   ;;  %v4916_v10 = vld [vmem:[#allocation4 + $0x58] sm:$0xff]  }
 0xb10   :  { %4431 = vmatprep.subr.bf16.mxu1 %v4910_v51  ;;  %v4915_v6 = vld [vmem:[#allocation4 + $0x20] sm:$0xff]   ;;  %v4917_v53 = vld [vmem:[#allocation4 + $0x18] sm:$0xff]   ;;  %v4918_v3 = vld [vmem:[#allocation4 + $0x50] sm:$0xff]  }
 0xb11   :  { %v4919_v35 = vld [vmem:[#allocation4 + $0x10] sm:$0xff]   ;;  %v4920_v62 = vld [vmem:[#allocation4 + $0x48] sm:$0xff]   ;;  %v4922_v63 = vld [vmem:[#allocation4 + $0x40] sm:$0xff]  }
 0xb12   :  { %v4921_v9 = vld [vmem:[#allocation4 + $0x8] sm:$0xff]   ;;  %v4923_v0 = vld [vmem:[#allocation4] sm:$0xff]  }
 0xb13   :  { %4432 = vmatpush3.bf16.msra.mxu1 %v4911_v58  ;;  %v4185_v47 = vld [vmem:[%s6422_s18] ss:$0 sm:$0xff] }
 0xb14   :  { %4433 = vmatprep.subr.bf16.mxu1 %v4912_v50 }
 0xb17   :  { %4434 = vmatpush3.bf16.msra.mxu1 %v4913_v52 }
 0xb18   :  { %4435 = vmatprep.subr.bf16.mxu1 %v4914_v55 }
 0xb1b   :  { %4436 = vmatpush3.bf16.msra.mxu1 %v4915_v6 }
 0xb1c   :  { %4437 = vmatprep.subr.bf16.mxu1 %v4916_v10 }
 0xb1f   :  { %4438 = vmatpush3.bf16.msra.mxu1 %v4917_v53 }
 0xb20   :  { %4439 = vmatprep.subr.bf16.mxu1 %v4918_v3 }
 0xb23   :  { %4440 = vmatpush3.bf16.msra.mxu1 %v4919_v35 }
 0xb24   :  { %4441 = vmatprep.subr.bf16.mxu1 %v4920_v62 }
 0xb27   :  { %4442 = vmatpush3.bf16.msra.mxu1 %v4921_v9 }
 0xb28   :  { %4443 = vmatprep.subr.bf16.mxu1 %v4922_v63 }
 0xb2b   :  { %4444 = vmatpush3.bf16.msra.mxu1 %v4923_v0 }
 0xb2e   :  { %3773 = vmatmul.mubr.bf16.vlgmr.msra.gmra.mxu1 %v3635_v54 }
 0xbee   :  { %v4445_v59 = vpop.f32.mrf.mxu1 }
 0xbf0   :  { %v4446_v36 = vpop.f32.mrf.mxu1 }
 0xbf1   :  { %v4447_v2 = vadd.f32 %v4446_v36, %v4445_v59 }
 0xbf2   :  { %v4448_v21 = vpop.f32.mrf.mxu1 }
 0xbf3   :  { %v3775_v4 = vadd.f32 %v4447_v2, %v4185_v47 }
 0xbf4   :  { %v4449_v13 = vpop.f32.mrf.mxu1 }
 0xbf5   :  { %v3780_v34 = vmax.f32 %v3775_v4, 0.0 }
 0xbf6   :  { %4974 = dma.done.wait [#allocation6 + $0x3], 448 }
 0xbf7   :  { %4975 = vsyncadd [#allocation6 + $0x3], 4294966848  ;;  %4622 = vmatprep.subr.bf16.mxu0 %v4980_v43  ;;  %4630 = vmatprep.mubr.msk.bf16.mxu0 %vm4984_vm2, %v4980_v43  ;;  %v4924_v8 = vld [vmem:[#allocation5 + $0x18] ss:$0 sps:$4 sm:$0x11]   ;;  %v4925_v56 = vld [vmem:[#allocation5 + $0x10] sm:$0xff]   ;;  %v3792_v61 = vpack.c.bf16 %v3780_v34, %v3780_v34 }
 0xbf8   :  { %v3826_v1 = vsel %vm1260_vm8, %v4924_v8, 0  ;;  %v4926_v57 = vld [vmem:[#allocation5 + $0x8] sm:$0xff]   ;;  %v4927_v49 = vld [vmem:[#allocation5] sm:$0xff]   ;;  %vm3821_vm6 = vcmask 408576   ;;  %s4992_s18 = smov [#allocation8]  }
 0xbf9   :  { %4623 = vmatpush3.bf16.msra.mxu0 %v3826_v1  ;;  %s3877_s11 = sshll.u32 %s4992_s18, 4  ;;  %s3878_s11 = int_to_ptr.vmem [resolvable:$true] %s3877_s11 }
 0xbfa   :  { %4624 = vmatprep.subr.bf16.mxu0 %v4980_v43  ;;  %s4928_s27 = scalar_lea.vmem %s3878_s11, 64  ;;  %p4933_p1 = scmp.lt.s32.totalorder %s3878_s11, %s3878_s11 }
 0xbfb   :  { %p4929_p0 = scmp.ne.s32.totalorder %s3878_s11, %s4928_s27  ;;  %p4934_p2 = scmp.lt.s32.totalorder %s4928_s27, %s4928_s27 }
 0xbfd   :  { %4625 = vmatpush3.bf16.msra.mxu0 %v4925_v56  ;;  %p4935_p3 = por %p4934_p2, %p4933_p1 }
 0xbfe   :  { %4626 = vmatprep.subr.bf16.mxu0 %v4980_v43 }
 0xbff   :  { %p4936_p4 = pnand %p4935_p3, %p4929_p0 }
 0xc01   :  { %4627 = vmatpush3.bf16.msra.mxu0 %v4926_v57 }
 0xc02   :  { %4628 = vmatprep.subr.bf16.mxu0 %v4980_v43 }
 0xc05   :  { %4629 = vmatpush3.bf16.msra.mxu0 %v4927_v49 }
 0xc08   :  { %4631 = vmatmul.mubr.msk.bf16.vlgmr.msra.gmra.mxu0 %vm3821_vm6, %v3792_v61 }
 0xc09   :  { %4939 = shalt.err (!%p4936_p4)
}
 0xc0a   :  { %3880 = dma.vmem_to_hbm [thread:$0]  %s3878_s11, 64, %s6426_s22, [#allocation9]   ;;  %v4202_v43 = vld [vmem:[%s6424_s20] ss:$0 sm:$0xff] }
 0xc0b   :  { %s4993_s16 = smov [#allocation10]  }
 0xc0c   :  { %s3887_s0 = sshll.u32 %s4993_s16, 4  ;;  %s3888_s0 = int_to_ptr.vmem [resolvable:$true] %s3887_s0 }
 0xc0d   :  { %s4948_s3 = scalar_lea.vmem %s3888_s0, 32  ;;  %p4953_p6 = scmp.lt.s32.totalorder %s3888_s0, %s3888_s0 }
 0xc0e   :  { %p4949_p5 = scmp.ne.s32.totalorder %s3888_s0, %s4948_s3  ;;  %p4954_p7 = scmp.lt.s32.totalorder %s4948_s3, %s4948_s3 }
 0xc10   :  { %p4955_p8 = por %p4954_p7, %p4953_p6 }
 0xc12   :  { %p4956_p9 = pnand %p4955_p8, %p4949_p5 }
 0xcc8   :  { %v3862_v11 = vpop.f32.mrf.mxu0 }
 0xcc9   :  { %v3863_v17 = vadd.f32 %v4202_v43, %v3862_v11 }
 0xcca   :  { %v4632_v18 = vpop.f32.mrf.mxu0 }
 0xccb   :  { %3868 = vst [vmem:[#allocation10] sm:$0x3] %v3863_v17 }
 0xccc   :  { %v3865_v5 = vpop.f32.mrf.mxu0 }
 0xccd   :  { %4959 = shalt.err (!%p4956_p9)
}
 0xcce   :  { %3890 = dma.vmem_to_hbm [thread:$0]  %s3888_s0, 32, %s6427_s23, [#allocation11]   ;;  %v4633_v15 = vpop.f32.mrf.mxu0 }
 0xccf   :  { %4976 = dma.done.wait [#allocation9], 64  }
 0xcd0   :  { %4977 = vsyncadd [#allocation9], 4294967232 }
 0xcd1   :  { %4978 = dma.done.wait [#allocation11], 32  }
 0xcd2   :  { %4979 = vsyncadd [#allocation11], 4294967264 }
 0xcd3   :  { %3899 = vsyncpa [#allocation9], 1 }
 0xcd4   :  { %3900 = vsyncpa [#allocation11], 1 }
 0xcd5   :  { %3901 = vsyncmov [#allocation6] }
 0xcd8   :  { %s3902_s20 = vpop.sfrf %3901 }
 0xcd9   :  { %p4208_p10 = scmp.ne.s32.totalorder %s3902_s20, 0 }
 0xcdb   :  { %3906 = shalt.err (%p4208_p10)  }
 0xcdc   :  { %3908 = vsyncmov [#allocation6 + $0x1] }
 0xcdf   :  { %s3909_s14 = vpop.sfrf %3908 }
 0xce0   :  { %p4209_p11 = scmp.ne.s32.totalorder %s3909_s14, 0 }
 0xce2   :  { %3913 = shalt.err (%p4209_p11)  }
 0xce3   :  { %3915 = vsyncmov [#allocation6 + $0x2] }
 0xce6   :  { %s3916_s4 = vpop.sfrf %3915 }
 0xce7   :  { %p4210_p12 = scmp.ne.s32.totalorder %s3916_s4, 0 }
 0xce9   :  { %3920 = shalt.err (%p4210_p12)  }
 0xcea   :  { %3922 = vsyncmov [#allocation6 + $0x3] }
 0xced   :  { %s3923_s23 = vpop.sfrf %3922 }
 0xcee   :  { %p4211_p13 = scmp.ne.s32.totalorder %s3923_s23, 0 }
 0xcf0   :  { %3927 = shalt.err (%p4211_p13)  }

</bundles_post_ra>
